<compile_context>
chip_gen: v5e
topology: v5e:2x2
jax: 0.10.0
libtpu: 0.0.40
codegen_flags: <defaults>
</compile_context>

<pallas_src>
import functools

import jax
import jax.numpy as jnp
from jax.experimental import pallas as pl
from jax.experimental.pallas import tpu as pltpu

EPS = 1e-5
SLOPE = 0.2
LANE = 128
TILE_M = 1024                      # row tile (multiple of 8 and 16)
VMEM_LIMIT = 48 * 1024 * 1024      # fits v7x's 64 MiB physical VMEM


def _round_up(x, m):
    return (x + m - 1) // m * m


def _pick_tile(m, multiple=8):
    m_al = _round_up(m, multiple)
    tile = TILE_M if m_al >= TILE_M else m_al
    return tile, _round_up(m_al, tile)


def _cparams(semantics):
    return pltpu.CompilerParams(dimension_semantics=semantics,
                                vmem_limit_bytes=VMEM_LIMIT)


# -----------------------------------------------------------------------------
# im2col (NHWC, K ordered (kh, kw, cin) to match the reshaped PyTorch weight)
# -----------------------------------------------------------------------------
def _im2col_nhwc(x, kh, kw, stride, pad):
    N, H, W, C = x.shape
    xp = jnp.pad(x, ((0, 0), (pad, pad), (pad, pad), (0, 0)))
    Ho = (H + 2 * pad - kh) // stride + 1
    Wo = (W + 2 * pad - kw) // stride + 1
    taps = []
    for i in range(kh):
        for j in range(kw):
            taps.append(xp[:, i:i + stride * Ho:stride,
                           j:j + stride * Wo:stride, :])
    cols = jnp.stack(taps, axis=3)                  # (N, Ho, Wo, kh*kw, C)
    return cols.reshape(N * Ho * Wo, kh * kw * C), Ho, Wo


def _conv_weight_matrix(w, cin_eff, cout_p):
    """(cout, cin, kh, kw) -> (kh*kw*cin_eff, cout_p) bf16, (kh,kw,cin) K order."""
    cout, cin, kh, kw = w.shape
    wt = jnp.transpose(w, (2, 3, 1, 0))             # (kh, kw, cin, cout)
    wt = jnp.pad(wt, ((0, 0), (0, 0), (0, cin_eff - cin), (0, cout_p - cout)))
    return wt.reshape(kh * kw * cin_eff, cout_p).astype(jnp.bfloat16)


# -----------------------------------------------------------------------------
# Kernels
# -----------------------------------------------------------------------------
def _fused_conv_bn_lrelu_kernel(p_ref, w_ref, gam_ref, bet_ref, o_ref,
                                sum_sc, sq_sc, scale_sc, shift_sc, *, inv_m):
    """Two-phase fused Conv(4x4, no bias) + BatchNorm(train) + LeakyReLU(0.2).

    phase 0: accumulate per-channel sum / sumsq of the f32 conv output.
    phase 1: tile 0 folds stats -> scale/shift; every tile recomputes the
             matmul, applies BN+LeakyReLU and writes bf16 (narrow c_store)."""
    phase = pl.program_id(0)
    i = pl.program_id(1)
    acc = jnp.dot(p_ref[...], w_ref[...], preferred_element_type=jnp.float32)

    @pl.when(jnp.logical_and(phase == 0, i == 0))
    def _():
        sum_sc[...] = jnp.zeros_like(sum_sc)
        sq_sc[...] = jnp.zeros_like(sq_sc)

    @pl.when(phase == 0)
    def _():
        sum_sc[...] += jnp.sum(acc, axis=0, keepdims=True)
        sq_sc[...] += jnp.sum(acc * acc, axis=0, keepdims=True)

    @pl.when(jnp.logical_and(phase == 1, i == 0))
    def _():
        mean = sum_sc[...] * inv_m
        var = jnp.maximum(sq_sc[...] * inv_m - mean * mean, 0.0)
        scale = gam_ref[...] * jax.lax.rsqrt(var + EPS)
        scale_sc[...] = scale
        shift_sc[...] = bet_ref[...] - mean * scale

    @pl.when(phase == 1)
    def _():
        y = acc * scale_sc[...] + shift_sc[...]
        act = jnp.where(y > 0.0, y, SLOPE * y)
        o_ref[...] = act[:, :o_ref.shape[1]].astype(o_ref.dtype)


def _fused_conv_bn_lrelu_head_kernel(p_ref, w_ref, gam_ref, bet_ref, w4_ref,
                                     grp_ref, b4_ref, o_ref,
                                     sum_sc, sq_sc, scale_sc, shift_sc, *,
                                     inv_m):
    """Same as above, but phase 1 fuses the final 4x4 valid Conv + Sigmoid:
    each image occupies 16 consecutive rows of the tile; grp_ref is a bf16
    0/1 matrix summing each image's 16 tap-weighted rows."""
    phase = pl.program_id(0)
    i = pl.program_id(1)
    acc = jnp.dot(p_ref[...], w_ref[...], preferred_element_type=jnp.float32)

    @pl.when(jnp.logical_and(phase == 0, i == 0))
    def _():
        sum_sc[...] = jnp.zeros_like(sum_sc)
        sq_sc[...] = jnp.zeros_like(sq_sc)

    @pl.when(phase == 0)
    def _():
        sum_sc[...] += jnp.sum(acc, axis=0, keepdims=True)
        sq_sc[...] += jnp.sum(acc * acc, axis=0, keepdims=True)

    @pl.when(jnp.logical_and(phase == 1, i == 0))
    def _():
        mean = sum_sc[...] * inv_m
        var = jnp.maximum(sq_sc[...] * inv_m - mean * mean, 0.0)
        scale = gam_ref[...] * jax.lax.rsqrt(var + EPS)
        scale_sc[...] = scale
        shift_sc[...] = bet_ref[...] - mean * scale

    @pl.when(phase == 1)
    def _():
        y = acc * scale_sc[...] + shift_sc[...]
        act = jnp.where(y > 0.0, y, SLOPE * y)                 # (tile_m, Cp)
        weighted = (act * w4_ref[...]).astype(jnp.bfloat16)    # layer-4 taps
        grouped = jnp.dot(grp_ref[...], weighted,
                          preferred_element_type=jnp.float32)  # (G, Cp)
        logits = jnp.sum(grouped, axis=1, keepdims=True) + b4_ref[...]
        o_ref[...] = 1.0 / (1.0 + jnp.exp(-logits))            # exact sigmoid


def _conv_sigmoid_kernel(p_ref, w_ref, b_ref, o_ref):
    """Generic fallback: conv matmul + bias + sigmoid for one M-tile."""
    acc = jnp.dot(p_ref[...], w_ref[...], preferred_element_type=jnp.float32)
    acc = acc + b_ref[...]
    p = pl.reciprocal(1.0 + jnp.exp(-acc), approx=True)        # EUP recip
    o_ref[...] = jnp.clip(p, 0.0, 1.0)


# -----------------------------------------------------------------------------
# Layer wrappers
# -----------------------------------------------------------------------------
def conv_bn_lrelu(x_nhwc, w, gamma, beta, stride, pad):
    """Conv2d(4x4) + BatchNorm2d(train) + LeakyReLU(0.2).

    x_nhwc: (N, H, W, cin_eff) bf16, cin_eff >= w.shape[1] (extra channels 0).
    Returns (N, Ho, Wo, c_store) bf16 with c_store = round_up(cout, 8)."""
    N = x_nhwc.shape[0]
    cin_eff = x_nhwc.shape[3]
    cout, _, kh, kw = w.shape
    patches, Ho, Wo = _im2col_nhwc(x_nhwc, kh, kw, stride, pad)
    M, K = patches.shape
    k_pad = _round_up(K, LANE)
    cout_p = _round_up(cout, LANE)
    c_store = _round_up(cout, 8)
    tile_m, m_pad = _pick_tile(M)
    n_tiles = m_pad // tile_m

    if (m_pad != M) or (k_pad != K):
        patches = jnp.pad(patches, ((0, m_pad - M), (0, k_pad - K)))
    wmat = _conv_weight_matrix(w, cin_eff, cout_p)
    if wmat.shape[0] != k_pad:
        wmat = jnp.pad(wmat, ((0, k_pad - wmat.shape[0]), (0, 0)))
    gam = jnp.pad(gamma, (0, cout_p - cout)).reshape(1, cout_p).astype(jnp.float32)
    bet = jnp.pad(beta, (0, cout_p - cout)).reshape(1, cout_p).astype(jnp.float32)

    kernel = functools.partial(_fused_conv_bn_lrelu_kernel, inv_m=1.0 / float(M))
    act = pl.pallas_call(
        kernel,
        out_shape=jax.ShapeDtypeStruct((m_pad, c_store), jnp.bfloat16),
        grid_spec=pltpu.PrefetchScalarGridSpec(
            num_scalar_prefetch=0,
            grid=(2, n_tiles),
            in_specs=[
                pl.BlockSpec((tile_m, k_pad), lambda p, i: (i, 0)),
                pl.BlockSpec((k_pad, cout_p), lambda p, i: (0, 0)),
                pl.BlockSpec((1, cout_p), lambda p, i: (0, 0)),
                pl.BlockSpec((1, cout_p), lambda p, i: (0, 0)),
            ],
            # Block index constant (0) through phase 0 -> no HBM writeback of
            # unwritten blocks; phase 1 walks the real blocks.
            out_specs=pl.BlockSpec((tile_m, c_store), lambda p, i: (p * i, 0)),
            scratch_shapes=[pltpu.VMEM((1, cout_p), jnp.float32)] * 4),
        compiler_params=_cparams(("arbitrary", "arbitrary")),
    )(patches, wmat, gam, bet)

    if m_pad != M:
        act = act[:M]
    return act.reshape(N, Ho, Wo, c_store)


def conv_bn_lrelu_sigmoid_head(x_nhwc, w3, gamma3, beta3, w4, b4):
    """Layer 3 (Conv+BN+LeakyReLU) with layer 4 (4x4 valid Conv + Sigmoid)
    fused into phase 1.  Requires layer 3's spatial output to be 4x4."""
    N = x_nhwc.shape[0]
    cin_eff = x_nhwc.shape[3]
    cout = w3.shape[0]
    patches, Ho, Wo = _im2col_nhwc(x_nhwc, 4, 4, 2, 1)
    assert Ho == 4 and Wo == 4, (Ho, Wo)
    M, K = patches.shape                                     # M = 16 * N
    k_pad = _round_up(K, LANE)
    cout_p = _round_up(cout, LANE)
    tile_m, m_pad = _pick_tile(M, multiple=16)
    n_tiles = m_pad // tile_m
    imgs_per_tile = tile_m // 16
    n_img_pad = m_pad // 16

    if (m_pad != M) or (k_pad != K):
        patches = jnp.pad(patches, ((0, m_pad - M), (0, k_pad - K)))
    wmat = _conv_weight_matrix(w3, cin_eff, cout_p)
    if wmat.shape[0] != k_pad:
        wmat = jnp.pad(wmat, ((0, k_pad - wmat.shape[0]), (0, 0)))
    gam = jnp.pad(gamma3, (0, cout_p - cout)).reshape(1, cout_p).astype(jnp.float32)
    bet = jnp.pad(beta3, (0, cout_p - cout)).reshape(1, cout_p).astype(jnp.float32)

    cin4 = w4.shape[1]
    w4mat = jnp.transpose(w4[0], (1, 2, 0)).reshape(16, cin4)  # (kh*kw, cin4)
    w4mat = jnp.pad(w4mat, ((0, 0), (0, cout_p - cin4)))
    w4t = jnp.tile(w4mat, (imgs_per_tile, 1)).astype(jnp.bfloat16)
    grp = (jnp.arange(tile_m, dtype=jnp.int32)[None, :] // 16
           == jnp.arange(imgs_per_tile, dtype=jnp.int32)[:, None]
           ).astype(jnp.bfloat16)

    kernel = functools.partial(_fused_conv_bn_lrelu_head_kernel,
                               inv_m=1.0 / float(M))
    out = pl.pallas_call(
        kernel,
        out_shape=jax.ShapeDtypeStruct((n_img_pad, 1), jnp.float32),
        grid_spec=pltpu.PrefetchScalarGridSpec(
            num_scalar_prefetch=0,
            grid=(2, n_tiles),
            in_specs=[
                pl.BlockSpec((tile_m, k_pad), lambda p, i: (i, 0)),
                pl.BlockSpec((k_pad, cout_p), lambda p, i: (0, 0)),
                pl.BlockSpec((1, cout_p), lambda p, i: (0, 0)),
                pl.BlockSpec((1, cout_p), lambda p, i: (0, 0)),
                pl.BlockSpec((tile_m, cout_p), lambda p, i: (0, 0)),
                pl.BlockSpec((imgs_per_tile, tile_m), lambda p, i: (0, 0)),
                pl.BlockSpec((1, 1), lambda p, i: (0, 0)),
            ],
            out_specs=pl.BlockSpec((imgs_per_tile, 1), lambda p, i: (p * i, 0)),
            scratch_shapes=[pltpu.VMEM((1, cout_p), jnp.float32)] * 4),
        compiler_params=_cparams(("arbitrary", "arbitrary")),
    )(patches, wmat, gam, bet, w4t, grp, b4.reshape(1, 1).astype(jnp.float32))
    return out[:N].reshape(N, 1, 1, 1)


def conv_sigmoid(x_nhwc, w, b, stride, pad):
    """Generic (non-fused) final Conv2d + Sigmoid fallback, NHWC in/out."""
    N = x_nhwc.shape[0]
    cin_eff = x_nhwc.shape[3]
    cout, cin, kh, kw = w.shape
    patches, Ho, Wo = _im2col_nhwc(x_nhwc, kh, kw, stride, pad)
    M, K = patches.shape
    k_pad = _round_up(K, LANE)
    tile_m, m_pad = _pick_tile(M)
    n_tiles = m_pad // tile_m
    if (m_pad != M) or (k_pad != K):
        patches = jnp.pad(patches, ((0, m_pad - M), (0, k_pad - K)))
    wt = jnp.transpose(w, (2, 3, 1, 0))
    wt = jnp.pad(wt, ((0, 0), (0, 0), (0, cin_eff - cin), (0, 0)))
    wmat = wt.reshape(kh * kw * cin_eff, cout).astype(jnp.bfloat16)
    if wmat.shape[0] != k_pad:
        wmat = jnp.pad(wmat, ((0, k_pad - wmat.shape[0]), (0, 0)))
    out = pl.pallas_call(
        _conv_sigmoid_kernel,
        out_shape=jax.ShapeDtypeStruct((m_pad, cout), jnp.float32),
        grid_spec=pltpu.PrefetchScalarGridSpec(
            num_scalar_prefetch=0,
            grid=(n_tiles,),
            in_specs=[
                pl.BlockSpec((tile_m, k_pad), lambda i: (i, 0)),
                pl.BlockSpec((k_pad, cout), lambda i: (0, 0)),
                pl.BlockSpec((1, cout), lambda i: (0, 0)),
            ],
            out_specs=pl.BlockSpec((tile_m, cout), lambda i: (i, 0))),
        compiler_params=_cparams(("parallel",)),
    )(patches, wmat, b.reshape(1, cout).astype(jnp.float32))
    return out[:M].reshape(N, Ho, Wo, cout)


# -----------------------------------------------------------------------------
# Parameters / forward
# -----------------------------------------------------------------------------
def init_params(key, nc, ndf):
    ks = jax.random.split(key, 14)

    def conv_w(k, cout, cin):
        return 0.05 * jax.random.normal(k, (cout, cin, 4, 4), jnp.float32)

    def vec(k, c):
        return 0.05 * jax.random.normal(k, (c,), jnp.float32)

    # NOTE: b1..b3 are kept for PyTorch state-dict parity but are unused in
    # the forward: training-mode BatchNorm subtracts the batch mean, which
    # cancels the conv bias exactly.
    return {
        "w1": conv_w(ks[0], ndf, nc),          "b1": vec(ks[1], ndf),
        "g1": 1.0 + vec(ks[2], ndf),           "bb1": vec(ks[3], ndf),
        "w2": conv_w(ks[4], ndf * 2, ndf),     "b2": vec(ks[5], ndf * 2),
        "g2": 1.0 + vec(ks[6], ndf * 2),       "bb2": vec(ks[7], ndf * 2),
        "w3": conv_w(ks[8], ndf * 4, ndf * 2), "b3": vec(ks[9], ndf * 4),
        "g3": 1.0 + vec(ks[10], ndf * 4),      "bb3": vec(ks[11], ndf * 4),
        "w4": conv_w(ks[12], 1, ndf * 4),      "b4": vec(ks[13], 1),
    }


@jax.jit
def discriminator_forward(params, x):
    """x: (N, nc, H, W) NCHW float32 -> (N, 1, Ho, Wo) NCHW float32."""
    N, nc, H, W = x.shape
    h = jnp.transpose(x, (0, 2, 3, 1)).astype(jnp.bfloat16)   # NCHW->NHWC once
    cin_pad = _round_up(nc, 8)
    if cin_pad != nc:
        h = jnp.pad(h, ((0, 0), (0, 0), (0, 0), (0, cin_pad - nc)))
    h = conv_bn_lrelu(h, params["w1"], params["g1"], params["bb1"], 2, 1)
    h = conv_bn_lrelu(h, params["w2"], params["g2"], params["bb2"], 2, 1)
    ho3 = (h.shape[1] + 2 - 4) // 2 + 1
    wo3 = (h.shape[2] + 2 - 4) // 2 + 1
    if ho3 == 4 and wo3 == 4:
        # DCGAN design point (32x32 input): fuse layer 4 into layer 3's epilogue.
        return conv_bn_lrelu_sigmoid_head(
            h, params["w3"], params["g3"], params["bb3"],
            params["w4"], params["b4"])
    # Generic fallback for other spatial sizes.
    h = conv_bn_lrelu(h, params["w3"], params["g3"], params["bb3"], 2, 1)
    out = conv_sigmoid(h, params["w4"], params["b4"], 1, 0)
    return jnp.transpose(out, (0, 3, 1, 2))


if __name__ == "__main__":
    key = jax.random.PRNGKey(0)
    kx, kp = jax.random.split(key)
    N, NC, NDF, H = 2, 3, 8, 32   # spatial 32 -> 16 -> 8 -> 4 -> 1
    x = jax.random.normal(kx, (N, NC, H, H), jnp.float32)
    params = init_params(kp, NC, NDF)
    y = discriminator_forward(params, x)
    jax.block_until_ready(y)
    assert y.shape == (N, 1, 1, 1), y.shape
    assert bool(jnp.all(jnp.isfinite(y)))
    assert bool(jnp.all((y >= 0.0) & (y <= 1.0)))
    print("KERNEL_OK")
</pallas_src>

<mosaic_0001>
module attributes {stable_mosaic.version = 11 : i64} {
  func.func @_fused_conv_bn_lrelu_kernel(%arg0: i32, %arg1: i32, %arg2: memref<512x128xbf16, #tpu.memory_space<vmem>>, %arg3: memref<128x128xbf16, #tpu.memory_space<vmem>>, %arg4: memref<1x128xf32, #tpu.memory_space<vmem>>, %arg5: memref<1x128xf32, #tpu.memory_space<vmem>>, %arg6: memref<512x8xbf16, #tpu.memory_space<vmem>>, %arg7: memref<1x128xf32, #tpu.memory_space<vmem>>, %arg8: memref<1x128xf32, #tpu.memory_space<vmem>>, %arg9: memref<1x128xf32, #tpu.memory_space<vmem>>, %arg10: memref<1x128xf32, #tpu.memory_space<vmem>>) attributes {dimension_semantics = [#tpu.dimension_semantics<arbitrary>, #tpu.dimension_semantics<arbitrary>], iteration_bounds = array<i64: 2, 1>, scalar_prefetch = 0 : i64, scratch_operands = 4 : i64, tpu.core_type = #tpu.core_type<tc>, window_params = [{transform_indices = @transform_0, window_bounds = array<i64: 512, 128>}, {pipeline_mode = #tpu.pipeline_mode<synchronous>, transform_indices = @transform_1, window_bounds = array<i64: 128, 128>}, {pipeline_mode = #tpu.pipeline_mode<synchronous>, transform_indices = @transform_2, window_bounds = array<i64: 1, 128>}, {pipeline_mode = #tpu.pipeline_mode<synchronous>, transform_indices = @transform_3, window_bounds = array<i64: 1, 128>}, {transform_indices = @transform_4, window_bounds = array<i64: 512, 8>}]} {
    %c0 = arith.constant 0 : index
    %c0_0 = arith.constant 0 : index
    %0 = vector.load %arg2[%c0, %c0_0] : memref<512x128xbf16, #tpu.memory_space<vmem>>, vector<512x128xbf16>
    %c0_1 = arith.constant 0 : index
    %c0_2 = arith.constant 0 : index
    %1 = vector.load %arg3[%c0_1, %c0_2] : memref<128x128xbf16, #tpu.memory_space<vmem>>, vector<128x128xbf16>
    %cst = arith.constant dense<0.000000e+00> : vector<512x128xf32>
    %2 = tpu.matmul %0, %1, %cst {dimension_numbers = #tpu.dot_dimension_numbers<[1], [0], [0], [1], [0, 0, 1, 1], [], []>} : vector<512x128xbf16>, vector<128x128xbf16>, vector<512x128xf32> -> vector<512x128xf32>
    %c0_i32 = arith.constant 0 : i32
    %3 = arith.cmpi eq, %arg0, %c0_i32 : i32
    %c0_i32_3 = arith.constant 0 : i32
    %4 = arith.cmpi eq, %arg1, %c0_i32_3 : i32
    %5 = arith.andi %3, %4 : i1
    %6 = arith.extui %5 : i1 to i32
    %c0_i32_4 = arith.constant 0 : i32
    %7 = arith.cmpi ne, %6, %c0_i32_4 : i32
    scf.if %7 {
      %cst_11 = arith.constant 0.000000e+00 : f32
      %19 = vector.broadcast %cst_11 : f32 to vector<1x128xf32>
      %c0_12 = arith.constant 0 : index
      %c0_13 = arith.constant 0 : index
      %20 = vector.load %arg7[%c0_12, %c0_13] : memref<1x128xf32, #tpu.memory_space<vmem>>, vector<1x128xf32>
      tpu.vector_store %arg7[%c0_12, %c0_13], %19 {strides = array<i32>} : memref<1x128xf32, #tpu.memory_space<vmem>>, vector<1x128xf32>,
      %cst_14 = arith.constant 0.000000e+00 : f32
      %21 = vector.broadcast %cst_14 : f32 to vector<1x128xf32>
      %c0_15 = arith.constant 0 : index
      %c0_16 = arith.constant 0 : index
      %22 = vector.load %arg8[%c0_15, %c0_16] : memref<1x128xf32, #tpu.memory_space<vmem>>, vector<1x128xf32>
      tpu.vector_store %arg8[%c0_15, %c0_16], %21 {strides = array<i32>} : memref<1x128xf32, #tpu.memory_space<vmem>>, vector<1x128xf32>,
    } else {
    }
    %c0_i32_5 = arith.constant 0 : i32
    %8 = arith.cmpi eq, %arg0, %c0_i32_5 : i32
    %9 = arith.extui %8 : i1 to i32
    %c0_i32_6 = arith.constant 0 : i32
    %10 = arith.cmpi ne, %9, %c0_i32_6 : i32
    scf.if %10 {
      %c0_11 = arith.constant 0 : index
      %c0_12 = arith.constant 0 : index
      %19 = vector.load %arg7[%c0_11, %c0_12] : memref<1x128xf32, #tpu.memory_space<vmem>>, vector<1x128xf32>
      %cst_13 = arith.constant dense<0.000000e+00> : vector<128xf32>
      %20 = vector.multi_reduction <add>, %2, %cst_13 [0] : vector<512x128xf32> to vector<128xf32>
      %21 = vector.shape_cast %20 : vector<128xf32> to vector<1x128xf32>
      %22 = arith.addf %19, %21 : vector<1x128xf32>
      %c0_14 = arith.constant 0 : index
      %c0_15 = arith.constant 0 : index
      %23 = vector.load %arg7[%c0_14, %c0_15] : memref<1x128xf32, #tpu.memory_space<vmem>>, vector<1x128xf32>
      tpu.vector_store %arg7[%c0_14, %c0_15], %22 {strides = array<i32>} : memref<1x128xf32, #tpu.memory_space<vmem>>, vector<1x128xf32>,
      %c0_16 = arith.constant 0 : index
      %c0_17 = arith.constant 0 : index
      %24 = vector.load %arg8[%c0_16, %c0_17] : memref<1x128xf32, #tpu.memory_space<vmem>>, vector<1x128xf32>
      %25 = arith.mulf %2, %2 : vector<512x128xf32>
      %cst_18 = arith.constant dense<0.000000e+00> : vector<128xf32>
      %26 = vector.multi_reduction <add>, %25, %cst_18 [0] : vector<512x128xf32> to vector<128xf32>
      %27 = vector.shape_cast %26 : vector<128xf32> to vector<1x128xf32>
      %28 = arith.addf %24, %27 : vector<1x128xf32>
      %c0_19 = arith.constant 0 : index
      %c0_20 = arith.constant 0 : index
      %29 = vector.load %arg8[%c0_19, %c0_20] : memref<1x128xf32, #tpu.memory_space<vmem>>, vector<1x128xf32>
      tpu.vector_store %arg8[%c0_19, %c0_20], %28 {strides = array<i32>} : memref<1x128xf32, #tpu.memory_space<vmem>>, vector<1x128xf32>,
    } else {
    }
    %c1_i32 = arith.constant 1 : i32
    %11 = arith.cmpi eq, %arg0, %c1_i32 : i32
    %c0_i32_7 = arith.constant 0 : i32
    %12 = arith.cmpi eq, %arg1, %c0_i32_7 : i32
    %13 = arith.andi %11, %12 : i1
    %14 = arith.extui %13 : i1 to i32
    %c0_i32_8 = arith.constant 0 : i32
    %15 = arith.cmpi ne, %14, %c0_i32_8 : i32
    scf.if %15 {
      %c0_11 = arith.constant 0 : index
      %c0_12 = arith.constant 0 : index
      %19 = vector.load %arg7[%c0_11, %c0_12] : memref<1x128xf32, #tpu.memory_space<vmem>>, vector<1x128xf32>
      %cst_13 = arith.constant 0.001953125 : f32
      %20 = vector.broadcast %cst_13 : f32 to vector<1x128xf32>
      %21 = arith.mulf %19, %20 : vector<1x128xf32>
      %c0_14 = arith.constant 0 : index
      %c0_15 = arith.constant 0 : index
      %22 = vector.load %arg8[%c0_14, %c0_15] : memref<1x128xf32, #tpu.memory_space<vmem>>, vector<1x128xf32>
      %cst_16 = arith.constant 0.001953125 : f32
      %23 = vector.broadcast %cst_16 : f32 to vector<1x128xf32>
      %24 = arith.mulf %22, %23 : vector<1x128xf32>
      %25 = arith.mulf %21, %21 : vector<1x128xf32>
      %26 = arith.subf %24, %25 : vector<1x128xf32>
      %cst_17 = arith.constant 0.000000e+00 : f32
      %27 = vector.broadcast %cst_17 : f32 to vector<1x128xf32>
      %28 = arith.maximumf %26, %27 : vector<1x128xf32>
      %c0_18 = arith.constant 0 : index
      %c0_19 = arith.constant 0 : index
      %29 = vector.load %arg4[%c0_18, %c0_19] : memref<1x128xf32, #tpu.memory_space<vmem>>, vector<1x128xf32>
      %cst_20 = arith.constant 9.99999974E-6 : f32
      %30 = vector.broadcast %cst_20 : f32 to vector<1x128xf32>
      %31 = arith.addf %28, %30 : vector<1x128xf32>
      %32 = math.rsqrt %31 : vector<1x128xf32>
      %33 = arith.mulf %29, %32 : vector<1x128xf32>
      %c0_21 = arith.constant 0 : index
      %c0_22 = arith.constant 0 : index
      %34 = vector.load %arg9[%c0_21, %c0_22] : memref<1x128xf32, #tpu.memory_space<vmem>>, vector<1x128xf32>
      tpu.vector_store %arg9[%c0_21, %c0_22], %33 {strides = array<i32>} : memref<1x128xf32, #tpu.memory_space<vmem>>, vector<1x128xf32>,
      %c0_23 = arith.constant 0 : index
      %c0_24 = arith.constant 0 : index
      %35 = vector.load %arg5[%c0_23, %c0_24] : memref<1x128xf32, #tpu.memory_space<vmem>>, vector<1x128xf32>
      %36 = arith.mulf %21, %33 : vector<1x128xf32>
      %37 = arith.subf %35, %36 : vector<1x128xf32>
      %c0_25 = arith.constant 0 : index
      %c0_26 = arith.constant 0 : index
      %38 = vector.load %arg10[%c0_25, %c0_26] : memref<1x128xf32, #tpu.memory_space<vmem>>, vector<1x128xf32>
      tpu.vector_store %arg10[%c0_25, %c0_26], %37 {strides = array<i32>} : memref<1x128xf32, #tpu.memory_space<vmem>>, vector<1x128xf32>,
    } else {
    }
    %c1_i32_9 = arith.constant 1 : i32
    %16 = arith.cmpi eq, %arg0, %c1_i32_9 : i32
    %17 = arith.extui %16 : i1 to i32
    %c0_i32_10 = arith.constant 0 : i32
    %18 = arith.cmpi ne, %17, %c0_i32_10 : i32
    scf.if %18 {
      %c0_11 = arith.constant 0 : index
      %c0_12 = arith.constant 0 : index
      %19 = vector.load %arg9[%c0_11, %c0_12] : memref<1x128xf32, #tpu.memory_space<vmem>>, vector<1x128xf32>
      %20 = vector.broadcast %19 : vector<1x128xf32> to vector<512x128xf32>
      %21 = arith.mulf %2, %20 : vector<512x128xf32>
      %c0_13 = arith.constant 0 : index
      %c0_14 = arith.constant 0 : index
      %22 = vector.load %arg10[%c0_13, %c0_14] : memref<1x128xf32, #tpu.memory_space<vmem>>, vector<1x128xf32>
      %23 = vector.broadcast %22 : vector<1x128xf32> to vector<512x128xf32>
      %24 = arith.addf %21, %23 : vector<512x128xf32>
      %cst_15 = arith.constant 0.000000e+00 : f32
      %25 = vector.broadcast %cst_15 : f32 to vector<512x128xf32>
      %26 = arith.cmpf ogt, %24, %25 : vector<512x128xf32>
      %cst_16 = arith.constant 2.000000e-01 : f32
      %27 = vector.broadcast %cst_16 : f32 to vector<512x128xf32>
      %28 = arith.mulf %27, %24 : vector<512x128xf32>
      %29 = arith.select %26, %24, %28 : vector<512x128xi1>, vector<512x128xf32>
      %30 = vector.extract_strided_slice %29 {offsets = [0, 0], sizes = [512, 8], strides = [1, 1]} : vector<512x128xf32> to vector<512x8xf32>
      %31 = arith.truncf %30 : vector<512x8xf32> to vector<512x8xbf16>
      %c0_17 = arith.constant 0 : index
      %c0_18 = arith.constant 0 : index
      %32 = vector.load %arg6[%c0_17, %c0_18] : memref<512x8xbf16, #tpu.memory_space<vmem>>, vector<512x8xbf16>
      tpu.vector_store %arg6[%c0_17, %c0_18], %31 {strides = array<i32>} : memref<512x8xbf16, #tpu.memory_space<vmem>>, vector<512x8xbf16>,
    } else {
    }
    return
  }
  func.func @transform_0(%arg0: i32, %arg1: i32) -> (i32, i32) {
    %c0_i32 = arith.constant 0 : i32
    %c0_i32_0 = arith.constant 0 : i32
    return %arg1, %c0_i32 : i32, i32
  }
  func.func @transform_1(%arg0: i32, %arg1: i32) -> (i32, i32) {
    %c0_i32 = arith.constant 0 : i32
    %c0_i32_0 = arith.constant 0 : i32
    %c0_i32_1 = arith.constant 0 : i32
    return %c0_i32, %c0_i32_0 : i32, i32
  }
  func.func @transform_2(%arg0: i32, %arg1: i32) -> (i32, i32) {
    %c0_i32 = arith.constant 0 : i32
    %c0_i32_0 = arith.constant 0 : i32
    %c0_i32_1 = arith.constant 0 : i32
    return %c0_i32, %c0_i32_0 : i32, i32
  }
  func.func @transform_3(%arg0: i32, %arg1: i32) -> (i32, i32) {
    %c0_i32 = arith.constant 0 : i32
    %c0_i32_0 = arith.constant 0 : i32
    %c0_i32_1 = arith.constant 0 : i32
    return %c0_i32, %c0_i32_0 : i32, i32
  }
  func.func @transform_4(%arg0: i32, %arg1: i32) -> (i32, i32) {
    %0 = arith.muli %arg0, %arg1 : i32
    %c0_i32 = arith.constant 0 : i32
    %c0_i32_0 = arith.constant 0 : i32
    return %0, %c0_i32 : i32, i32
  }
}

module attributes {stable_mosaic.version = 11 : i64} {
  func.func @_fused_conv_bn_lrelu_kernel(%arg0: i32, %arg1: i32, %arg2: memref<128x128xbf16, #tpu.memory_space<vmem>>, %arg3: memref<128x128xbf16, #tpu.memory_space<vmem>>, %arg4: memref<1x128xf32, #tpu.memory_space<vmem>>, %arg5: memref<1x128xf32, #tpu.memory_space<vmem>>, %arg6: memref<128x16xbf16, #tpu.memory_space<vmem>>, %arg7: memref<1x128xf32, #tpu.memory_space<vmem>>, %arg8: memref<1x128xf32, #tpu.memory_space<vmem>>, %arg9: memref<1x128xf32, #tpu.memory_space<vmem>>, %arg10: memref<1x128xf32, #tpu.memory_space<vmem>>) attributes {dimension_semantics = [#tpu.dimension_semantics<arbitrary>, #tpu.dimension_semantics<arbitrary>], iteration_bounds = array<i64: 2, 1>, scalar_prefetch = 0 : i64, scratch_operands = 4 : i64, tpu.core_type = #tpu.core_type<tc>, window_params = [{transform_indices = @transform_0, window_bounds = array<i64: 128, 128>}, {pipeline_mode = #tpu.pipeline_mode<synchronous>, transform_indices = @transform_1, window_bounds = array<i64: 128, 128>}, {pipeline_mode = #tpu.pipeline_mode<synchronous>, transform_indices = @transform_2, window_bounds = array<i64: 1, 128>}, {pipeline_mode = #tpu.pipeline_mode<synchronous>, transform_indices = @transform_3, window_bounds = array<i64: 1, 128>}, {transform_indices = @transform_4, window_bounds = array<i64: 128, 16>}]} {
    %c0 = arith.constant 0 : index
    %c0_0 = arith.constant 0 : index
    %0 = vector.load %arg2[%c0, %c0_0] : memref<128x128xbf16, #tpu.memory_space<vmem>>, vector<128x128xbf16>
    %c0_1 = arith.constant 0 : index
    %c0_2 = arith.constant 0 : index
    %1 = vector.load %arg3[%c0_1, %c0_2] : memref<128x128xbf16, #tpu.memory_space<vmem>>, vector<128x128xbf16>
    %cst = arith.constant dense<0.000000e+00> : vector<128x128xf32>
    %2 = tpu.matmul %0, %1, %cst {dimension_numbers = #tpu.dot_dimension_numbers<[1], [0], [0], [1], [0, 0, 1, 1], [], []>} : vector<128x128xbf16>, vector<128x128xbf16>, vector<128x128xf32> -> vector<128x128xf32>
    %c0_i32 = arith.constant 0 : i32
    %3 = arith.cmpi eq, %arg0, %c0_i32 : i32
    %c0_i32_3 = arith.constant 0 : i32
    %4 = arith.cmpi eq, %arg1, %c0_i32_3 : i32
    %5 = arith.andi %3, %4 : i1
    %6 = arith.extui %5 : i1 to i32
    %c0_i32_4 = arith.constant 0 : i32
    %7 = arith.cmpi ne, %6, %c0_i32_4 : i32
    scf.if %7 {
      %cst_11 = arith.constant 0.000000e+00 : f32
      %19 = vector.broadcast %cst_11 : f32 to vector<1x128xf32>
      %c0_12 = arith.constant 0 : index
      %c0_13 = arith.constant 0 : index
      %20 = vector.load %arg7[%c0_12, %c0_13] : memref<1x128xf32, #tpu.memory_space<vmem>>, vector<1x128xf32>
      tpu.vector_store %arg7[%c0_12, %c0_13], %19 {strides = array<i32>} : memref<1x128xf32, #tpu.memory_space<vmem>>, vector<1x128xf32>,
      %cst_14 = arith.constant 0.000000e+00 : f32
      %21 = vector.broadcast %cst_14 : f32 to vector<1x128xf32>
      %c0_15 = arith.constant 0 : index
      %c0_16 = arith.constant 0 : index
      %22 = vector.load %arg8[%c0_15, %c0_16] : memref<1x128xf32, #tpu.memory_space<vmem>>, vector<1x128xf32>
      tpu.vector_store %arg8[%c0_15, %c0_16], %21 {strides = array<i32>} : memref<1x128xf32, #tpu.memory_space<vmem>>, vector<1x128xf32>,
    } else {
    }
    %c0_i32_5 = arith.constant 0 : i32
    %8 = arith.cmpi eq, %arg0, %c0_i32_5 : i32
    %9 = arith.extui %8 : i1 to i32
    %c0_i32_6 = arith.constant 0 : i32
    %10 = arith.cmpi ne, %9, %c0_i32_6 : i32
    scf.if %10 {
      %c0_11 = arith.constant 0 : index
      %c0_12 = arith.constant 0 : index
      %19 = vector.load %arg7[%c0_11, %c0_12] : memref<1x128xf32, #tpu.memory_space<vmem>>, vector<1x128xf32>
      %cst_13 = arith.constant dense<0.000000e+00> : vector<128xf32>
      %20 = vector.multi_reduction <add>, %2, %cst_13 [0] : vector<128x128xf32> to vector<128xf32>
      %21 = vector.shape_cast %20 : vector<128xf32> to vector<1x128xf32>
      %22 = arith.addf %19, %21 : vector<1x128xf32>
      %c0_14 = arith.constant 0 : index
      %c0_15 = arith.constant 0 : index
      %23 = vector.load %arg7[%c0_14, %c0_15] : memref<1x128xf32, #tpu.memory_space<vmem>>, vector<1x128xf32>
      tpu.vector_store %arg7[%c0_14, %c0_15], %22 {strides = array<i32>} : memref<1x128xf32, #tpu.memory_space<vmem>>, vector<1x128xf32>,
      %c0_16 = arith.constant 0 : index
      %c0_17 = arith.constant 0 : index
      %24 = vector.load %arg8[%c0_16, %c0_17] : memref<1x128xf32, #tpu.memory_space<vmem>>, vector<1x128xf32>
      %25 = arith.mulf %2, %2 : vector<128x128xf32>
      %cst_18 = arith.constant dense<0.000000e+00> : vector<128xf32>
      %26 = vector.multi_reduction <add>, %25, %cst_18 [0] : vector<128x128xf32> to vector<128xf32>
      %27 = vector.shape_cast %26 : vector<128xf32> to vector<1x128xf32>
      %28 = arith.addf %24, %27 : vector<1x128xf32>
      %c0_19 = arith.constant 0 : index
      %c0_20 = arith.constant 0 : index
      %29 = vector.load %arg8[%c0_19, %c0_20] : memref<1x128xf32, #tpu.memory_space<vmem>>, vector<1x128xf32>
      tpu.vector_store %arg8[%c0_19, %c0_20], %28 {strides = array<i32>} : memref<1x128xf32, #tpu.memory_space<vmem>>, vector<1x128xf32>,
    } else {
    }
    %c1_i32 = arith.constant 1 : i32
    %11 = arith.cmpi eq, %arg0, %c1_i32 : i32
    %c0_i32_7 = arith.constant 0 : i32
    %12 = arith.cmpi eq, %arg1, %c0_i32_7 : i32
    %13 = arith.andi %11, %12 : i1
    %14 = arith.extui %13 : i1 to i32
    %c0_i32_8 = arith.constant 0 : i32
    %15 = arith.cmpi ne, %14, %c0_i32_8 : i32
    scf.if %15 {
      %c0_11 = arith.constant 0 : index
      %c0_12 = arith.constant 0 : index
      %19 = vector.load %arg7[%c0_11, %c0_12] : memref<1x128xf32, #tpu.memory_space<vmem>>, vector<1x128xf32>
      %cst_13 = arith.constant 7.812500e-03 : f32
      %20 = vector.broadcast %cst_13 : f32 to vector<1x128xf32>
      %21 = arith.mulf %19, %20 : vector<1x128xf32>
      %c0_14 = arith.constant 0 : index
      %c0_15 = arith.constant 0 : index
      %22 = vector.load %arg8[%c0_14, %c0_15] : memref<1x128xf32, #tpu.memory_space<vmem>>, vector<1x128xf32>
      %cst_16 = arith.constant 7.812500e-03 : f32
      %23 = vector.broadcast %cst_16 : f32 to vector<1x128xf32>
      %24 = arith.mulf %22, %23 : vector<1x128xf32>
      %25 = arith.mulf %21, %21 : vector<1x128xf32>
      %26 = arith.subf %24, %25 : vector<1x128xf32>
      %cst_17 = arith.constant 0.000000e+00 : f32
      %27 = vector.broadcast %cst_17 : f32 to vector<1x128xf32>
      %28 = arith.maximumf %26, %27 : vector<1x128xf32>
      %c0_18 = arith.constant 0 : index
      %c0_19 = arith.constant 0 : index
      %29 = vector.load %arg4[%c0_18, %c0_19] : memref<1x128xf32, #tpu.memory_space<vmem>>, vector<1x128xf32>
      %cst_20 = arith.constant 9.99999974E-6 : f32
      %30 = vector.broadcast %cst_20 : f32 to vector<1x128xf32>
      %31 = arith.addf %28, %30 : vector<1x128xf32>
      %32 = math.rsqrt %31 : vector<1x128xf32>
      %33 = arith.mulf %29, %32 : vector<1x128xf32>
      %c0_21 = arith.constant 0 : index
      %c0_22 = arith.constant 0 : index
      %34 = vector.load %arg9[%c0_21, %c0_22] : memref<1x128xf32, #tpu.memory_space<vmem>>, vector<1x128xf32>
      tpu.vector_store %arg9[%c0_21, %c0_22], %33 {strides = array<i32>} : memref<1x128xf32, #tpu.memory_space<vmem>>, vector<1x128xf32>,
      %c0_23 = arith.constant 0 : index
      %c0_24 = arith.constant 0 : index
      %35 = vector.load %arg5[%c0_23, %c0_24] : memref<1x128xf32, #tpu.memory_space<vmem>>, vector<1x128xf32>
      %36 = arith.mulf %21, %33 : vector<1x128xf32>
      %37 = arith.subf %35, %36 : vector<1x128xf32>
      %c0_25 = arith.constant 0 : index
      %c0_26 = arith.constant 0 : index
      %38 = vector.load %arg10[%c0_25, %c0_26] : memref<1x128xf32, #tpu.memory_space<vmem>>, vector<1x128xf32>
      tpu.vector_store %arg10[%c0_25, %c0_26], %37 {strides = array<i32>} : memref<1x128xf32, #tpu.memory_space<vmem>>, vector<1x128xf32>,
    } else {
    }
    %c1_i32_9 = arith.constant 1 : i32
    %16 = arith.cmpi eq, %arg0, %c1_i32_9 : i32
    %17 = arith.extui %16 : i1 to i32
    %c0_i32_10 = arith.constant 0 : i32
    %18 = arith.cmpi ne, %17, %c0_i32_10 : i32
    scf.if %18 {
      %c0_11 = arith.constant 0 : index
      %c0_12 = arith.constant 0 : index
      %19 = vector.load %arg9[%c0_11, %c0_12] : memref<1x128xf32, #tpu.memory_space<vmem>>, vector<1x128xf32>
      %20 = vector.broadcast %19 : vector<1x128xf32> to vector<128x128xf32>
      %21 = arith.mulf %2, %20 : vector<128x128xf32>
      %c0_13 = arith.constant 0 : index
      %c0_14 = arith.constant 0 : index
      %22 = vector.load %arg10[%c0_13, %c0_14] : memref<1x128xf32, #tpu.memory_space<vmem>>, vector<1x128xf32>
      %23 = vector.broadcast %22 : vector<1x128xf32> to vector<128x128xf32>
      %24 = arith.addf %21, %23 : vector<128x128xf32>
      %cst_15 = arith.constant 0.000000e+00 : f32
      %25 = vector.broadcast %cst_15 : f32 to vector<128x128xf32>
      %26 = arith.cmpf ogt, %24, %25 : vector<128x128xf32>
      %cst_16 = arith.constant 2.000000e-01 : f32
      %27 = vector.broadcast %cst_16 : f32 to vector<128x128xf32>
      %28 = arith.mulf %27, %24 : vector<128x128xf32>
      %29 = arith.select %26, %24, %28 : vector<128x128xi1>, vector<128x128xf32>
      %30 = vector.extract_strided_slice %29 {offsets = [0, 0], sizes = [128, 16], strides = [1, 1]} : vector<128x128xf32> to vector<128x16xf32>
      %31 = arith.truncf %30 : vector<128x16xf32> to vector<128x16xbf16>
      %c0_17 = arith.constant 0 : index
      %c0_18 = arith.constant 0 : index
      %32 = vector.load %arg6[%c0_17, %c0_18] : memref<128x16xbf16, #tpu.memory_space<vmem>>, vector<128x16xbf16>
      tpu.vector_store %arg6[%c0_17, %c0_18], %31 {strides = array<i32>} : memref<128x16xbf16, #tpu.memory_space<vmem>>, vector<128x16xbf16>,
    } else {
    }
    return
  }
  func.func @transform_0(%arg0: i32, %arg1: i32) -> (i32, i32) {
    %c0_i32 = arith.constant 0 : i32
    %c0_i32_0 = arith.constant 0 : i32
    return %arg1, %c0_i32 : i32, i32
  }
  func.func @transform_1(%arg0: i32, %arg1: i32) -> (i32, i32) {
    %c0_i32 = arith.constant 0 : i32
    %c0_i32_0 = arith.constant 0 : i32
    %c0_i32_1 = arith.constant 0 : i32
    return %c0_i32, %c0_i32_0 : i32, i32
  }
  func.func @transform_2(%arg0: i32, %arg1: i32) -> (i32, i32) {
    %c0_i32 = arith.constant 0 : i32
    %c0_i32_0 = arith.constant 0 : i32
    %c0_i32_1 = arith.constant 0 : i32
    return %c0_i32, %c0_i32_0 : i32, i32
  }
  func.func @transform_3(%arg0: i32, %arg1: i32) -> (i32, i32) {
    %c0_i32 = arith.constant 0 : i32
    %c0_i32_0 = arith.constant 0 : i32
    %c0_i32_1 = arith.constant 0 : i32
    return %c0_i32, %c0_i32_0 : i32, i32
  }
  func.func @transform_4(%arg0: i32, %arg1: i32) -> (i32, i32) {
    %0 = arith.muli %arg0, %arg1 : i32
    %c0_i32 = arith.constant 0 : i32
    %c0_i32_0 = arith.constant 0 : i32
    return %0, %c0_i32 : i32, i32
  }
}

module attributes {stable_mosaic.version = 11 : i64} {
  func.func @_fused_conv_bn_lrelu_head_kernel(%arg0: i32, %arg1: i32, %arg2: memref<32x256xbf16, #tpu.memory_space<vmem>>, %arg3: memref<256x128xbf16, #tpu.memory_space<vmem>>, %arg4: memref<1x128xf32, #tpu.memory_space<vmem>>, %arg5: memref<1x128xf32, #tpu.memory_space<vmem>>, %arg6: memref<32x128xbf16, #tpu.memory_space<vmem>>, %arg7: memref<2x32xbf16, #tpu.memory_space<vmem>>, %arg8: memref<1x1xf32, #tpu.memory_space<vmem>>, %arg9: memref<2x1xf32, #tpu.memory_space<vmem>>, %arg10: memref<1x128xf32, #tpu.memory_space<vmem>>, %arg11: memref<1x128xf32, #tpu.memory_space<vmem>>, %arg12: memref<1x128xf32, #tpu.memory_space<vmem>>, %arg13: memref<1x128xf32, #tpu.memory_space<vmem>>) attributes {dimension_semantics = [#tpu.dimension_semantics<arbitrary>, #tpu.dimension_semantics<arbitrary>], iteration_bounds = array<i64: 2, 1>, scalar_prefetch = 0 : i64, scratch_operands = 4 : i64, tpu.core_type = #tpu.core_type<tc>, window_params = [{transform_indices = @transform_0, window_bounds = array<i64: 32, 256>}, {pipeline_mode = #tpu.pipeline_mode<synchronous>, transform_indices = @transform_1, window_bounds = array<i64: 256, 128>}, {pipeline_mode = #tpu.pipeline_mode<synchronous>, transform_indices = @transform_2, window_bounds = array<i64: 1, 128>}, {pipeline_mode = #tpu.pipeline_mode<synchronous>, transform_indices = @transform_3, window_bounds = array<i64: 1, 128>}, {pipeline_mode = #tpu.pipeline_mode<synchronous>, transform_indices = @transform_4, window_bounds = array<i64: 32, 128>}, {pipeline_mode = #tpu.pipeline_mode<synchronous>, transform_indices = @transform_5, window_bounds = array<i64: 2, 32>}, {pipeline_mode = #tpu.pipeline_mode<synchronous>, transform_indices = @transform_6, window_bounds = array<i64: 1, 1>}, {transform_indices = @transform_7, window_bounds = array<i64: 2, 1>}]} {
    %c0 = arith.constant 0 : index
    %c0_0 = arith.constant 0 : index
    %0 = vector.load %arg2[%c0, %c0_0] : memref<32x256xbf16, #tpu.memory_space<vmem>>, vector<32x256xbf16>
    %c0_1 = arith.constant 0 : index
    %c0_2 = arith.constant 0 : index
    %1 = vector.load %arg3[%c0_1, %c0_2] : memref<256x128xbf16, #tpu.memory_space<vmem>>, vector<256x128xbf16>
    %cst = arith.constant dense<0.000000e+00> : vector<32x128xf32>
    %2 = tpu.matmul %0, %1, %cst {dimension_numbers = #tpu.dot_dimension_numbers<[1], [0], [0], [1], [0, 0, 1, 1], [], []>} : vector<32x256xbf16>, vector<256x128xbf16>, vector<32x128xf32> -> vector<32x128xf32>
    %c0_i32 = arith.constant 0 : i32
    %3 = arith.cmpi eq, %arg0, %c0_i32 : i32
    %c0_i32_3 = arith.constant 0 : i32
    %4 = arith.cmpi eq, %arg1, %c0_i32_3 : i32
    %5 = arith.andi %3, %4 : i1
    %6 = arith.extui %5 : i1 to i32
    %c0_i32_4 = arith.constant 0 : i32
    %7 = arith.cmpi ne, %6, %c0_i32_4 : i32
    scf.if %7 {
      %cst_11 = arith.constant 0.000000e+00 : f32
      %19 = vector.broadcast %cst_11 : f32 to vector<1x128xf32>
      %c0_12 = arith.constant 0 : index
      %c0_13 = arith.constant 0 : index
      %20 = vector.load %arg10[%c0_12, %c0_13] : memref<1x128xf32, #tpu.memory_space<vmem>>, vector<1x128xf32>
      tpu.vector_store %arg10[%c0_12, %c0_13], %19 {strides = array<i32>} : memref<1x128xf32, #tpu.memory_space<vmem>>, vector<1x128xf32>,
      %cst_14 = arith.constant 0.000000e+00 : f32
      %21 = vector.broadcast %cst_14 : f32 to vector<1x128xf32>
      %c0_15 = arith.constant 0 : index
      %c0_16 = arith.constant 0 : index
      %22 = vector.load %arg11[%c0_15, %c0_16] : memref<1x128xf32, #tpu.memory_space<vmem>>, vector<1x128xf32>
      tpu.vector_store %arg11[%c0_15, %c0_16], %21 {strides = array<i32>} : memref<1x128xf32, #tpu.memory_space<vmem>>, vector<1x128xf32>,
    } else {
    }
    %c0_i32_5 = arith.constant 0 : i32
    %8 = arith.cmpi eq, %arg0, %c0_i32_5 : i32
    %9 = arith.extui %8 : i1 to i32
    %c0_i32_6 = arith.constant 0 : i32
    %10 = arith.cmpi ne, %9, %c0_i32_6 : i32
    scf.if %10 {
      %c0_11 = arith.constant 0 : index
      %c0_12 = arith.constant 0 : index
      %19 = vector.load %arg10[%c0_11, %c0_12] : memref<1x128xf32, #tpu.memory_space<vmem>>, vector<1x128xf32>
      %cst_13 = arith.constant dense<0.000000e+00> : vector<128xf32>
      %20 = vector.multi_reduction <add>, %2, %cst_13 [0] : vector<32x128xf32> to vector<128xf32>
      %21 = vector.shape_cast %20 : vector<128xf32> to vector<1x128xf32>
      %22 = arith.addf %19, %21 : vector<1x128xf32>
      %c0_14 = arith.constant 0 : index
      %c0_15 = arith.constant 0 : index
      %23 = vector.load %arg10[%c0_14, %c0_15] : memref<1x128xf32, #tpu.memory_space<vmem>>, vector<1x128xf32>
      tpu.vector_store %arg10[%c0_14, %c0_15], %22 {strides = array<i32>} : memref<1x128xf32, #tpu.memory_space<vmem>>, vector<1x128xf32>,
      %c0_16 = arith.constant 0 : index
      %c0_17 = arith.constant 0 : index
      %24 = vector.load %arg11[%c0_16, %c0_17] : memref<1x128xf32, #tpu.memory_space<vmem>>, vector<1x128xf32>
      %25 = arith.mulf %2, %2 : vector<32x128xf32>
      %cst_18 = arith.constant dense<0.000000e+00> : vector<128xf32>
      %26 = vector.multi_reduction <add>, %25, %cst_18 [0] : vector<32x128xf32> to vector<128xf32>
      %27 = vector.shape_cast %26 : vector<128xf32> to vector<1x128xf32>
      %28 = arith.addf %24, %27 : vector<1x128xf32>
      %c0_19 = arith.constant 0 : index
      %c0_20 = arith.constant 0 : index
      %29 = vector.load %arg11[%c0_19, %c0_20] : memref<1x128xf32, #tpu.memory_space<vmem>>, vector<1x128xf32>
      tpu.vector_store %arg11[%c0_19, %c0_20], %28 {strides = array<i32>} : memref<1x128xf32, #tpu.memory_space<vmem>>, vector<1x128xf32>,
    } else {
    }
    %c1_i32 = arith.constant 1 : i32
    %11 = arith.cmpi eq, %arg0, %c1_i32 : i32
    %c0_i32_7 = arith.constant 0 : i32
    %12 = arith.cmpi eq, %arg1, %c0_i32_7 : i32
    %13 = arith.andi %11, %12 : i1
    %14 = arith.extui %13 : i1 to i32
    %c0_i32_8 = arith.constant 0 : i32
    %15 = arith.cmpi ne, %14, %c0_i32_8 : i32
    scf.if %15 {
      %c0_11 = arith.constant 0 : index
      %c0_12 = arith.constant 0 : index
      %19 = vector.load %arg10[%c0_11, %c0_12] : memref<1x128xf32, #tpu.memory_space<vmem>>, vector<1x128xf32>
      %cst_13 = arith.constant 3.125000e-02 : f32
      %20 = vector.broadcast %cst_13 : f32 to vector<1x128xf32>
      %21 = arith.mulf %19, %20 : vector<1x128xf32>
      %c0_14 = arith.constant 0 : index
      %c0_15 = arith.constant 0 : index
      %22 = vector.load %arg11[%c0_14, %c0_15] : memref<1x128xf32, #tpu.memory_space<vmem>>, vector<1x128xf32>
      %cst_16 = arith.constant 3.125000e-02 : f32
      %23 = vector.broadcast %cst_16 : f32 to vector<1x128xf32>
      %24 = arith.mulf %22, %23 : vector<1x128xf32>
      %25 = arith.mulf %21, %21 : vector<1x128xf32>
      %26 = arith.subf %24, %25 : vector<1x128xf32>
      %cst_17 = arith.constant 0.000000e+00 : f32
      %27 = vector.broadcast %cst_17 : f32 to vector<1x128xf32>
      %28 = arith.maximumf %26, %27 : vector<1x128xf32>
      %c0_18 = arith.constant 0 : index
      %c0_19 = arith.constant 0 : index
      %29 = vector.load %arg4[%c0_18, %c0_19] : memref<1x128xf32, #tpu.memory_space<vmem>>, vector<1x128xf32>
      %cst_20 = arith.constant 9.99999974E-6 : f32
      %30 = vector.broadcast %cst_20 : f32 to vector<1x128xf32>
      %31 = arith.addf %28, %30 : vector<1x128xf32>
      %32 = math.rsqrt %31 : vector<1x128xf32>
      %33 = arith.mulf %29, %32 : vector<1x128xf32>
      %c0_21 = arith.constant 0 : index
      %c0_22 = arith.constant 0 : index
      %34 = vector.load %arg12[%c0_21, %c0_22] : memref<1x128xf32, #tpu.memory_space<vmem>>, vector<1x128xf32>
      tpu.vector_store %arg12[%c0_21, %c0_22], %33 {strides = array<i32>} : memref<1x128xf32, #tpu.memory_space<vmem>>, vector<1x128xf32>,
      %c0_23 = arith.constant 0 : index
      %c0_24 = arith.constant 0 : index
      %35 = vector.load %arg5[%c0_23, %c0_24] : memref<1x128xf32, #tpu.memory_space<vmem>>, vector<1x128xf32>
      %36 = arith.mulf %21, %33 : vector<1x128xf32>
      %37 = arith.subf %35, %36 : vector<1x128xf32>
      %c0_25 = arith.constant 0 : index
      %c0_26 = arith.constant 0 : index
      %38 = vector.load %arg13[%c0_25, %c0_26] : memref<1x128xf32, #tpu.memory_space<vmem>>, vector<1x128xf32>
      tpu.vector_store %arg13[%c0_25, %c0_26], %37 {strides = array<i32>} : memref<1x128xf32, #tpu.memory_space<vmem>>, vector<1x128xf32>,
    } else {
    }
    %c1_i32_9 = arith.constant 1 : i32
    %16 = arith.cmpi eq, %arg0, %c1_i32_9 : i32
    %17 = arith.extui %16 : i1 to i32
    %c0_i32_10 = arith.constant 0 : i32
    %18 = arith.cmpi ne, %17, %c0_i32_10 : i32
    scf.if %18 {
      %c0_11 = arith.constant 0 : index
      %c0_12 = arith.constant 0 : index
      %19 = vector.load %arg12[%c0_11, %c0_12] : memref<1x128xf32, #tpu.memory_space<vmem>>, vector<1x128xf32>
      %20 = vector.broadcast %19 : vector<1x128xf32> to vector<32x128xf32>
      %21 = arith.mulf %2, %20 : vector<32x128xf32>
      %c0_13 = arith.constant 0 : index
      %c0_14 = arith.constant 0 : index
      %22 = vector.load %arg13[%c0_13, %c0_14] : memref<1x128xf32, #tpu.memory_space<vmem>>, vector<1x128xf32>
      %23 = vector.broadcast %22 : vector<1x128xf32> to vector<32x128xf32>
      %24 = arith.addf %21, %23 : vector<32x128xf32>
      %cst_15 = arith.constant 0.000000e+00 : f32
      %25 = vector.broadcast %cst_15 : f32 to vector<32x128xf32>
      %26 = arith.cmpf ogt, %24, %25 : vector<32x128xf32>
      %cst_16 = arith.constant 2.000000e-01 : f32
      %27 = vector.broadcast %cst_16 : f32 to vector<32x128xf32>
      %28 = arith.mulf %27, %24 : vector<32x128xf32>
      %29 = arith.select %26, %24, %28 : vector<32x128xi1>, vector<32x128xf32>
      %c0_17 = arith.constant 0 : index
      %c0_18 = arith.constant 0 : index
      %30 = vector.load %arg6[%c0_17, %c0_18] : memref<32x128xbf16, #tpu.memory_space<vmem>>, vector<32x128xbf16>
      %31 = arith.extf %30 : vector<32x128xbf16> to vector<32x128xf32>
      %32 = arith.mulf %29, %31 : vector<32x128xf32>
      %33 = arith.truncf %32 : vector<32x128xf32> to vector<32x128xbf16>
      %c0_19 = arith.constant 0 : index
      %c0_20 = arith.constant 0 : index
      %34 = vector.load %arg7[%c0_19, %c0_20] : memref<2x32xbf16, #tpu.memory_space<vmem>>, vector<2x32xbf16>
      %cst_21 = arith.constant dense<0.000000e+00> : vector<2x128xf32>
      %35 = tpu.matmul %34, %33, %cst_21 {dimension_numbers = #tpu.dot_dimension_numbers<[1], [0], [0], [1], [0, 0, 1, 1], [], []>} : vector<2x32xbf16>, vector<32x128xbf16>, vector<2x128xf32> -> vector<2x128xf32>
      %cst_22 = arith.constant dense<0.000000e+00> : vector<2xf32>
      %36 = vector.multi_reduction <add>, %35, %cst_22 [1] : vector<2x128xf32> to vector<2xf32>
      %37 = vector.shape_cast %36 : vector<2xf32> to vector<2x1xf32>
      %c0_23 = arith.constant 0 : index
      %c0_24 = arith.constant 0 : index
      %38 = vector.load %arg8[%c0_23, %c0_24] : memref<1x1xf32, #tpu.memory_space<vmem>>, vector<1x1xf32>
      %39 = vector.broadcast %38 : vector<1x1xf32> to vector<2x1xf32>
      %40 = arith.addf %37, %39 : vector<2x1xf32>
      %cst_25 = arith.constant 0.000000e+00 : f32
      %41 = vector.broadcast %cst_25 : f32 to vector<2x1xf32>
      %42 = arith.subf %41, %40 : vector<2x1xf32>
      %43 = math.exp %42 : vector<2x1xf32>
      %cst_26 = arith.constant 1.000000e+00 : f32
      %44 = vector.broadcast %cst_26 : f32 to vector<2x1xf32>
      %45 = arith.addf %44, %43 : vector<2x1xf32>
      %cst_27 = arith.constant 1.000000e+00 : f32
      %46 = vector.broadcast %cst_27 : f32 to vector<2x1xf32>
      %47 = arith.divf %46, %45 : vector<2x1xf32>
      %c0_28 = arith.constant 0 : index
      %c0_29 = arith.constant 0 : index
      %48 = vector.load %arg9[%c0_28, %c0_29] : memref<2x1xf32, #tpu.memory_space<vmem>>, vector<2x1xf32>
      tpu.vector_store %arg9[%c0_28, %c0_29], %47 {strides = array<i32>} : memref<2x1xf32, #tpu.memory_space<vmem>>, vector<2x1xf32>,
    } else {
    }
    return
  }
  func.func @transform_0(%arg0: i32, %arg1: i32) -> (i32, i32) {
    %c0_i32 = arith.constant 0 : i32
    %c0_i32_0 = arith.constant 0 : i32
    return %arg1, %c0_i32 : i32, i32
  }
  func.func @transform_1(%arg0: i32, %arg1: i32) -> (i32, i32) {
    %c0_i32 = arith.constant 0 : i32
    %c0_i32_0 = arith.constant 0 : i32
    %c0_i32_1 = arith.constant 0 : i32
    return %c0_i32, %c0_i32_0 : i32, i32
  }
  func.func @transform_2(%arg0: i32, %arg1: i32) -> (i32, i32) {
    %c0_i32 = arith.constant 0 : i32
    %c0_i32_0 = arith.constant 0 : i32
    %c0_i32_1 = arith.constant 0 : i32
    return %c0_i32, %c0_i32_0 : i32, i32
  }
  func.func @transform_3(%arg0: i32, %arg1: i32) -> (i32, i32) {
    %c0_i32 = arith.constant 0 : i32
    %c0_i32_0 = arith.constant 0 : i32
    %c0_i32_1 = arith.constant 0 : i32
    return %c0_i32, %c0_i32_0 : i32, i32
  }
  func.func @transform_4(%arg0: i32, %arg1: i32) -> (i32, i32) {
    %c0_i32 = arith.constant 0 : i32
    %c0_i32_0 = arith.constant 0 : i32
    %c0_i32_1 = arith.constant 0 : i32
    return %c0_i32, %c0_i32_0 : i32, i32
  }
  func.func @transform_5(%arg0: i32, %arg1: i32) -> (i32, i32) {
    %c0_i32 = arith.constant 0 : i32
    %c0_i32_0 = arith.constant 0 : i32
    %c0_i32_1 = arith.constant 0 : i32
    return %c0_i32, %c0_i32_0 : i32, i32
  }
  func.func @transform_6(%arg0: i32, %arg1: i32) -> (i32, i32) {
    %c0_i32 = arith.constant 0 : i32
    %c0_i32_0 = arith.constant 0 : i32
    %c0_i32_1 = arith.constant 0 : i32
    return %c0_i32, %c0_i32_0 : i32, i32
  }
  func.func @transform_7(%arg0: i32, %arg1: i32) -> (i32, i32) {
    %0 = arith.muli %arg0, %arg1 : i32
    %c0_i32 = arith.constant 0 : i32
    %c0_i32_0 = arith.constant 0 : i32
    return %0, %c0_i32 : i32, i32
  }
}

</mosaic_0001>

<bundles_post_ra>
// kernel: discriminator_forward.3
= control target key start
LH: loop header
LB: loop body
LE: loop exit
PB: predicated region body
PF: predicated region fallthrough
CT: control target
= control target key end

     0   :  { %s1805_s15 = smov 0   ;;  %s1807_s16 = smov 0   ;;  %s2738_s0 = inlined_call_operand.vmem [shape: bf16[512,128], index: 0, kind: input, shape index: {}]   ;;  %s2739_s1 = inlined_call_operand.vmem [shape: bf16[128,128], index: 1, kind: input, shape index: {}]   ;;  %s2740_s2 = inlined_call_operand.vmem [shape: f32[1,128], index: 2, kind: input, shape index: {}]   ;;  %s2741_s3 = inlined_call_operand.vmem [shape: f32[1,128], index: 3, kind: input, shape index: {}]   ;;  %s2742_s4 = inlined_call_operand.vmem [shape: bf16[512,8], index: 4, kind: output, shape index: {}]  }
   0x1   :  { %s1809_s17 = smov 0  }
   0x2 LB: > { %s26_s18 = sadd.s32 1, %s1773_s16  ;;  %p1491_p0 = scmp.ge.s32.totalorder %s1777_s17, 1  ;;  %s1777_s17 = sphi %s1809_s17, %s14_s17   ;;  %s1773_s16 = sphi %s1807_s16, %s2828_s16   ;;  %s1769_s15 = sphi %s1805_s15, %s2827_s15  }
   0x3   : > { %p28_p1 = scmp.ge.s32.totalorder %s26_s18, 2  ;;  %p177_p2 = scmp.lt.s32.totalorder %s1777_s17, 3 }
   0x5   : > { %s2830_s18 = smov (%p28_p1, %s26_s18), 0  ;;  %p178_p3 = pnand %p1491_p0, %p177_p2 }
   0x7   : > { %181 = sbr.rel (%p178_p3) target bundleno = 599 (0x257), region = 36 }
   0xc   : > { %v1699_v0 = vld [vmem:[%s2739_s1 + $0x38] sm:$0xff]  ;;  %v1698_v1 = vld [vmem:[%s2739_s1 + $0x30] sm:$0xff]  ;;  %v1697_v2 = vld [vmem:[%s2739_s1 + $0x28] sm:$0xff]  ;;  %p707_p4 = scmp.eq.s32.totalorder %s1769_s15, 0 }
   0xd   : > { %538 = vmatpush.bf16.msra.mxu0 %v1699_v0  ;;  %1702 = vmatpush.bf16.msra.mxu1 %v1699_v0  ;;  %v1696_v3 = vld [vmem:[%s2739_s1 + $0x20] sm:$0xff]  ;;  %v1695_v4 = vld [vmem:[%s2739_s1 + $0x18] sm:$0xff]  ;;  %v1694_v5 = vld [vmem:[%s2739_s1 + $0x10] sm:$0xff] }
   0xe   : > { %1703 = vmatpush.bf16.msra.mxu2 %v1699_v0  ;;  %1704 = vmatpush.bf16.msra.mxu3 %v1699_v0  ;;  %v1693_v6 = vld [vmem:[%s2739_s1 + $0x8] sm:$0xff]  ;;  %v1692_v7 = vld [vmem:[%s2739_s1] sm:$0xff]  ;;  %v1662_v16 = vld [vmem:[%s2738_s0 + $0x10] sm:$0xff] }
   0xf   : > { %v1660_v8 = vld [vmem:[%s2738_s0] sm:$0xff]  ;;  %v1661_v12 = vld [vmem:[%s2738_s0 + $0x8] sm:$0xff]  ;;  %v1670_v17 = vld [vmem:[%s2738_s0 + $0x50] sm:$0xff] }
  0x10   : > { %v1668_v9 = vld [vmem:[%s2738_s0 + $0x40] sm:$0xff]  ;;  %v1669_v13 = vld [vmem:[%s2738_s0 + $0x48] sm:$0xff]  ;;  %v1678_v18 = vld [vmem:[%s2738_s0 + $0x90] sm:$0xff] }
  0x11   : > { %539 = vmatpush.bf16.msra.mxu0 %v1698_v1  ;;  %1705 = vmatpush.bf16.msra.mxu1 %v1698_v1  ;;  %v1676_v10 = vld [vmem:[%s2738_s0 + $0x80] sm:$0xff]  ;;  %v1677_v14 = vld [vmem:[%s2738_s0 + $0x88] sm:$0xff]  ;;  %v1686_v19 = vld [vmem:[%s2738_s0 + $0xd0] sm:$0xff] }
  0x12   : > { %1706 = vmatpush.bf16.msra.mxu2 %v1698_v1  ;;  %1707 = vmatpush.bf16.msra.mxu3 %v1698_v1  ;;  %v1684_v11 = vld [vmem:[%s2738_s0 + $0xc0] sm:$0xff]  ;;  %v1685_v15 = vld [vmem:[%s2738_s0 + $0xc8] sm:$0xff]  ;;  %v1663_v20 = vld [vmem:[%s2738_s0 + $0x18] sm:$0xff] }
  0x13   : > { %v1671_v21 = vld [vmem:[%s2738_s0 + $0x58] sm:$0xff]  ;;  %v1664_v24 = vld [vmem:[%s2738_s0 + $0x20] sm:$0xff]  ;;  %v1665_v28 = vld [vmem:[%s2738_s0 + $0x28] sm:$0xff] }
  0x14   : > { %v1679_v22 = vld [vmem:[%s2738_s0 + $0x98] sm:$0xff]  ;;  %v1672_v25 = vld [vmem:[%s2738_s0 + $0x60] sm:$0xff]  ;;  %v1673_v29 = vld [vmem:[%s2738_s0 + $0x68] sm:$0xff] }
  0x15   : > { %540 = vmatpush.bf16.msra.mxu0 %v1697_v2  ;;  %1708 = vmatpush.bf16.msra.mxu1 %v1697_v2  ;;  %v1687_v23 = vld [vmem:[%s2738_s0 + $0xd8] sm:$0xff]  ;;  %v1680_v26 = vld [vmem:[%s2738_s0 + $0xa0] sm:$0xff]  ;;  %v1681_v30 = vld [vmem:[%s2738_s0 + $0xa8] sm:$0xff] }
  0x16   : > { %1709 = vmatpush.bf16.msra.mxu2 %v1697_v2  ;;  %1710 = vmatpush.bf16.msra.mxu3 %v1697_v2  ;;  %v1688_v27 = vld [vmem:[%s2738_s0 + $0xe0] sm:$0xff]  ;;  %v1689_v31 = vld [vmem:[%s2738_s0 + $0xe8] sm:$0xff]  ;;  %v1666_v32 = vld [vmem:[%s2738_s0 + $0x30] sm:$0xff] }
  0x17   : > { %v1674_v33 = vld [vmem:[%s2738_s0 + $0x70] sm:$0xff]  ;;  %v1667_v36 = vld [vmem:[%s2738_s0 + $0x38] sm:$0xff] }
  0x18   : > { %v1682_v34 = vld [vmem:[%s2738_s0 + $0xb0] sm:$0xff]  ;;  %v1675_v37 = vld [vmem:[%s2738_s0 + $0x78] sm:$0xff] }
  0x19   : > { %541 = vmatpush.bf16.msra.mxu0 %v1696_v3  ;;  %1711 = vmatpush.bf16.msra.mxu1 %v1696_v3  ;;  %v1690_v35 = vld [vmem:[%s2738_s0 + $0xf0] sm:$0xff]  ;;  %v1683_v38 = vld [vmem:[%s2738_s0 + $0xb8] sm:$0xff] }
  0x1a   : > { %1712 = vmatpush.bf16.msra.mxu2 %v1696_v3  ;;  %1713 = vmatpush.bf16.msra.mxu3 %v1696_v3  ;;  %v1691_v39 = vld [vmem:[%s2738_s0 + $0xf8] sm:$0xff] }
  0x1d   : > { %542 = vmatpush.bf16.msra.mxu0 %v1695_v4  ;;  %1714 = vmatpush.bf16.msra.mxu1 %v1695_v4 }
  0x1e   : > { %1715 = vmatpush.bf16.msra.mxu2 %v1695_v4  ;;  %1716 = vmatpush.bf16.msra.mxu3 %v1695_v4 }
  0x21   : > { %543 = vmatpush.bf16.msra.mxu0 %v1694_v5  ;;  %1717 = vmatpush.bf16.msra.mxu1 %v1694_v5 }
  0x22   : > { %1718 = vmatpush.bf16.msra.mxu2 %v1694_v5  ;;  %1719 = vmatpush.bf16.msra.mxu3 %v1694_v5 }
  0x25   : > { %544 = vmatpush.bf16.msra.mxu0 %v1693_v6  ;;  %1720 = vmatpush.bf16.msra.mxu1 %v1693_v6 }
  0x26   : > { %1721 = vmatpush.bf16.msra.mxu2 %v1693_v6  ;;  %1722 = vmatpush.bf16.msra.mxu3 %v1693_v6 }
  0x29   : > { %545 = vmatpush.bf16.msra.mxu0 %v1692_v7  ;;  %1723 = vmatpush.bf16.msra.mxu1 %v1692_v7 }
  0x2a   : > { %1724 = vmatpush.bf16.msra.mxu2 %v1692_v7  ;;  %1725 = vmatpush.bf16.msra.mxu3 %v1692_v7 }
  0x2c   : > { %546 = vmatmul.bf16.vlgmr.msra.gmra.mxu0 %v1660_v8  ;;  %586 = vmatmul.bf16.vlgmr.msra.gmra.mxu1 %v1668_v9 }
  0x2d   : > { %626 = vmatmul.bf16.vlgmr.msra.gmra.mxu2 %v1676_v10  ;;  %666 = vmatmul.bf16.vlgmr.msra.gmra.mxu3 %v1684_v11 }
  0x3c   : > { %551 = vmatmul.bf16.gmra.mxu0 %v1661_v12  ;;  %591 = vmatmul.bf16.gmra.mxu1 %v1669_v13 }
  0x3d   : > { %631 = vmatmul.bf16.gmra.mxu2 %v1677_v14  ;;  %671 = vmatmul.bf16.gmra.mxu3 %v1685_v15 }
  0x4c   : > { %556 = vmatmul.bf16.gmra.mxu0 %v1662_v16  ;;  %596 = vmatmul.bf16.gmra.mxu1 %v1670_v17 }
  0x4d   : > { %636 = vmatmul.bf16.gmra.mxu2 %v1678_v18  ;;  %676 = vmatmul.bf16.gmra.mxu3 %v1686_v19 }
  0x5c   : > { %561 = vmatmul.bf16.gmra.mxu0 %v1663_v20  ;;  %601 = vmatmul.bf16.gmra.mxu1 %v1671_v21 }
  0x5d   : > { %641 = vmatmul.bf16.gmra.mxu2 %v1679_v22  ;;  %681 = vmatmul.bf16.gmra.mxu3 %v1687_v23 }
  0x6c   : > { %566 = vmatmul.bf16.gmra.mxu0 %v1664_v24  ;;  %606 = vmatmul.bf16.gmra.mxu1 %v1672_v25 }
  0x6d   : > { %646 = vmatmul.bf16.gmra.mxu2 %v1680_v26  ;;  %686 = vmatmul.bf16.gmra.mxu3 %v1688_v27 }
  0x7c   : > { %571 = vmatmul.bf16.gmra.mxu0 %v1665_v28  ;;  %611 = vmatmul.bf16.gmra.mxu1 %v1673_v29 }
  0x7d   : > { %651 = vmatmul.bf16.gmra.mxu2 %v1681_v30  ;;  %691 = vmatmul.bf16.gmra.mxu3 %v1689_v31 }
  0x8c   : > { %576 = vmatmul.bf16.gmra.mxu0 %v1666_v32  ;;  %616 = vmatmul.bf16.gmra.mxu1 %v1674_v33 }
  0x8d   : > { %656 = vmatmul.bf16.gmra.mxu2 %v1682_v34  ;;  %696 = vmatmul.bf16.gmra.mxu3 %v1690_v35 }
  0x9c   : > { %581 = vmatmul.bf16.gmra.mxu0 %v1667_v36  ;;  %621 = vmatmul.bf16.gmra.mxu1 %v1675_v37 }
  0x9d   : > { %661 = vmatmul.bf16.gmra.mxu2 %v1683_v38  ;;  %701 = vmatmul.bf16.gmra.mxu3 %v1691_v39 }
  0xa9   : > { %v1946_v40 = vpop.f32.mrf.mxu0  ;;  %v1948_v41 = vpop.f32.mrf.mxu1 }
  0xaa   : > { %2767 = vst [vmem:[#allocation6_spill] sm:$0xff] %v1946_v40 }
  0xb0   : > { %v1950_v42 = vpop.f32.mrf.mxu2  ;;  %v1952_v43 = vpop.f32.mrf.mxu3 }
  0xb1   : > { %2768 = vst [vmem:[#allocation7_spill] sm:$0xff] %v1952_v43  ;;  %v1954_v44 = vpop.f32.mrf.mxu0  ;;  %v1956_v45 = vpop.f32.mrf.mxu1 }
  0xb2   : > { %2769 = vst [vmem:[#allocation8_spill] sm:$0xff] %v1954_v44 }
  0xb8   : > { %v1958_v46 = vpop.f32.mrf.mxu2  ;;  %v1960_v47 = vpop.f32.mrf.mxu3 }
  0xb9   : > { %2770 = vst [vmem:[#allocation9_spill] sm:$0xff] %v1960_v47  ;;  %v1962_v48 = vpop.f32.mrf.mxu0  ;;  %v1964_v49 = vpop.f32.mrf.mxu1 }
  0xba   : > { %2771 = vst [vmem:[#allocation10_spill] sm:$0xff] %v1962_v48 }
  0xc0   : > { %v1966_v50 = vpop.f32.mrf.mxu2  ;;  %v1968_v51 = vpop.f32.mrf.mxu3 }
  0xc1   : > { %2772 = vst [vmem:[#allocation11_spill] sm:$0xff] %v1968_v51  ;;  %v1970_v52 = vpop.f32.mrf.mxu0  ;;  %v1972_v53 = vpop.f32.mrf.mxu1 }
  0xc8   : > { %v1974_v54 = vpop.f32.mrf.mxu2  ;;  %v1976_v55 = vpop.f32.mrf.mxu3 }
  0xc9   : > { %2773 = vst [vmem:[#allocation12_spill] sm:$0xff] %v1976_v55  ;;  %v1978_v56 = vpop.f32.mrf.mxu0  ;;  %v1980_v57 = vpop.f32.mrf.mxu1 }
  0xd0   : > { %v1982_v58 = vpop.f32.mrf.mxu2  ;;  %v1984_v59 = vpop.f32.mrf.mxu3 }
  0xd1   : > { %2774 = vst [vmem:[#allocation13_spill] sm:$0xff] %v1984_v59  ;;  %v1986_v60 = vpop.f32.mrf.mxu0  ;;  %v1988_v61 = vpop.f32.mrf.mxu1 }
  0xd8   : > { %v1990_v62 = vpop.f32.mrf.mxu2  ;;  %v1992_v63 = vpop.f32.mrf.mxu3 }
  0xd9   : > { %2775 = vst [vmem:[#allocation14_spill] sm:$0xff] %v1992_v63  ;;  %v1994_v0 = vpop.f32.mrf.mxu0  ;;  %v1996_v1 = vpop.f32.mrf.mxu1 }
  0xe0   : > { %v1998_v2 = vpop.f32.mrf.mxu2  ;;  %v2000_v3 = vpop.f32.mrf.mxu3 }
  0xe1   : > { %2776 = vst [vmem:[#allocation15_spill] sm:$0xff] %v2000_v3  ;;  %v2002_v4 = vpop.f32.mrf.mxu0  ;;  %v2004_v5 = vpop.f32.mrf.mxu1 }
  0xe8   : > { %v2006_v6 = vpop.f32.mrf.mxu2  ;;  %v2008_v7 = vpop.f32.mrf.mxu3 }
  0xe9   : > { %2777 = vst [vmem:[#allocation16_spill] sm:$0xff] %v2008_v7  ;;  %v2010_v8 = vpop.f32.mrf.mxu0  ;;  %v2012_v9 = vpop.f32.mrf.mxu1 }
  0xf0   : > { %v2014_v10 = vpop.f32.mrf.mxu2  ;;  %v2016_v11 = vpop.f32.mrf.mxu3 }
  0xf1   : > { %2778 = vst [vmem:[#allocation17_spill] sm:$0xff] %v2016_v11  ;;  %v2018_v12 = vpop.f32.mrf.mxu0  ;;  %v2020_v13 = vpop.f32.mrf.mxu1 }
  0xf8   : > { %v2022_v14 = vpop.f32.mrf.mxu2  ;;  %v2024_v15 = vpop.f32.mrf.mxu3 }
  0xf9   : > { %2779 = vst [vmem:[#allocation18_spill] sm:$0xff] %v2024_v15  ;;  %v2026_v16 = vpop.f32.mrf.mxu0  ;;  %v2028_v17 = vpop.f32.mrf.mxu1 }
 0x100   : > { %v2030_v18 = vpop.f32.mrf.mxu2  ;;  %v2032_v19 = vpop.f32.mrf.mxu3 }
 0x101   : > { %2780 = vst [vmem:[#allocation19_spill] sm:$0xff] %v2032_v19  ;;  %v2034_v20 = vpop.f32.mrf.mxu0  ;;  %v2036_v21 = vpop.f32.mrf.mxu1 }
 0x108   : > { %v2038_v22 = vpop.f32.mrf.mxu2  ;;  %v2040_v23 = vpop.f32.mrf.mxu3 }
 0x109   : > { %2781 = vst [vmem:[#allocation20_spill] sm:$0xff] %v2038_v22  ;;  %v2042_v24 = vpop.f32.mrf.mxu0  ;;  %v2044_v25 = vpop.f32.mrf.mxu1 }
 0x10a   : > { %2782 = vst [vmem:[#allocation21_spill] sm:$0xff] %v2040_v23 }
 0x110   : > { %v2046_v26 = vpop.f32.mrf.mxu2  ;;  %v2048_v27 = vpop.f32.mrf.mxu3 }
 0x111   : > { %2783 = vst [vmem:[#allocation22_spill] sm:$0xff] %v2046_v26  ;;  %v2050_v28 = vpop.f32.mrf.mxu0  ;;  %v2052_v29 = vpop.f32.mrf.mxu1 }
 0x112   : > { %2784 = vst [vmem:[#allocation23_spill] sm:$0xff] %v2048_v27 }
 0x118   : > { %v2054_v30 = vpop.f32.mrf.mxu2  ;;  %v2056_v31 = vpop.f32.mrf.mxu3 }
 0x119   : > { %2785 = vst [vmem:[#allocation24_spill] sm:$0xff] %v2054_v30  ;;  %v2058_v32 = vpop.f32.mrf.mxu0  ;;  %v2060_v33 = vpop.f32.mrf.mxu1 }
 0x11a   : > { %2786 = vst [vmem:[#allocation25_spill] sm:$0xff] %v2056_v31  ;;  %v1779_v31 = vmov (%p707_p4), 0.0  }
 0x11b   : > { %713 = vst [vmem:[#allocation2] sm:$0x1] (%p707_p4), %v1779_v31 }
 0x11c   : > { %714 = vst [vmem:[#allocation3] sm:$0x1] (%p707_p4), %v1779_v31 }
 0x120   : > { %v2062_v34 = vpop.f32.mrf.mxu2  ;;  %v2064_v35 = vpop.f32.mrf.mxu3 }
 0x121   : > { %2787 = vst [vmem:[#allocation26_spill] sm:$0xff] %v2062_v34  ;;  %v2066_v36 = vpop.f32.mrf.mxu0  ;;  %v2068_v37 = vpop.f32.mrf.mxu1 }
 0x122   : > { %2788 = vst [vmem:[#allocation27_spill] sm:$0xff] %v2064_v35 }
 0x126   : > { %712 = sbr.rel (!%p707_p4) target bundleno = 299 (0x12b), region = 40 }
 0x128   : > { %v2070_v38 = vpop.f32.mrf.mxu2  ;;  %v2072_v39 = vpop.f32.mrf.mxu3 }
 0x129   : > { %2789 = vst [vmem:[#allocation28_spill] sm:$0xff] %v2070_v38 }
 0x12a   : > { %2790 = vst [vmem:[#allocation29_spill] sm:$0xff] %v2072_v39 }
 0x12b PF: > { %p1653_p5 = scmp.ne.s32.totalorder %s1769_s15, 0 }
 0x12d   : > { %717 = sbr.rel (%p1653_p5) target bundleno = 449 (0x1c1), region = 44 }
 0x132   : > { %v719_v35 = vadd.f32 %v1954_v44, %v1946_v40  ;;  %v791_v27 = vmul.f32 %v1946_v40, %v1946_v40  ;;  %v792_v23 = vmul.f32 %v1954_v44, %v1954_v44  ;;  %v793_v19 = vmul.f32 %v1962_v48, %v1962_v48 }
 0x133   : > { %v794_v15 = vmul.f32 %v1970_v52, %v1970_v52  ;;  %v795_v3 = vmul.f32 %v1978_v56, %v1978_v56 }
 0x134   : > { %v720_v39 = vadd.f32 %v719_v35, %v1962_v48  ;;  %v855_v11 = vadd.f32 %v792_v23, %v791_v27  ;;  %v796_v35 = vmul.f32 %v1986_v60, %v1986_v60  ;;  %v798_v27 = vmul.f32 %v2002_v4, %v2002_v4 }
 0x136   : > { %v721_v31 = vadd.f32 %v720_v39, %v1970_v52  ;;  %v856_v40 = vadd.f32 %v855_v11, %v793_v19  ;;  %v797_v39 = vmul.f32 %v1994_v0, %v1994_v0 }
 0x138   : > { %v722_v7 = vadd.f32 %v721_v31, %v1978_v56  ;;  %v857_v44 = vadd.f32 %v856_v40, %v794_v15 }
 0x13a   : > { %v723_v63 = vadd.f32 %v722_v7, %v1986_v60  ;;  %v858_v59 = vadd.f32 %v857_v44, %v795_v3  ;;  %v799_v7 = vmul.f32 %v2010_v8, %v2010_v8 }
 0x13c   : > { %v724_v48 = vadd.f32 %v723_v63, %v1994_v0  ;;  %v859_v31 = vadd.f32 %v858_v59, %v796_v35  ;;  %v800_v63 = vmul.f32 %v2018_v12, %v2018_v12  ;;  %v802_v35 = vmul.f32 %v2034_v20, %v2034_v20 }
 0x13e   : > { %v725_v23 = vadd.f32 %v724_v48, %v2002_v4  ;;  %v860_v19 = vadd.f32 %v859_v31, %v797_v39  ;;  %v801_v48 = vmul.f32 %v2026_v16, %v2026_v16  ;;  %v803_v31 = vmul.f32 %v2042_v24, %v2042_v24 }
 0x140   : > { %v726_v11 = vadd.f32 %v725_v23, %v2010_v8  ;;  %v861_v15 = vadd.f32 %v860_v19, %v798_v27  ;;  %v804_v19 = vmul.f32 %v2050_v28, %v2050_v28 }
 0x142   : > { %v727_v40 = vadd.f32 %v726_v11, %v2018_v12  ;;  %v862_v3 = vadd.f32 %v861_v15, %v799_v7  ;;  %v805_v15 = vmul.f32 %v2058_v32, %v2058_v32 }
 0x144   : > { %v728_v44 = vadd.f32 %v727_v40, %v2026_v16  ;;  %v863_v23 = vadd.f32 %v862_v3, %v800_v63  ;;  %v806_v3 = vmul.f32 %v2066_v36, %v2066_v36 }
 0x146   : > { %v729_v59 = vadd.f32 %v728_v44, %v2034_v20  ;;  %v864_v11 = vadd.f32 %v863_v23, %v801_v48  ;;  %v807_v23 = vmul.f32 %v1948_v41, %v1948_v41 }
 0x148   : > { %v730_v39 = vadd.f32 %v729_v59, %v2042_v24  ;;  %v865_v40 = vadd.f32 %v864_v11, %v802_v35  ;;  %v808_v11 = vmul.f32 %v1956_v45, %v1956_v45 }
 0x14a   : > { %v731_v27 = vadd.f32 %v730_v39, %v2050_v28  ;;  %v866_v44 = vadd.f32 %v865_v40, %v803_v31  ;;  %v809_v40 = vmul.f32 %v1964_v49, %v1964_v49 }
 0x14c   : > { %v732_v7 = vadd.f32 %v731_v27, %v2058_v32  ;;  %v867_v59 = vadd.f32 %v866_v44, %v804_v19  ;;  %v810_v44 = vmul.f32 %v1972_v53, %v1972_v53 }
 0x14e   : > { %v733_v63 = vadd.f32 %v732_v7, %v2066_v36  ;;  %v868_v39 = vadd.f32 %v867_v59, %v805_v15  ;;  %v811_v59 = vmul.f32 %v1980_v57, %v1980_v57 }
 0x150   : > { %v734_v48 = vadd.f32 %v733_v63, %v1948_v41  ;;  %v869_v27 = vadd.f32 %v868_v39, %v806_v3  ;;  %v812_v39 = vmul.f32 %v1988_v61, %v1988_v61 }
 0x152   : > { %v735_v35 = vadd.f32 %v734_v48, %v1956_v45  ;;  %v870_v7 = vadd.f32 %v869_v27, %v807_v23  ;;  %v813_v27 = vmul.f32 %v1996_v1, %v1996_v1 }
 0x154   : > { %v736_v31 = vadd.f32 %v735_v35, %v1964_v49  ;;  %v871_v63 = vadd.f32 %v870_v7, %v808_v11  ;;  %v814_v7 = vmul.f32 %v2004_v5, %v2004_v5 }
 0x156   : > { %v737_v19 = vadd.f32 %v736_v31, %v1972_v53  ;;  %v872_v48 = vadd.f32 %v871_v63, %v809_v40  ;;  %v815_v63 = vmul.f32 %v2012_v9, %v2012_v9 }
 0x158   : > { %v738_v15 = vadd.f32 %v737_v19, %v1980_v57  ;;  %v873_v35 = vadd.f32 %v872_v48, %v810_v44  ;;  %v816_v48 = vmul.f32 %v2020_v13, %v2020_v13 }
 0x15a   : > { %v739_v3 = vadd.f32 %v738_v15, %v1988_v61  ;;  %v874_v31 = vadd.f32 %v873_v35, %v811_v59  ;;  %v817_v35 = vmul.f32 %v2028_v17, %v2028_v17 }
 0x15c   : > { %v740_v23 = vadd.f32 %v739_v3, %v1996_v1  ;;  %v875_v19 = vadd.f32 %v874_v31, %v812_v39  ;;  %v818_v31 = vmul.f32 %v2036_v21, %v2036_v21 }
 0x15e   : > { %v741_v11 = vadd.f32 %v740_v23, %v2004_v5  ;;  %v876_v15 = vadd.f32 %v875_v19, %v813_v27  ;;  %v819_v19 = vmul.f32 %v2044_v25, %v2044_v25 }
 0x160   : > { %v742_v40 = vadd.f32 %v741_v11, %v2012_v9  ;;  %v877_v3 = vadd.f32 %v876_v15, %v814_v7  ;;  %v820_v15 = vmul.f32 %v2052_v29, %v2052_v29 }
 0x162   : > { %v743_v44 = vadd.f32 %v742_v40, %v2020_v13  ;;  %v878_v23 = vadd.f32 %v877_v3, %v815_v63  ;;  %v821_v3 = vmul.f32 %v2060_v33, %v2060_v33 }
 0x164   : > { %v744_v59 = vadd.f32 %v743_v44, %v2028_v17  ;;  %v879_v11 = vadd.f32 %v878_v23, %v816_v48  ;;  %v822_v23 = vmul.f32 %v2068_v37, %v2068_v37 }
 0x166   : > { %v745_v39 = vadd.f32 %v744_v59, %v2036_v21  ;;  %v880_v40 = vadd.f32 %v879_v11, %v817_v35  ;;  %v823_v11 = vmul.f32 %v1950_v42, %v1950_v42 }
 0x168   : > { %v746_v27 = vadd.f32 %v745_v39, %v2044_v25  ;;  %v881_v44 = vadd.f32 %v880_v40, %v818_v31  ;;  %v824_v40 = vmul.f32 %v1958_v46, %v1958_v46 }
 0x16a   : > { %v747_v7 = vadd.f32 %v746_v27, %v2052_v29  ;;  %v882_v59 = vadd.f32 %v881_v44, %v819_v19  ;;  %v825_v44 = vmul.f32 %v1966_v50, %v1966_v50 }
 0x16c   : > { %v748_v63 = vadd.f32 %v747_v7, %v2060_v33  ;;  %v883_v39 = vadd.f32 %v882_v59, %v820_v15  ;;  %v826_v59 = vmul.f32 %v1974_v54, %v1974_v54 }
 0x16e   : > { %v749_v48 = vadd.f32 %v748_v63, %v2068_v37  ;;  %v884_v27 = vadd.f32 %v883_v39, %v821_v3  ;;  %v827_v39 = vmul.f32 %v1982_v58, %v1982_v58 }
 0x170   : > { %v750_v35 = vadd.f32 %v749_v48, %v1950_v42  ;;  %v885_v7 = vadd.f32 %v884_v27, %v822_v23  ;;  %v828_v27 = vmul.f32 %v1990_v62, %v1990_v62 }
 0x172   : > { %v751_v31 = vadd.f32 %v750_v35, %v1958_v46  ;;  %v886_v63 = vadd.f32 %v885_v7, %v823_v11  ;;  %v829_v7 = vmul.f32 %v1998_v2, %v1998_v2 }
 0x174   : > { %v752_v19 = vadd.f32 %v751_v31, %v1966_v50  ;;  %v887_v48 = vadd.f32 %v886_v63, %v824_v40  ;;  %v830_v63 = vmul.f32 %v2006_v6, %v2006_v6 }
 0x176   : > { %v753_v15 = vadd.f32 %v752_v19, %v1974_v54  ;;  %v888_v35 = vadd.f32 %v887_v48, %v825_v44  ;;  %v831_v48 = vmul.f32 %v2014_v10, %v2014_v10 }
 0x178   : > { %v754_v3 = vadd.f32 %v753_v15, %v1982_v58  ;;  %v889_v31 = vadd.f32 %v888_v35, %v826_v59  ;;  %v832_v35 = vmul.f32 %v2022_v14, %v2022_v14 }
 0x17a   : > { %v755_v23 = vadd.f32 %v754_v3, %v1990_v62  ;;  %v890_v19 = vadd.f32 %v889_v31, %v827_v39  ;;  %v833_v31 = vmul.f32 %v2030_v18, %v2030_v18 }
 0x17c   : > { %v756_v11 = vadd.f32 %v755_v23, %v1998_v2  ;;  %v891_v15 = vadd.f32 %v890_v19, %v828_v27  ;;  %v834_v19 = vmul.f32 %v2038_v22, %v2038_v22 }
 0x17e   : > { %v757_v40 = vadd.f32 %v756_v11, %v2006_v6  ;;  %v892_v3 = vadd.f32 %v891_v15, %v829_v7  ;;  %v835_v15 = vmul.f32 %v2046_v26, %v2046_v26 }
 0x180   : > { %v758_v44 = vadd.f32 %v757_v40, %v2014_v10  ;;  %v893_v23 = vadd.f32 %v892_v3, %v830_v63  ;;  %v836_v3 = vmul.f32 %v2054_v30, %v2054_v30 }
 0x182   : > { %v759_v59 = vadd.f32 %v758_v44, %v2022_v14  ;;  %v894_v11 = vadd.f32 %v893_v23, %v831_v48  ;;  %v837_v23 = vmul.f32 %v2062_v34, %v2062_v34 }
 0x184   : > { %v760_v39 = vadd.f32 %v759_v59, %v2030_v18  ;;  %v895_v40 = vadd.f32 %v894_v11, %v832_v35  ;;  %v838_v11 = vmul.f32 %v2070_v38, %v2070_v38 }
 0x186   : > { %v761_v27 = vadd.f32 %v760_v39, %v2038_v22  ;;  %v896_v44 = vadd.f32 %v895_v40, %v833_v31  ;;  %v839_v40 = vmul.f32 %v1952_v43, %v1952_v43 }
 0x188   : > { %v762_v7 = vadd.f32 %v761_v27, %v2046_v26  ;;  %v897_v59 = vadd.f32 %v896_v44, %v834_v19  ;;  %v840_v44 = vmul.f32 %v1960_v47, %v1960_v47 }
 0x18a   : > { %v763_v63 = vadd.f32 %v762_v7, %v2054_v30  ;;  %v898_v39 = vadd.f32 %v897_v59, %v835_v15  ;;  %v841_v59 = vmul.f32 %v1968_v51, %v1968_v51 }
 0x18c   : > { %v764_v48 = vadd.f32 %v763_v63, %v2062_v34  ;;  %v899_v27 = vadd.f32 %v898_v39, %v836_v3  ;;  %v842_v39 = vmul.f32 %v1976_v55, %v1976_v55 }
 0x18e   : > { %v765_v35 = vadd.f32 %v764_v48, %v2070_v38  ;;  %v900_v7 = vadd.f32 %v899_v27, %v837_v23 }
 0x190   : > { %v766_v31 = vadd.f32 %v765_v35, %v1952_v43  ;;  %v901_v63 = vadd.f32 %v900_v7, %v838_v11  ;;  %v2791_v43 = vld [vmem:[#allocation13_spill] sm:$0xff] }
 0x191   : > { %v843_v27 = vmul.f32 %v2791_v43, %v2791_v43 }
 0x192   : > { %v767_v19 = vadd.f32 %v766_v31, %v1960_v47  ;;  %v902_v48 = vadd.f32 %v901_v63, %v839_v40  ;;  %v2792_v47 = vld [vmem:[#allocation14_spill] sm:$0xff] }
 0x193   : > { %v844_v7 = vmul.f32 %v2792_v47, %v2792_v47 }
 0x194   : > { %v768_v15 = vadd.f32 %v767_v19, %v1968_v51  ;;  %v903_v35 = vadd.f32 %v902_v48, %v840_v44  ;;  %v2793_v51 = vld [vmem:[#allocation15_spill] sm:$0xff] }
 0x195   : > { %v845_v63 = vmul.f32 %v2793_v51, %v2793_v51 }
 0x196   : > { %v769_v3 = vadd.f32 %v768_v15, %v1976_v55  ;;  %v904_v31 = vadd.f32 %v903_v35, %v841_v59  ;;  %v2794_v55 = vld [vmem:[#allocation16_spill] sm:$0xff] }
 0x197   : > { %v846_v48 = vmul.f32 %v2794_v55, %v2794_v55 }
 0x198   : > { %v770_v23 = vadd.f32 %v769_v3, %v2791_v43  ;;  %v905_v19 = vadd.f32 %v904_v31, %v842_v39  ;;  %v2795_v43 = vld [vmem:[#allocation17_spill] sm:$0xff] }
 0x199   : > { %v847_v35 = vmul.f32 %v2795_v43, %v2795_v43 }
 0x19a   : > { %v771_v11 = vadd.f32 %v770_v23, %v2792_v47  ;;  %v906_v15 = vadd.f32 %v905_v19, %v843_v27  ;;  %v2796_v47 = vld [vmem:[#allocation18_spill] sm:$0xff] }
 0x19b   : > { %v848_v31 = vmul.f32 %v2796_v47, %v2796_v47 }
 0x19c   : > { %v772_v40 = vadd.f32 %v771_v11, %v2793_v51  ;;  %v907_v3 = vadd.f32 %v906_v15, %v844_v7  ;;  %v2797_v51 = vld [vmem:[#allocation19_spill] sm:$0xff] }
 0x19d   : > { %v849_v19 = vmul.f32 %v2797_v51, %v2797_v51 }
 0x19e   : > { %v773_v44 = vadd.f32 %v772_v40, %v2794_v55  ;;  %v908_v23 = vadd.f32 %v907_v3, %v845_v63  ;;  %v2798_v55 = vld [vmem:[#allocation21_spill] sm:$0xff] }
 0x19f   : > { %v850_v15 = vmul.f32 %v2798_v55, %v2798_v55 }
 0x1a0   : > { %v774_v59 = vadd.f32 %v773_v44, %v2795_v43  ;;  %v909_v11 = vadd.f32 %v908_v23, %v846_v48  ;;  %v2799_v43 = vld [vmem:[#allocation23_spill] sm:$0xff] }
 0x1a1   : > { %v851_v3 = vmul.f32 %v2799_v43, %v2799_v43 }
 0x1a2   : > { %v775_v39 = vadd.f32 %v774_v59, %v2796_v47  ;;  %v910_v40 = vadd.f32 %v909_v11, %v847_v35  ;;  %v2800_v47 = vld [vmem:[#allocation25_spill] sm:$0xff] }
 0x1a3   : > { %v852_v23 = vmul.f32 %v2800_v47, %v2800_v47 }
 0x1a4   : > { %v776_v27 = vadd.f32 %v775_v39, %v2797_v51  ;;  %v911_v44 = vadd.f32 %v910_v40, %v848_v31  ;;  %v2801_v51 = vld [vmem:[#allocation27_spill] sm:$0xff] }
 0x1a5   : > { %v853_v11 = vmul.f32 %v2801_v51, %v2801_v51 }
 0x1a6   : > { %v777_v7 = vadd.f32 %v776_v27, %v2798_v55  ;;  %v912_v59 = vadd.f32 %v911_v44, %v849_v19  ;;  %v2802_v55 = vld [vmem:[#allocation29_spill] sm:$0xff] }
 0x1a7   : > { %v854_v40 = vmul.f32 %v2802_v55, %v2802_v55 }
 0x1a8   : > { %v778_v63 = vadd.f32 %v777_v7, %v2799_v43  ;;  %v913_v39 = vadd.f32 %v912_v59, %v850_v15 }
 0x1aa   : > { %v779_v48 = vadd.f32 %v778_v63, %v2800_v47  ;;  %v914_v27 = vadd.f32 %v913_v39, %v851_v3 }
 0x1ac   : > { %v780_v35 = vadd.f32 %v779_v48, %v2801_v51  ;;  %v915_v7 = vadd.f32 %v914_v27, %v852_v23  ;;  %v718_v48 = vld [vmem:[#allocation2] sm:$0x1] }
 0x1ae   : > { %v781_v31 = vadd.f32 %v780_v35, %v2802_v55  ;;  %v916_v19 = vadd.f32 %v915_v7, %v853_v11  ;;  %v790_v35 = vld [vmem:[#allocation3] sm:$0x1] }
 0x1b0   : > { %v782_v43 = vrot.slane %v781_v31, 4  ;;  %v917_v63 = vadd.f32 %v916_v19, %v854_v40 }
 0x1b2   : > { %v783_v44 = vadd.f32 %v782_v43, %v781_v31  ;;  %v918_v34 = vrot.slane %v917_v63, 4 }
 0x1b4   : > { %v784_v38 = vrot.slane %v783_v44, 2  ;;  %v919_v15 = vadd.f32 %v918_v34, %v917_v63 }
 0x1b6   : > { %v785_v47 = vadd.f32 %v784_v38, %v783_v44  ;;  %v920_v30 = vrot.slane %v919_v15, 2 }
 0x1b8   : > { %v786_v59 = vrot.slane %v785_v47, 1  ;;  %v921_v51 = vadd.f32 %v920_v30, %v919_v15 }
 0x1ba   : > { %v787_v26 = vadd.f32 %v786_v59, %v785_v47  ;;  %v922_v39 = vrot.slane %v921_v51, 1 }
 0x1bc   : > { %v788_v3 = vadd.f32 %v787_v26, %v718_v48  ;;  %v923_v22 = vadd.f32 %v922_v39, %v921_v51 }
 0x1be   : > { %789 = vst [vmem:[#allocation2] sm:$0x1] %v788_v3  ;;  %v924_v55 = vadd.f32 %v923_v22, %v790_v35 }
 0x1c0   : > { %925 = vst [vmem:[#allocation3] sm:$0x1] %v924_v55 }
 0x1c1 PF: > { %p926_p6 = scmp.eq.s32.totalorder %s1769_s15, 1 }
 0x1c2   : > { %v938_v44 = vld [vmem:[%s2740_s2] sm:$0x1] (%p926_p6) }
 0x1c3   : > { %930 = sbr.rel (!%p926_p6) target bundleno = 489 (0x1e9), region = 48  ;;  %v952_v59 = vld [vmem:[%s2741_s3] sm:$0x1] (%p926_p6) }
 0x1c5   : > { %v931_v23 = vld [vmem:[#allocation2] sm:$0x1] (%p926_p6) }
 0x1c6   : > { %v932_v38 = vmul.f32 (%p926_p6), 0.001953125, %v931_v23 }
 0x1c7   : > { %v933_v11 = vld [vmem:[#allocation3] sm:$0x1] (%p926_p6) }
 0x1c8   : > { %v934_v34 = vmul.f32 0.001953125, %v933_v11  ;;  %v935_v27 = vmul.f32 %v932_v38, %v932_v38 }
 0x1ca   : > { %v936_v31 = vsub.f32 %v934_v34, %v935_v27 }
 0x1cc   : > { %v937_v40 = vmax.f32 %v936_v31, 0.0 }
 0x1ce   : > { %v939_v7 = vadd.f32 1e-05, %v937_v40 }
 0x1d0   : > { %1751 = vrsqrt.f32 %v939_v7  ;;  %vm946_vm0 = vweird.f32 %v939_v7 }
 0x1d6   : > { %v1752_v26 = vpop.eup %1751 }
 0x1d7   : > { %v941_v30 = vmul.f32 %v1752_v26, %v939_v7  ;;  %vm947_vm1 = vweird.f32 %v1752_v26 }
 0x1d8   : > { %vm948_vm2 = vmor %vm946_vm0, %vm947_vm1 }
 0x1d9   : > { %v942_v43 = vmul.f32 %v1752_v26, %v941_v30 }
 0x1db   : > { %v943_v19 = vmul.f32 0.5, %v942_v43 }
 0x1dd   : > { %v944_v22 = vsub.f32 1.5, %v943_v19 }
 0x1df   : > { %v945_v63 = vmul.f32 %v1752_v26, %v944_v22 }
 0x1e1   : > { %v949_v47 = vsel %vm948_vm2, %v1752_v26, %v945_v63 }
 0x1e2   : > { %v950_v15 = vmul.f32 %v949_v47, %v938_v44 }
 0x1e4   : > { %951 = vst [vmem:[#allocation4] sm:$0x1] %v950_v15  ;;  %v953_v48 = vmul.f32 %v950_v15, %v932_v38 }
 0x1e6   : > { %v954_v51 = vsub.f32 %v952_v59, %v953_v48 }
 0x1e8   : > { %955 = vst [vmem:[#allocation5] sm:$0x1] %v954_v51 }
 0x1e9 PF: > { %p1655_p7 = scmp.ne.s32.totalorder %s1769_s15, 1 }
 0x1eb   : > { %958 = sbr.rel (%p1655_p7) target bundleno = 599 (0x257), region = 52 }
 0x1f0   : > { %v2277_v3 = vld [vmem:[#allocation4] ss:$0 sm:$0xff]  ;;  %v2279_v39 = vld [vmem:[#allocation5] ss:$0 sm:$0xff]  ;;  %vm1351_vm3 = vcmask 60416   ;;  %v2803_v35 = vld [vmem:[#allocation6_spill] sm:$0xff] }
 0x1f1   : > { %v963_v55 = vmul.f32 %v2277_v3, %v2803_v35  ;;  %v2804_v23 = vld [vmem:[#allocation8_spill] sm:$0xff]  ;;  %v2805_v34 = vld [vmem:[#allocation10_spill] sm:$0xff]  ;;  %v966_v27 = vmul.f32 %v2277_v3, %v1970_v52  ;;  %v967_v31 = vmul.f32 %v2277_v3, %v1978_v56  ;;  %v968_v40 = vmul.f32 %v2277_v3, %v1986_v60 }
 0x1f2   : > { %v964_v11 = vmul.f32 %v2277_v3, %v2804_v23  ;;  %v965_v38 = vmul.f32 %v2277_v3, %v2805_v34  ;;  %v969_v7 = vmul.f32 %v2277_v3, %v1994_v0  ;;  %v970_v26 = vmul.f32 %v2277_v3, %v2002_v4 }
 0x1f3   : > { %v1031_v30 = vadd.f32 %v2279_v39, %v963_v55  ;;  %v1034_v52 = vadd.f32 %v2279_v39, %v966_v27  ;;  %v1035_v22 = vadd.f32 %v2279_v39, %v967_v31  ;;  %v1036_v56 = vadd.f32 %v2279_v39, %v968_v40 }
 0x1f4   : > { %v1032_v43 = vadd.f32 %v2279_v39, %v964_v11  ;;  %v1033_v19 = vadd.f32 %v2279_v39, %v965_v38  ;;  %v1037_v60 = vadd.f32 %v2279_v39, %v969_v7  ;;  %v1038_v44 = vadd.f32 %v2279_v39, %v970_v26 }
 0x1f5   : > { %vm1095_vm4 = vcmp.gt.f32.partialorder %v1031_v30, 0.0  ;;  %v1159_v0 = vmul.f32 0.2, %v1031_v30  ;;  %vm1098_vm7 = vcmp.gt.f32.partialorder %v1034_v52, 0.0  ;;  %v1162_v47 = vmul.f32 0.2, %v1034_v52 }
 0x1f6   : > { %vm1096_vm5 = vcmp.gt.f32.partialorder %v1032_v43, 0.0  ;;  %v1160_v4 = vmul.f32 0.2, %v1032_v43  ;;  %vm1097_vm6 = vcmp.gt.f32.partialorder %v1033_v19, 0.0  ;;  %v1161_v63 = vmul.f32 0.2, %v1033_v19 }
 0x1f7   : > { %v1223_v15 = vsel %vm1095_vm4, %v1031_v30, %v1159_v0  ;;  %vm1099_vm8 = vcmp.gt.f32.partialorder %v1035_v22, 0.0  ;;  %v1163_v48 = vmul.f32 0.2, %v1035_v22  ;;  %v1226_v23 = vsel %vm1098_vm7, %v1034_v52, %v1162_v47 }
 0x1f8   : > { %v1224_v59 = vsel %vm1096_vm5, %v1032_v43, %v1160_v4  ;;  %v1287_v51 = vpack.c.bf16 %v1223_v15, %v1223_v15  ;;  %v1225_v55 = vsel %vm1097_vm6, %v1033_v19, %v1161_v63  ;;  %v1290_v34 = vpack.c.bf16 %v1226_v23, %v1226_v23 }
 0x1f9   : > { %v1288_v35 = vpack.c.bf16 %v1224_v59, %v1224_v59  ;;  %v1289_v11 = vpack.c.bf16 %v1225_v55, %v1225_v55  ;;  %v1227_v38 = vsel %vm1099_vm8, %v1035_v22, %v1163_v48  ;;  %vm1100_vm9 = vcmp.gt.f32.partialorder %v1036_v56, 0.0 }
 0x1fa   : > { %1352 = vst.msk [vmem:[%s2742_s4] sm:$0xf] %vm1351_vm3, %v1287_v51  ;;  %v1291_v27 = vpack.c.bf16 %v1227_v38, %v1227_v38  ;;  %v1164_v31 = vmul.f32 0.2, %v1036_v56  ;;  %vm1101_vm10 = vcmp.gt.f32.partialorder %v1037_v60, 0.0  ;;  %vm1102_vm11 = vcmp.gt.f32.partialorder %v1038_v44, 0.0 }
 0x1fb   : > { %1353 = vst.msk [vmem:[%s2742_s4 + $0x4] sm:$0xf] %vm1351_vm3, %v1288_v35  ;;  %v1165_v40 = vmul.f32 0.2, %v1037_v60  ;;  %v1166_v7 = vmul.f32 0.2, %v1038_v44  ;;  %v971_v26 = vmul.f32 %v2277_v3, %v2010_v8  ;;  %v972_v30 = vmul.f32 %v2277_v3, %v2018_v12 }
 0x1fc   : > { %1354 = vst.msk [vmem:[%s2742_s4 + $0x8] sm:$0xf] %vm1351_vm3, %v1289_v11  ;;  %v1228_v43 = vsel %vm1100_vm9, %v1036_v56, %v1164_v31  ;;  %v973_v19 = vmul.f32 %v2277_v3, %v2026_v16  ;;  %v974_v52 = vmul.f32 %v2277_v3, %v2034_v20  ;;  %v975_v22 = vmul.f32 %v2277_v3, %v2042_v24 }
 0x1fd   : > { %1355 = vst.msk [vmem:[%s2742_s4 + $0xc] sm:$0xf] %vm1351_vm3, %v1290_v34  ;;  %v1292_v8 = vpack.c.bf16 %v1228_v43, %v1228_v43  ;;  %v1229_v12 = vsel %vm1101_vm10, %v1037_v60, %v1165_v40  ;;  %v1230_v0 = vsel %vm1102_vm11, %v1038_v44, %v1166_v7  ;;  %v1039_v4 = vadd.f32 %v2279_v39, %v971_v26 }
 0x1fe   : > { %1356 = vst.msk [vmem:[%s2742_s4 + $0x10] sm:$0xf] %vm1351_vm3, %v1291_v27  ;;  %v1293_v16 = vpack.c.bf16 %v1229_v12, %v1229_v12  ;;  %v1294_v20 = vpack.c.bf16 %v1230_v0, %v1230_v0  ;;  %v1040_v56 = vadd.f32 %v2279_v39, %v972_v30  ;;  %v1041_v24 = vadd.f32 %v2279_v39, %v973_v19 }
 0x1ff   : > { %1357 = vst.msk [vmem:[%s2742_s4 + $0x14] sm:$0xf] %vm1351_vm3, %v1292_v8  ;;  %vm1103_vm12 = vcmp.gt.f32.partialorder %v1039_v4, 0.0  ;;  %v1167_v60 = vmul.f32 0.2, %v1039_v4  ;;  %v1042_v44 = vadd.f32 %v2279_v39, %v974_v52  ;;  %v1043_v63 = vadd.f32 %v2279_v39, %v975_v22 }
 0x200   : > { %1358 = vst.msk [vmem:[%s2742_s4 + $0x18] sm:$0xf] %vm1351_vm3, %v1293_v16  ;;  %vm1104_vm13 = vcmp.gt.f32.partialorder %v1040_v56, 0.0  ;;  %v1168_v47 = vmul.f32 0.2, %v1040_v56  ;;  %vm1105_vm14 = vcmp.gt.f32.partialorder %v1041_v24, 0.0  ;;  %v976_v15 = vmul.f32 %v2277_v3, %v2050_v28 }
 0x201   : > { %1359 = vst.msk [vmem:[%s2742_s4 + $0x1c] sm:$0xf] %vm1351_vm3, %v1294_v20  ;;  %v1231_v59 = vsel %vm1103_vm12, %v1039_v4, %v1167_v60  ;;  %v1169_v48 = vmul.f32 0.2, %v1041_v24  ;;  %vm1106_vm15 = vcmp.gt.f32.partialorder %v1042_v44, 0.0  ;;  %vm1107_vm0 = vcmp.gt.f32.partialorder %v1043_v63, 0.0 }
 0x202   : > { %v1295_v51 = vpack.c.bf16 %v1231_v59, %v1231_v59  ;;  %v1232_v35 = vsel %vm1104_vm13, %v1040_v56, %v1168_v47  ;;  %v1170_v55 = vmul.f32 0.2, %v1042_v44  ;;  %v1171_v23 = vmul.f32 0.2, %v1043_v63 }
 0x203   : > { %v1296_v11 = vpack.c.bf16 %v1232_v35, %v1232_v35  ;;  %v1233_v34 = vsel %vm1105_vm14, %v1041_v24, %v1169_v48  ;;  %v1044_v38 = vadd.f32 %v2279_v39, %v976_v15  ;;  %v977_v28 = vmul.f32 %v2277_v3, %v2058_v32 }
 0x204   : > { %1360 = vst.msk [vmem:[%s2742_s4 + $0x20] sm:$0xf] %vm1351_vm3, %v1295_v51  ;;  %v1297_v27 = vpack.c.bf16 %v1233_v34, %v1233_v34  ;;  %v1234_v31 = vsel %vm1106_vm15, %v1042_v44, %v1170_v55  ;;  %v1235_v40 = vsel %vm1107_vm0, %v1043_v63, %v1171_v23  ;;  %v978_v7 = vmul.f32 %v2277_v3, %v2066_v36 }
 0x205   : > { %1361 = vst.msk [vmem:[%s2742_s4 + $0x24] sm:$0xf] %vm1351_vm3, %v1296_v11  ;;  %v1298_v26 = vpack.c.bf16 %v1234_v31, %v1234_v31  ;;  %v1299_v30 = vpack.c.bf16 %v1235_v40, %v1235_v40  ;;  %vm1108_vm1 = vcmp.gt.f32.partialorder %v1044_v38, 0.0  ;;  %v1172_v32 = vmul.f32 0.2, %v1044_v38 }
 0x206   : > { %1362 = vst.msk [vmem:[%s2742_s4 + $0x28] sm:$0xf] %vm1351_vm3, %v1297_v27  ;;  %v1045_v43 = vadd.f32 %v2279_v39, %v977_v28  ;;  %v1046_v19 = vadd.f32 %v2279_v39, %v978_v7  ;;  %v979_v36 = vmul.f32 %v2277_v3, %v1948_v41  ;;  %v980_v52 = vmul.f32 %v2277_v3, %v1956_v45 }
 0x207   : > { %1363 = vst.msk [vmem:[%s2742_s4 + $0x2c] sm:$0xf] %vm1351_vm3, %v1298_v26  ;;  %v1236_v22 = vsel %vm1108_vm1, %v1044_v38, %v1172_v32  ;;  %v981_v8 = vmul.f32 %v2277_v3, %v1964_v49  ;;  %v982_v12 = vmul.f32 %v2277_v3, %v1972_v53  ;;  %v983_v0 = vmul.f32 %v2277_v3, %v1980_v57 }
 0x208   : > { %1364 = vst.msk [vmem:[%s2742_s4 + $0x30] sm:$0xf] %vm1351_vm3, %v1299_v30  ;;  %v1300_v41 = vpack.c.bf16 %v1236_v22, %v1236_v22  ;;  %vm1109_vm2 = vcmp.gt.f32.partialorder %v1045_v43, 0.0  ;;  %v1173_v45 = vmul.f32 0.2, %v1045_v43  ;;  %vm1110_vm4 = vcmp.gt.f32.partialorder %v1046_v19, 0.0 }
 0x209   : > { %v1174_v4 = vmul.f32 0.2, %v1046_v19  ;;  %v1047_v16 = vadd.f32 %v2279_v39, %v979_v36  ;;  %v1048_v49 = vadd.f32 %v2279_v39, %v980_v52  ;;  %v1049_v20 = vadd.f32 %v2279_v39, %v981_v8 }
 0x20a   : > { %1365 = vst.msk [vmem:[%s2742_s4 + $0x34] sm:$0xf] %vm1351_vm3, %v1300_v41  ;;  %v1237_v53 = vsel %vm1109_vm2, %v1045_v43, %v1173_v45  ;;  %v1050_v57 = vadd.f32 %v2279_v39, %v982_v12  ;;  %v1051_v56 = vadd.f32 %v2279_v39, %v983_v0  ;;  %v984_v24 = vmul.f32 %v2277_v3, %v1988_v61 }
 0x20b   : > { %v1301_v60 = vpack.c.bf16 %v1237_v53, %v1237_v53  ;;  %v1238_v44 = vsel %vm1110_vm4, %v1046_v19, %v1174_v4  ;;  %vm1111_vm5 = vcmp.gt.f32.partialorder %v1047_v16, 0.0  ;;  %v1175_v63 = vmul.f32 0.2, %v1047_v16 }
 0x20c   : > { %v1302_v47 = vpack.c.bf16 %v1238_v44, %v1238_v44  ;;  %vm1112_vm6 = vcmp.gt.f32.partialorder %v1048_v49, 0.0  ;;  %v1176_v15 = vmul.f32 0.2, %v1048_v49  ;;  %vm1113_vm7 = vcmp.gt.f32.partialorder %v1049_v20, 0.0 }
 0x20d   : > { %1366 = vst.msk [vmem:[%s2742_s4 + $0x38] sm:$0xf] %vm1351_vm3, %v1301_v60  ;;  %v1239_v59 = vsel %vm1111_vm5, %v1047_v16, %v1175_v63  ;;  %v1177_v48 = vmul.f32 0.2, %v1049_v20  ;;  %vm1114_vm8 = vcmp.gt.f32.partialorder %v1050_v57, 0.0  ;;  %vm1115_vm9 = vcmp.gt.f32.partialorder %v1051_v56, 0.0 }
 0x20e   : > { %1367 = vst.msk [vmem:[%s2742_s4 + $0x3c] sm:$0xf] %vm1351_vm3, %v1302_v47  ;;  %v1303_v61 = vpack.c.bf16 %v1239_v59, %v1239_v59  ;;  %v1240_v51 = vsel %vm1112_vm6, %v1048_v49, %v1176_v15  ;;  %v1178_v35 = vmul.f32 0.2, %v1050_v57  ;;  %v1179_v55 = vmul.f32 0.2, %v1051_v56 }
 0x20f   : > { %v1304_v23 = vpack.c.bf16 %v1240_v51, %v1240_v51  ;;  %v1241_v11 = vsel %vm1113_vm7, %v1049_v20, %v1177_v48  ;;  %v1052_v34 = vadd.f32 %v2279_v39, %v984_v24  ;;  %v985_v38 = vmul.f32 %v2277_v3, %v1996_v1 }
 0x210   : > { %1368 = vst.msk [vmem:[%s2742_s4 + $0x40] sm:$0xf] %vm1351_vm3, %v1303_v61  ;;  %v1305_v28 = vpack.c.bf16 %v1241_v11, %v1241_v11  ;;  %v1242_v27 = vsel %vm1114_vm8, %v1050_v57, %v1178_v35  ;;  %v1243_v31 = vsel %vm1115_vm9, %v1051_v56, %v1179_v55  ;;  %v986_v40 = vmul.f32 %v2277_v3, %v2004_v5 }
 0x211   : > { %1369 = vst.msk [vmem:[%s2742_s4 + $0x44] sm:$0xf] %vm1351_vm3, %v1304_v23  ;;  %v1306_v7 = vpack.c.bf16 %v1242_v27, %v1242_v27  ;;  %v1307_v26 = vpack.c.bf16 %v1243_v31, %v1243_v31  ;;  %vm1116_vm10 = vcmp.gt.f32.partialorder %v1052_v34, 0.0  ;;  %v1180_v1 = vmul.f32 0.2, %v1052_v34 }
 0x212   : > { %1370 = vst.msk [vmem:[%s2742_s4 + $0x48] sm:$0xf] %vm1351_vm3, %v1305_v28  ;;  %v1053_v30 = vadd.f32 %v2279_v39, %v985_v38  ;;  %v1054_v32 = vadd.f32 %v2279_v39, %v986_v40  ;;  %v987_v5 = vmul.f32 %v2277_v3, %v2012_v9  ;;  %v988_v43 = vmul.f32 %v2277_v3, %v2020_v13 }
 0x213   : > { %1371 = vst.msk [vmem:[%s2742_s4 + $0x4c] sm:$0xf] %vm1351_vm3, %v1306_v7  ;;  %v1244_v19 = vsel %vm1116_vm10, %v1052_v34, %v1180_v1  ;;  %v989_v36 = vmul.f32 %v2277_v3, %v2028_v17  ;;  %v990_v52 = vmul.f32 %v2277_v3, %v2036_v21  ;;  %v991_v22 = vmul.f32 %v2277_v3, %v2044_v25 }
 0x214   : > { %1372 = vst.msk [vmem:[%s2742_s4 + $0x50] sm:$0xf] %vm1351_vm3, %v1307_v26  ;;  %v1308_v9 = vpack.c.bf16 %v1244_v19, %v1244_v19  ;;  %vm1117_vm11 = vcmp.gt.f32.partialorder %v1053_v30, 0.0  ;;  %v1181_v13 = vmul.f32 0.2, %v1053_v30  ;;  %vm1118_vm12 = vcmp.gt.f32.partialorder %v1054_v32, 0.0 }
 0x215   : > { %v1182_v8 = vmul.f32 0.2, %v1054_v32  ;;  %v1055_v12 = vadd.f32 %v2279_v39, %v987_v5  ;;  %v1056_v17 = vadd.f32 %v2279_v39, %v988_v43  ;;  %v1057_v0 = vadd.f32 %v2279_v39, %v989_v36 }
 0x216   : > { %1373 = vst.msk [vmem:[%s2742_s4 + $0x54] sm:$0xf] %vm1351_vm3, %v1308_v9  ;;  %v1245_v21 = vsel %vm1117_vm11, %v1053_v30, %v1181_v13  ;;  %v1058_v25 = vadd.f32 %v2279_v39, %v990_v52  ;;  %v1059_v41 = vadd.f32 %v2279_v39, %v991_v22  ;;  %v992_v45 = vmul.f32 %v2277_v3, %v2052_v29 }
 0x217   : > { %v1309_v4 = vpack.c.bf16 %v1245_v21, %v1245_v21  ;;  %v1246_v16 = vsel %vm1118_vm12, %v1054_v32, %v1182_v8  ;;  %vm1119_vm13 = vcmp.gt.f32.partialorder %v1055_v12, 0.0  ;;  %v1183_v49 = vmul.f32 0.2, %v1055_v12 }
 0x218   : > { %v1310_v20 = vpack.c.bf16 %v1246_v16, %v1246_v16  ;;  %vm1120_vm14 = vcmp.gt.f32.partialorder %v1056_v17, 0.0  ;;  %v1184_v53 = vmul.f32 0.2, %v1056_v17  ;;  %vm1121_vm15 = vcmp.gt.f32.partialorder %v1057_v0, 0.0 }
 0x219   : > { %1374 = vst.msk [vmem:[%s2742_s4 + $0x58] sm:$0xf] %vm1351_vm3, %v1309_v4  ;;  %v1247_v57 = vsel %vm1119_vm13, %v1055_v12, %v1183_v49  ;;  %v1185_v56 = vmul.f32 0.2, %v1057_v0  ;;  %vm1122_vm0 = vcmp.gt.f32.partialorder %v1058_v25, 0.0  ;;  %vm1123_vm1 = vcmp.gt.f32.partialorder %v1059_v41, 0.0 }
 0x21a   : > { %1375 = vst.msk [vmem:[%s2742_s4 + $0x5c] sm:$0xf] %vm1351_vm3, %v1310_v20  ;;  %v1311_v29 = vpack.c.bf16 %v1247_v57, %v1247_v57  ;;  %v1248_v24 = vsel %vm1120_vm14, %v1056_v17, %v1184_v53  ;;  %v1186_v60 = vmul.f32 0.2, %v1058_v25  ;;  %v1187_v44 = vmul.f32 0.2, %v1059_v41 }
 0x21b   : > { %v1312_v63 = vpack.c.bf16 %v1248_v24, %v1248_v24  ;;  %v1249_v47 = vsel %vm1121_vm15, %v1057_v0, %v1185_v56  ;;  %v1060_v15 = vadd.f32 %v2279_v39, %v992_v45  ;;  %v993_v59 = vmul.f32 %v2277_v3, %v2060_v33 }
 0x21c   : > { %1376 = vst.msk [vmem:[%s2742_s4 + $0x60] sm:$0xf] %vm1351_vm3, %v1311_v29  ;;  %v1313_v48 = vpack.c.bf16 %v1249_v47, %v1249_v47  ;;  %v1250_v61 = vsel %vm1122_vm0, %v1058_v25, %v1186_v60  ;;  %v1251_v51 = vsel %vm1123_vm1, %v1059_v41, %v1187_v44  ;;  %v994_v35 = vmul.f32 %v2277_v3, %v2068_v37  ;;  %v2806_v60 = vld [vmem:[#allocation20_spill] sm:$0xff] }
 0x21d   : > { %1377 = vst.msk [vmem:[%s2742_s4 + $0x64] sm:$0xf] %vm1351_vm3, %v1312_v63  ;;  %v1314_v55 = vpack.c.bf16 %v1250_v61, %v1250_v61  ;;  %v1315_v23 = vpack.c.bf16 %v1251_v51, %v1251_v51  ;;  %vm1124_vm2 = vcmp.gt.f32.partialorder %v1060_v15, 0.0  ;;  %v1188_v33 = vmul.f32 0.2, %v1060_v15  ;;  %v2807_v63 = vld [vmem:[#allocation22_spill] sm:$0xff] }
 0x21e   : > { %1378 = vst.msk [vmem:[%s2742_s4 + $0x68] sm:$0xf] %vm1351_vm3, %v1313_v48  ;;  %v1061_v11 = vadd.f32 %v2279_v39, %v993_v59  ;;  %v1062_v34 = vadd.f32 %v2279_v39, %v994_v35  ;;  %v995_v37 = vmul.f32 %v2277_v3, %v1950_v42  ;;  %v996_v38 = vmul.f32 %v2277_v3, %v1958_v46 }
 0x21f   : > { %1379 = vst.msk [vmem:[%s2742_s4 + $0x6c] sm:$0xf] %vm1351_vm3, %v1314_v55  ;;  %v1252_v28 = vsel %vm1124_vm2, %v1060_v15, %v1188_v33  ;;  %v997_v27 = vmul.f32 %v2277_v3, %v1966_v50  ;;  %v998_v31 = vmul.f32 %v2277_v3, %v1974_v54  ;;  %v999_v40 = vmul.f32 %v2277_v3, %v1982_v58  ;;  %v2808_v55 = vld [vmem:[#allocation24_spill] sm:$0xff] }
 0x220   : > { %1380 = vst.msk [vmem:[%s2742_s4 + $0x70] sm:$0xf] %vm1351_vm3, %v1315_v23  ;;  %v1316_v42 = vpack.c.bf16 %v1252_v28, %v1252_v28  ;;  %vm1125_vm4 = vcmp.gt.f32.partialorder %v1061_v11, 0.0  ;;  %v1189_v46 = vmul.f32 0.2, %v1061_v11  ;;  %vm1126_vm5 = vcmp.gt.f32.partialorder %v1062_v34, 0.0 }
 0x221   : > { %v1190_v7 = vmul.f32 0.2, %v1062_v34  ;;  %v1063_v26 = vadd.f32 %v2279_v39, %v995_v37  ;;  %v1064_v50 = vadd.f32 %v2279_v39, %v996_v38  ;;  %v1065_v1 = vadd.f32 %v2279_v39, %v997_v27 }
 0x222   : > { %1381 = vst.msk [vmem:[%s2742_s4 + $0x74] sm:$0xf] %vm1351_vm3, %v1316_v42  ;;  %v1253_v54 = vsel %vm1125_vm4, %v1061_v11, %v1189_v46  ;;  %v1066_v58 = vadd.f32 %v2279_v39, %v998_v31  ;;  %v1067_v30 = vadd.f32 %v2279_v39, %v999_v40  ;;  %v1000_v32 = vmul.f32 %v2277_v3, %v1990_v62 }
 0x223   : > { %v1317_v5 = vpack.c.bf16 %v1253_v54, %v1253_v54  ;;  %v1254_v43 = vsel %vm1126_vm5, %v1062_v34, %v1190_v7  ;;  %vm1127_vm6 = vcmp.gt.f32.partialorder %v1063_v26, 0.0  ;;  %v1191_v19 = vmul.f32 0.2, %v1063_v26 }
 0x224   : > { %v1318_v36 = vpack.c.bf16 %v1254_v43, %v1254_v43  ;;  %vm1128_vm7 = vcmp.gt.f32.partialorder %v1064_v50, 0.0  ;;  %v1192_v52 = vmul.f32 0.2, %v1064_v50  ;;  %vm1129_vm8 = vcmp.gt.f32.partialorder %v1065_v1, 0.0 }
 0x225   : > { %1382 = vst.msk [vmem:[%s2742_s4 + $0x78] sm:$0xf] %vm1351_vm3, %v1317_v5  ;;  %v1255_v22 = vsel %vm1127_vm6, %v1063_v26, %v1191_v19  ;;  %v1193_v9 = vmul.f32 0.2, %v1065_v1  ;;  %vm1130_vm9 = vcmp.gt.f32.partialorder %v1066_v58, 0.0  ;;  %vm1131_vm10 = vcmp.gt.f32.partialorder %v1067_v30, 0.0 }
 0x226   : > { %1383 = vst.msk [vmem:[%s2742_s4 + $0x7c] sm:$0xf] %vm1351_vm3, %v1318_v36  ;;  %v1319_v62 = vpack.c.bf16 %v1255_v22, %v1255_v22  ;;  %v1256_v13 = vsel %vm1128_vm7, %v1064_v50, %v1192_v52  ;;  %v1194_v8 = vmul.f32 0.2, %v1066_v58  ;;  %v1195_v12 = vmul.f32 0.2, %v1067_v30 }
 0x227   : > { %v1320_v17 = vpack.c.bf16 %v1256_v13, %v1256_v13  ;;  %v1257_v0 = vsel %vm1129_vm8, %v1065_v1, %v1193_v9  ;;  %v1068_v21 = vadd.f32 %v2279_v39, %v1000_v32  ;;  %v1001_v25 = vmul.f32 %v2277_v3, %v1998_v2  ;;  %v2809_v1 = vld [vmem:[#allocation26_spill] sm:$0xff]  ;;  %v2810_v5 = vld [vmem:[#allocation28_spill] sm:$0xff] }
 0x228   : > { %1384 = vst.msk [vmem:[%s2742_s4 + $0x80] sm:$0xf] %vm1351_vm3, %v1319_v62  ;;  %v1321_v41 = vpack.c.bf16 %v1257_v0, %v1257_v0  ;;  %v1258_v45 = vsel %vm1130_vm9, %v1066_v58, %v1194_v8  ;;  %v1259_v4 = vsel %vm1131_vm10, %v1067_v30, %v1195_v12  ;;  %v1002_v16 = vmul.f32 %v2277_v3, %v2006_v6  ;;  %v2811_v62 = vld [vmem:[#allocation7_spill] sm:$0xff]  ;;  %v2812_v8 = vld [vmem:[#allocation9_spill] sm:$0xff] }
 0x229   : > { %1385 = vst.msk [vmem:[%s2742_s4 + $0x84] sm:$0xf] %vm1351_vm3, %v1320_v17  ;;  %v1322_v49 = vpack.c.bf16 %v1258_v45, %v1258_v45  ;;  %v1323_v20 = vpack.c.bf16 %v1259_v4, %v1259_v4  ;;  %vm1132_vm11 = vcmp.gt.f32.partialorder %v1068_v21, 0.0  ;;  %v1196_v2 = vmul.f32 0.2, %v1068_v21  ;;  %v2813_v0 = vld [vmem:[#allocation11_spill] sm:$0xff] }
 0x22a   : > { %1386 = vst.msk [vmem:[%s2742_s4 + $0x88] sm:$0xf] %vm1351_vm3, %v1321_v41  ;;  %v1069_v53 = vadd.f32 %v2279_v39, %v1001_v25  ;;  %v1070_v57 = vadd.f32 %v2279_v39, %v1002_v16  ;;  %v1003_v6 = vmul.f32 %v2277_v3, %v2014_v10  ;;  %v1004_v56 = vmul.f32 %v2277_v3, %v2022_v14  ;;  %v2814_v25 = vld [vmem:[#allocation12_spill] sm:$0xff]  ;;  %v2815_v45 = vld [vmem:[#allocation13_spill] sm:$0xff] }
 0x22b   : > { %1387 = vst.msk [vmem:[%s2742_s4 + $0x8c] sm:$0xf] %vm1351_vm3, %v1322_v49  ;;  %v1260_v29 = vsel %vm1132_vm11, %v1068_v21, %v1196_v2  ;;  %v1005_v24 = vmul.f32 %v2277_v3, %v2030_v18  ;;  %v1006_v44 = vmul.f32 %v2277_v3, %v2806_v60  ;;  %v1007_v47 = vmul.f32 %v2277_v3, %v2807_v63 }
 0x22c   : > { %1388 = vst.msk [vmem:[%s2742_s4 + $0x90] sm:$0xf] %vm1351_vm3, %v1323_v20  ;;  %v1324_v10 = vpack.c.bf16 %v1260_v29, %v1260_v29  ;;  %vm1133_vm12 = vcmp.gt.f32.partialorder %v1069_v53, 0.0  ;;  %v1197_v14 = vmul.f32 0.2, %v1069_v53  ;;  %vm1134_vm13 = vcmp.gt.f32.partialorder %v1070_v57, 0.0 }
 0x22d   : > { %v1198_v15 = vmul.f32 0.2, %v1070_v57  ;;  %v1071_v59 = vadd.f32 %v2279_v39, %v1003_v6  ;;  %v1072_v18 = vadd.f32 %v2279_v39, %v1004_v56  ;;  %v1073_v48 = vadd.f32 %v2279_v39, %v1005_v24  ;;  %v2816_v24 = vld [vmem:[#allocation14_spill] sm:$0xff] }
 0x22e   : > { %1389 = vst.msk [vmem:[%s2742_s4 + $0x94] sm:$0xf] %vm1351_vm3, %v1324_v10  ;;  %v1261_v61 = vsel %vm1133_vm12, %v1069_v53, %v1197_v14  ;;  %v1074_v51 = vadd.f32 %v2279_v39, %v1006_v44  ;;  %v1075_v35 = vadd.f32 %v2279_v39, %v1007_v47  ;;  %v1008_v23 = vmul.f32 %v2277_v3, %v2808_v55 }
 0x22f   : > { %v1325_v33 = vpack.c.bf16 %v1261_v61, %v1261_v61  ;;  %v1262_v11 = vsel %vm1134_vm13, %v1070_v57, %v1198_v15  ;;  %vm1135_vm14 = vcmp.gt.f32.partialorder %v1071_v59, 0.0  ;;  %v1199_v34 = vmul.f32 0.2, %v1071_v59 }
 0x230   : > { %v1326_v37 = vpack.c.bf16 %v1262_v11, %v1262_v11  ;;  %vm1136_vm15 = vcmp.gt.f32.partialorder %v1072_v18, 0.0  ;;  %v1200_v38 = vmul.f32 0.2, %v1072_v18  ;;  %vm1137_vm0 = vcmp.gt.f32.partialorder %v1073_v48, 0.0 }
 0x231   : > { %1390 = vst.msk [vmem:[%s2742_s4 + $0x98] sm:$0xf] %vm1351_vm3, %v1325_v33  ;;  %v1263_v28 = vsel %vm1135_vm14, %v1071_v59, %v1199_v34  ;;  %v1201_v27 = vmul.f32 0.2, %v1073_v48  ;;  %vm1138_vm1 = vcmp.gt.f32.partialorder %v1074_v51, 0.0  ;;  %vm1139_vm2 = vcmp.gt.f32.partialorder %v1075_v35, 0.0 }
 0x232   : > { %1391 = vst.msk [vmem:[%s2742_s4 + $0x9c] sm:$0xf] %vm1351_vm3, %v1326_v37  ;;  %v1327_v31 = vpack.c.bf16 %v1263_v28, %v1263_v28  ;;  %v1264_v40 = vsel %vm1136_vm15, %v1072_v18, %v1200_v38  ;;  %v1202_v42 = vmul.f32 0.2, %v1074_v51  ;;  %v1203_v46 = vmul.f32 0.2, %v1075_v35 }
 0x233   : > { %v1328_v7 = vpack.c.bf16 %v1264_v40, %v1264_v40  ;;  %v1265_v26 = vsel %vm1137_vm0, %v1073_v48, %v1201_v27  ;;  %v1076_v50 = vadd.f32 %v2279_v39, %v1008_v23  ;;  %v1009_v54 = vmul.f32 %v2277_v3, %v2809_v1  ;;  %v2817_v33 = vld [vmem:[#allocation15_spill] sm:$0xff]  ;;  %v2818_v28 = vld [vmem:[#allocation16_spill] sm:$0xff]  ;;  %v2820_v1 = vld [vmem:[#allocation18_spill] sm:$0xff] }
 0x234   : > { %1392 = vst.msk [vmem:[%s2742_s4 + $0xa0] sm:$0xf] %vm1351_vm3, %v1327_v31  ;;  %v1329_v58 = vpack.c.bf16 %v1265_v26, %v1265_v26  ;;  %v1266_v30 = vsel %vm1138_vm1, %v1074_v51, %v1202_v42  ;;  %v1267_v32 = vsel %vm1139_vm2, %v1075_v35, %v1203_v46  ;;  %v1010_v43 = vmul.f32 %v2277_v3, %v2810_v5  ;;  %v2819_v26 = vld [vmem:[#allocation17_spill] sm:$0xff] }
 0x235   : > { %1393 = vst.msk [vmem:[%s2742_s4 + $0xa4] sm:$0xf] %vm1351_vm3, %v1328_v7  ;;  %v1330_v19 = vpack.c.bf16 %v1266_v30, %v1266_v30  ;;  %v1331_v36 = vpack.c.bf16 %v1267_v32, %v1267_v32  ;;  %vm1140_vm4 = vcmp.gt.f32.partialorder %v1076_v50, 0.0  ;;  %v1204_v52 = vmul.f32 0.2, %v1076_v50  ;;  %v2821_v30 = vld [vmem:[#allocation19_spill] sm:$0xff] }
 0x236   : > { %1394 = vst.msk [vmem:[%s2742_s4 + $0xa8] sm:$0xf] %vm1351_vm3, %v1329_v58  ;;  %v1077_v22 = vadd.f32 %v2279_v39, %v1009_v54  ;;  %v1078_v9 = vadd.f32 %v2279_v39, %v1010_v43  ;;  %v1011_v13 = vmul.f32 %v2277_v3, %v2811_v62  ;;  %v1012_v12 = vmul.f32 %v2277_v3, %v2812_v8  ;;  %v2822_v5 = vld [vmem:[#allocation21_spill] sm:$0xff] }
 0x237   : > { %1395 = vst.msk [vmem:[%s2742_s4 + $0xac] sm:$0xf] %vm1351_vm3, %v1330_v19  ;;  %v1268_v17 = vsel %vm1140_vm4, %v1076_v50, %v1204_v52  ;;  %v1013_v21 = vmul.f32 %v2277_v3, %v2813_v0  ;;  %v1014_v41 = vmul.f32 %v2277_v3, %v2814_v25  ;;  %v1015_v4 = vmul.f32 %v2277_v3, %v2815_v45  ;;  %v2823_v19 = vld [vmem:[#allocation23_spill] sm:$0xff] }
 0x238   : > { %1396 = vst.msk [vmem:[%s2742_s4 + $0xb0] sm:$0xf] %vm1351_vm3, %v1331_v36  ;;  %v1332_v16 = vpack.c.bf16 %v1268_v17, %v1268_v17  ;;  %vm1141_vm5 = vcmp.gt.f32.partialorder %v1077_v22, 0.0  ;;  %v1205_v49 = vmul.f32 0.2, %v1077_v22  ;;  %vm1142_vm6 = vcmp.gt.f32.partialorder %v1078_v9, 0.0 }
 0x239   : > { %v1206_v20 = vmul.f32 0.2, %v1078_v9  ;;  %v1079_v2 = vadd.f32 %v2279_v39, %v1011_v13  ;;  %v1080_v53 = vadd.f32 %v2279_v39, %v1012_v12  ;;  %v1081_v57 = vadd.f32 %v2279_v39, %v1013_v21  ;;  %v2824_v21 = vld [vmem:[#allocation25_spill] sm:$0xff] }
 0x23a   : > { %1397 = vst.msk [vmem:[%s2742_s4 + $0xb4] sm:$0xf] %vm1351_vm3, %v1332_v16  ;;  %v1269_v6 = vsel %vm1141_vm5, %v1077_v22, %v1205_v49  ;;  %v1082_v56 = vadd.f32 %v2279_v39, %v1014_v41  ;;  %v1083_v29 = vadd.f32 %v2279_v39, %v1015_v4  ;;  %v1016_v60 = vmul.f32 %v2277_v3, %v2816_v24 }
 0x23b   : > { %v1333_v44 = vpack.c.bf16 %v1269_v6, %v1269_v6  ;;  %v1270_v63 = vsel %vm1142_vm6, %v1078_v9, %v1206_v20  ;;  %vm1143_vm7 = vcmp.gt.f32.partialorder %v1079_v2, 0.0  ;;  %v1207_v47 = vmul.f32 0.2, %v1079_v2 }
 0x23c   : > { %v1334_v10 = vpack.c.bf16 %v1270_v63, %v1270_v63  ;;  %vm1144_vm8 = vcmp.gt.f32.partialorder %v1080_v53, 0.0  ;;  %v1208_v14 = vmul.f32 0.2, %v1080_v53  ;;  %vm1145_vm9 = vcmp.gt.f32.partialorder %v1081_v57, 0.0 }
 0x23d   : > { %1398 = vst.msk [vmem:[%s2742_s4 + $0xb8] sm:$0xf] %vm1351_vm3, %v1333_v44  ;;  %v1271_v15 = vsel %vm1143_vm7, %v1079_v2, %v1207_v47  ;;  %v1209_v59 = vmul.f32 0.2, %v1081_v57  ;;  %vm1146_vm10 = vcmp.gt.f32.partialorder %v1082_v56, 0.0  ;;  %vm1147_vm11 = vcmp.gt.f32.partialorder %v1083_v29, 0.0 }
 0x23e   : > { %1399 = vst.msk [vmem:[%s2742_s4 + $0xbc] sm:$0xf] %vm1351_vm3, %v1334_v10  ;;  %v1335_v18 = vpack.c.bf16 %v1271_v15, %v1271_v15  ;;  %v1272_v48 = vsel %vm1144_vm8, %v1080_v53, %v1208_v14  ;;  %v1210_v61 = vmul.f32 0.2, %v1082_v56  ;;  %v1211_v51 = vmul.f32 0.2, %v1083_v29 }
 0x23f   : > { %v1336_v35 = vpack.c.bf16 %v1272_v48, %v1272_v48  ;;  %v1273_v55 = vsel %vm1145_vm9, %v1081_v57, %v1209_v59  ;;  %v1084_v23 = vadd.f32 %v2279_v39, %v1016_v60  ;;  %v1017_v11 = vmul.f32 %v2277_v3, %v2817_v33  ;;  %v2825_v44 = vld [vmem:[#allocation27_spill] sm:$0xff]  ;;  %v2826_v15 = vld [vmem:[#allocation29_spill] sm:$0xff] }
 0x240   : > { %1400 = vst.msk [vmem:[%s2742_s4 + $0xc0] sm:$0xf] %vm1351_vm3, %v1335_v18  ;;  %v1337_v34 = vpack.c.bf16 %v1273_v55, %v1273_v55  ;;  %v1274_v37 = vsel %vm1146_vm10, %v1082_v56, %v1210_v61  ;;  %v1275_v38 = vsel %vm1147_vm11, %v1083_v29, %v1211_v51  ;;  %v1018_v27 = vmul.f32 %v2277_v3, %v2818_v28 }
 0x241   : > { %1401 = vst.msk [vmem:[%s2742_s4 + $0xc4] sm:$0xf] %vm1351_vm3, %v1336_v35  ;;  %v1338_v31 = vpack.c.bf16 %v1274_v37, %v1274_v37  ;;  %v1339_v40 = vpack.c.bf16 %v1275_v38, %v1275_v38  ;;  %vm1148_vm12 = vcmp.gt.f32.partialorder %v1084_v23, 0.0  ;;  %v1212_v42 = vmul.f32 0.2, %v1084_v23 }
 0x242   : > { %1402 = vst.msk [vmem:[%s2742_s4 + $0xc8] sm:$0xf] %vm1351_vm3, %v1337_v34  ;;  %v1085_v46 = vadd.f32 %v2279_v39, %v1017_v11  ;;  %v1086_v7 = vadd.f32 %v2279_v39, %v1018_v27  ;;  %v1019_v50 = vmul.f32 %v2277_v3, %v2819_v26  ;;  %v1020_v54 = vmul.f32 %v2277_v3, %v2820_v1 }
 0x243   : > { %1403 = vst.msk [vmem:[%s2742_s4 + $0xcc] sm:$0xf] %vm1351_vm3, %v1338_v31  ;;  %v1276_v58 = vsel %vm1148_vm12, %v1084_v23, %v1212_v42  ;;  %v1021_v32 = vmul.f32 %v2277_v3, %v2821_v30  ;;  %v1022_v43 = vmul.f32 %v2277_v3, %v2822_v5  ;;  %v1023_v36 = vmul.f32 %v2277_v3, %v2823_v19 }
 0x244   : > { %1404 = vst.msk [vmem:[%s2742_s4 + $0xd0] sm:$0xf] %vm1351_vm3, %v1339_v40  ;;  %v1340_v52 = vpack.c.bf16 %v1276_v58, %v1276_v58  ;;  %vm1149_vm13 = vcmp.gt.f32.partialorder %v1085_v46, 0.0  ;;  %v1213_v22 = vmul.f32 0.2, %v1085_v46  ;;  %vm1150_vm14 = vcmp.gt.f32.partialorder %v1086_v7, 0.0 }
 0x245   : > { %v1214_v9 = vmul.f32 0.2, %v1086_v7  ;;  %v1087_v62 = vadd.f32 %v2279_v39, %v1019_v50  ;;  %v1088_v13 = vadd.f32 %v2279_v39, %v1020_v54  ;;  %v1089_v8 = vadd.f32 %v2279_v39, %v1021_v32 }
 0x246   : > { %1405 = vst.msk [vmem:[%s2742_s4 + $0xd4] sm:$0xf] %vm1351_vm3, %v1340_v52  ;;  %v1277_v12 = vsel %vm1149_vm13, %v1085_v46, %v1213_v22  ;;  %v1090_v17 = vadd.f32 %v2279_v39, %v1022_v43  ;;  %v1091_v0 = vadd.f32 %v2279_v39, %v1023_v36  ;;  %v1024_v25 = vmul.f32 %v2277_v3, %v2824_v21 }
 0x247   : > { %v1341_v41 = vpack.c.bf16 %v1277_v12, %v1277_v12  ;;  %v1278_v45 = vsel %vm1150_vm14, %v1086_v7, %v1214_v9  ;;  %vm1151_vm15 = vcmp.gt.f32.partialorder %v1087_v62, 0.0  ;;  %v1215_v4 = vmul.f32 0.2, %v1087_v62 }
 0x248   : > { %v1342_v16 = vpack.c.bf16 %v1278_v45, %v1278_v45  ;;  %vm1152_vm0 = vcmp.gt.f32.partialorder %v1088_v13, 0.0  ;;  %v1216_v49 = vmul.f32 0.2, %v1088_v13  ;;  %vm1153_vm1 = vcmp.gt.f32.partialorder %v1089_v8, 0.0 }
 0x249   : > { %1406 = vst.msk [vmem:[%s2742_s4 + $0xd8] sm:$0xf] %vm1351_vm3, %v1341_v41  ;;  %v1279_v20 = vsel %vm1151_vm15, %v1087_v62, %v1215_v4  ;;  %v1217_v2 = vmul.f32 0.2, %v1089_v8  ;;  %vm1154_vm2 = vcmp.gt.f32.partialorder %v1090_v17, 0.0  ;;  %vm1155_vm4 = vcmp.gt.f32.partialorder %v1091_v0, 0.0 }
 0x24a   : > { %1407 = vst.msk [vmem:[%s2742_s4 + $0xdc] sm:$0xf] %vm1351_vm3, %v1342_v16  ;;  %v1343_v53 = vpack.c.bf16 %v1279_v20, %v1279_v20  ;;  %v1280_v57 = vsel %vm1152_vm0, %v1088_v13, %v1216_v49  ;;  %v1218_v6 = vmul.f32 0.2, %v1090_v17  ;;  %v1219_v56 = vmul.f32 0.2, %v1091_v0 }
 0x24b   : > { %v1344_v29 = vpack.c.bf16 %v1280_v57, %v1280_v57  ;;  %v1281_v24 = vsel %vm1153_vm1, %v1089_v8, %v1217_v2  ;;  %v1092_v60 = vadd.f32 %v2279_v39, %v1024_v25  ;;  %v1025_v63 = vmul.f32 %v2277_v3, %v2825_v44 }
 0x24c   : > { %1408 = vst.msk [vmem:[%s2742_s4 + $0xe0] sm:$0xf] %vm1351_vm3, %v1343_v53  ;;  %v1345_v47 = vpack.c.bf16 %v1281_v24, %v1281_v24  ;;  %v1282_v10 = vsel %vm1154_vm2, %v1090_v17, %v1218_v6  ;;  %v1283_v14 = vsel %vm1155_vm4, %v1091_v0, %v1219_v56  ;;  %v1026_v59 = vmul.f32 %v2277_v3, %v2826_v15 }
 0x24d   : > { %1409 = vst.msk [vmem:[%s2742_s4 + $0xe4] sm:$0xf] %vm1351_vm3, %v1344_v29  ;;  %v1346_v18 = vpack.c.bf16 %v1282_v10, %v1282_v10  ;;  %v1347_v48 = vpack.c.bf16 %v1283_v14, %v1283_v14  ;;  %vm1156_vm5 = vcmp.gt.f32.partialorder %v1092_v60, 0.0  ;;  %v1220_v61 = vmul.f32 0.2, %v1092_v60 }
 0x24e   : > { %1410 = vst.msk [vmem:[%s2742_s4 + $0xe8] sm:$0xf] %vm1351_vm3, %v1345_v47  ;;  %v1093_v51 = vadd.f32 %v2279_v39, %v1025_v63  ;;  %v1094_v35 = vadd.f32 %v2279_v39, %v1026_v59 }
 0x24f   : > { %1411 = vst.msk [vmem:[%s2742_s4 + $0xec] sm:$0xf] %vm1351_vm3, %v1346_v18  ;;  %v1284_v3 = vsel %vm1156_vm5, %v1092_v60, %v1220_v61 }
 0x250   : > { %1412 = vst.msk [vmem:[%s2742_s4 + $0xf0] sm:$0xf] %vm1351_vm3, %v1347_v48  ;;  %v1348_v55 = vpack.c.bf16 %v1284_v3, %v1284_v3  ;;  %vm1157_vm6 = vcmp.gt.f32.partialorder %v1093_v51, 0.0  ;;  %v1221_v23 = vmul.f32 0.2, %v1093_v51  ;;  %vm1158_vm7 = vcmp.gt.f32.partialorder %v1094_v35, 0.0 }
 0x251   : > { %v1222_v33 = vmul.f32 0.2, %v1094_v35 }
 0x252   : > { %1413 = vst.msk [vmem:[%s2742_s4 + $0xf4] sm:$0xf] %vm1351_vm3, %v1348_v55  ;;  %v1285_v39 = vsel %vm1157_vm6, %v1093_v51, %v1221_v23 }
 0x253   : > { %v1349_v11 = vpack.c.bf16 %v1285_v39, %v1285_v39  ;;  %v1286_v34 = vsel %vm1158_vm7, %v1094_v35, %v1222_v33 }
 0x254   : > { %v1350_v37 = vpack.c.bf16 %v1286_v34, %v1286_v34 }
 0x255   : > { %1414 = vst.msk [vmem:[%s2742_s4 + $0xf8] sm:$0xf] %vm1351_vm3, %v1349_v11 }
 0x256   : > { %1415 = vst.msk [vmem:[%s2742_s4 + $0xfc] sm:$0xf] %vm1351_vm3, %v1350_v37 }
 0x257 PF: > { %s14_s17 = sadd.s32 1, %s1777_s17   ;;  %s2827_s15 = smov %s1773_s16 }
 0x258   : > { %p11_p8 = scmp.ge.s32.totalorder %s14_s17, 4   ;;  %s2828_s16 = smov %s2830_s18 }
 0x25a   :  { %13 = sbr.rel (!%p11_p8) target bundleno = 2 (0x2), region = 82 }

// kernel: discriminator_forward.4
= control target key start
LH: loop header
LB: loop body
LE: loop exit
PB: predicated region body
PF: predicated region fallthrough
CT: control target
= control target key end

     0   :  { %s893_s15 = smov 0   ;;  %s895_s16 = smov 0   ;;  %s1178_s0 = inlined_call_operand.vmem [shape: bf16[128,128], index: 0, kind: input, shape index: {}]   ;;  %s1179_s1 = inlined_call_operand.vmem [shape: bf16[128,128], index: 1, kind: input, shape index: {}]   ;;  %s1180_s2 = inlined_call_operand.vmem [shape: f32[1,128], index: 2, kind: input, shape index: {}]   ;;  %s1181_s3 = inlined_call_operand.vmem [shape: f32[1,128], index: 3, kind: input, shape index: {}]   ;;  %s1182_s4 = inlined_call_operand.vmem [shape: bf16[128,16], index: 4, kind: output, shape index: {}]  }
   0x1   :  { %s897_s17 = smov 0  }
   0x2 LB: > { %s26_s18 = sadd.s32 1, %s861_s16  ;;  %p699_p0 = scmp.ge.s32.totalorder %s865_s17, 1  ;;  %s865_s17 = sphi %s897_s17, %s14_s17   ;;  %s861_s16 = sphi %s895_s16, %s1184_s16   ;;  %s857_s15 = sphi %s893_s15, %s1183_s15  }
   0x3   : > { %p28_p1 = scmp.ge.s32.totalorder %s26_s18, 2  ;;  %p177_p2 = scmp.lt.s32.totalorder %s865_s17, 3 }
   0x5   : > { %s1186_s18 = smov (%p28_p1, %s26_s18), 0  ;;  %p178_p3 = pnand %p699_p0, %p177_p2 }
   0x6   : > { %p395_p4 = scmp.eq.s32.totalorder (!%p178_p3), %s857_s15, 0 }
   0x7   : > { %181 = sbr.rel (%p178_p3) target bundleno = 333 (0x14d), region = 36 }
   0xc   : > { %v787_v0 = vld [vmem:[%s1179_s1 + $0x38] sm:$0xff]  ;;  %v786_v1 = vld [vmem:[%s1179_s1 + $0x30] sm:$0xff]  ;;  %v785_v2 = vld [vmem:[%s1179_s1 + $0x28] sm:$0xff]  ;;  %v867_v32 = vmov (%p395_p4), 0.0  }
   0xd   : > { %346 = vmatpush.bf16.msra.mxu0 %v787_v0  ;;  %790 = vmatpush.bf16.msra.mxu1 %v787_v0  ;;  %v784_v3 = vld [vmem:[%s1179_s1 + $0x20] sm:$0xff]  ;;  %v783_v4 = vld [vmem:[%s1179_s1 + $0x18] sm:$0xff]  ;;  %v782_v5 = vld [vmem:[%s1179_s1 + $0x10] sm:$0xff]  ;;  %401 = vst [vmem:[#allocation2] sm:$0x1] (%p395_p4), %v867_v32 }
   0xe   : > { %791 = vmatpush.bf16.msra.mxu2 %v787_v0  ;;  %792 = vmatpush.bf16.msra.mxu3 %v787_v0  ;;  %v781_v6 = vld [vmem:[%s1179_s1 + $0x8] sm:$0xff]  ;;  %v780_v7 = vld [vmem:[%s1179_s1] sm:$0xff]  ;;  %v774_v9 = vld [vmem:[%s1178_s0 + $0x10] sm:$0xff]  ;;  %402 = vst [vmem:[#allocation3] sm:$0x1] (%p395_p4), %v867_v32 }
   0xf   : > { %v772_v8 = vld [vmem:[%s1178_s0] sm:$0xff]  ;;  %v778_v11 = vld [vmem:[%s1178_s0 + $0x30] sm:$0xff]  ;;  %v773_v12 = vld [vmem:[%s1178_s0 + $0x8] sm:$0xff] }
  0x10   : > { %v776_v10 = vld [vmem:[%s1178_s0 + $0x20] sm:$0xff]  ;;  %v775_v13 = vld [vmem:[%s1178_s0 + $0x18] sm:$0xff]  ;;  %v777_v14 = vld [vmem:[%s1178_s0 + $0x28] sm:$0xff] }
  0x11   : > { %347 = vmatpush.bf16.msra.mxu0 %v786_v1  ;;  %793 = vmatpush.bf16.msra.mxu1 %v786_v1  ;;  %v779_v15 = vld [vmem:[%s1178_s0 + $0x38] sm:$0xff] }
  0x12   : > { %794 = vmatpush.bf16.msra.mxu2 %v786_v1  ;;  %795 = vmatpush.bf16.msra.mxu3 %v786_v1 }
  0x15   : > { %348 = vmatpush.bf16.msra.mxu0 %v785_v2  ;;  %796 = vmatpush.bf16.msra.mxu1 %v785_v2 }
  0x16   : > { %797 = vmatpush.bf16.msra.mxu2 %v785_v2  ;;  %798 = vmatpush.bf16.msra.mxu3 %v785_v2 }
  0x19   : > { %349 = vmatpush.bf16.msra.mxu0 %v784_v3  ;;  %799 = vmatpush.bf16.msra.mxu1 %v784_v3 }
  0x1a   : > { %800 = vmatpush.bf16.msra.mxu2 %v784_v3  ;;  %801 = vmatpush.bf16.msra.mxu3 %v784_v3 }
  0x1d   : > { %350 = vmatpush.bf16.msra.mxu0 %v783_v4  ;;  %802 = vmatpush.bf16.msra.mxu1 %v783_v4 }
  0x1e   : > { %803 = vmatpush.bf16.msra.mxu2 %v783_v4  ;;  %804 = vmatpush.bf16.msra.mxu3 %v783_v4 }
  0x21   : > { %351 = vmatpush.bf16.msra.mxu0 %v782_v5  ;;  %805 = vmatpush.bf16.msra.mxu1 %v782_v5 }
  0x22   : > { %806 = vmatpush.bf16.msra.mxu2 %v782_v5  ;;  %807 = vmatpush.bf16.msra.mxu3 %v782_v5 }
  0x25   : > { %352 = vmatpush.bf16.msra.mxu0 %v781_v6  ;;  %808 = vmatpush.bf16.msra.mxu1 %v781_v6 }
  0x26   : > { %809 = vmatpush.bf16.msra.mxu2 %v781_v6  ;;  %810 = vmatpush.bf16.msra.mxu3 %v781_v6 }
  0x29   : > { %353 = vmatpush.bf16.msra.mxu0 %v780_v7  ;;  %811 = vmatpush.bf16.msra.mxu1 %v780_v7 }
  0x2a   : > { %812 = vmatpush.bf16.msra.mxu2 %v780_v7  ;;  %813 = vmatpush.bf16.msra.mxu3 %v780_v7 }
  0x2c   : > { %354 = vmatmul.bf16.vlgmr.msra.gmra.mxu0 %v772_v8  ;;  %364 = vmatmul.bf16.vlgmr.msra.gmra.mxu1 %v774_v9 }
  0x2d   : > { %374 = vmatmul.bf16.vlgmr.msra.gmra.mxu2 %v776_v10  ;;  %384 = vmatmul.bf16.vlgmr.msra.gmra.mxu3 %v778_v11 }
  0x3c   : > { %359 = vmatmul.bf16.gmra.mxu0 %v773_v12  ;;  %369 = vmatmul.bf16.gmra.mxu1 %v775_v13 }
  0x3d   : > { %379 = vmatmul.bf16.gmra.mxu2 %v777_v14  ;;  %389 = vmatmul.bf16.gmra.mxu3 %v779_v15 }
  0xa9   : > { %v962_v16 = vpop.f32.mrf.mxu0  ;;  %v964_v17 = vpop.f32.mrf.mxu1 }
  0xb0   : > { %v966_v18 = vpop.f32.mrf.mxu2  ;;  %v968_v19 = vpop.f32.mrf.mxu3 }
  0xb1   : > { %v970_v20 = vpop.f32.mrf.mxu0  ;;  %v972_v21 = vpop.f32.mrf.mxu1 }
  0xb8   : > { %v974_v22 = vpop.f32.mrf.mxu2  ;;  %v976_v23 = vpop.f32.mrf.mxu3 }
  0xb9   : > { %v978_v24 = vpop.f32.mrf.mxu0  ;;  %v980_v25 = vpop.f32.mrf.mxu1 }
  0xc0   : > { %v982_v26 = vpop.f32.mrf.mxu2  ;;  %v984_v27 = vpop.f32.mrf.mxu3 }
  0xc1   : > { %v986_v28 = vpop.f32.mrf.mxu0  ;;  %v988_v29 = vpop.f32.mrf.mxu1 }
  0xc4   : > { %400 = sbr.rel (!%p395_p4) target bundleno = 201 (0xc9), region = 40 }
  0xc8   : > { %v990_v30 = vpop.f32.mrf.mxu2  ;;  %v992_v31 = vpop.f32.mrf.mxu3 }
  0xc9 PF: > { %p765_p5 = scmp.ne.s32.totalorder %s857_s15, 0 }
  0xcb   : > { %405 = sbr.rel (%p765_p5) target bundleno = 255 (0xff), region = 44 }
  0xd0   : > { %v407_v33 = vadd.f32 %v970_v20, %v962_v16  ;;  %v431_v34 = vmul.f32 %v962_v16, %v962_v16  ;;  %v432_v35 = vmul.f32 %v970_v20, %v970_v20  ;;  %v433_v37 = vmul.f32 %v978_v24, %v978_v24 }
  0xd1   : > { %v434_v39 = vmul.f32 %v986_v28, %v986_v28  ;;  %v435_v42 = vmul.f32 %v964_v17, %v964_v17  ;;  %v436_v45 = vmul.f32 %v972_v21, %v972_v21  ;;  %v437_v48 = vmul.f32 %v980_v25, %v980_v25 }
  0xd2   : > { %v408_v36 = vadd.f32 %v407_v33, %v978_v24  ;;  %v447_v40 = vadd.f32 %v432_v35, %v431_v34  ;;  %v438_v51 = vmul.f32 %v988_v29, %v988_v29  ;;  %v439_v54 = vmul.f32 %v966_v18, %v966_v18 }
  0xd3   : > { %v440_v57 = vmul.f32 %v974_v22, %v974_v22  ;;  %v441_v60 = vmul.f32 %v982_v26, %v982_v26  ;;  %v442_v63 = vmul.f32 %v990_v30, %v990_v30  ;;  %v443_v2 = vmul.f32 %v968_v19, %v968_v19 }
  0xd4   : > { %v409_v38 = vadd.f32 %v408_v36, %v986_v28  ;;  %v448_v43 = vadd.f32 %v447_v40, %v433_v37  ;;  %v444_v5 = vmul.f32 %v976_v23, %v976_v23  ;;  %v445_v8 = vmul.f32 %v984_v27, %v984_v27 }
  0xd5   : > { %v446_v11 = vmul.f32 %v992_v31, %v992_v31 }
  0xd6   : > { %v410_v41 = vadd.f32 %v409_v38, %v964_v17  ;;  %v449_v46 = vadd.f32 %v448_v43, %v434_v39  ;;  %v406_v39 = vld [vmem:[#allocation2] sm:$0x1] }
  0xd8   : > { %v411_v44 = vadd.f32 %v410_v41, %v972_v21  ;;  %v450_v49 = vadd.f32 %v449_v46, %v435_v42 }
  0xda   : > { %v412_v47 = vadd.f32 %v411_v44, %v980_v25  ;;  %v451_v52 = vadd.f32 %v450_v49, %v436_v45  ;;  %v430_v44 = vld [vmem:[#allocation3] sm:$0x1] }
  0xdc   : > { %v413_v50 = vadd.f32 %v412_v47, %v988_v29  ;;  %v452_v55 = vadd.f32 %v451_v52, %v437_v48 }
  0xde   : > { %v414_v53 = vadd.f32 %v413_v50, %v966_v18  ;;  %v453_v58 = vadd.f32 %v452_v55, %v438_v51 }
  0xe0   : > { %v415_v56 = vadd.f32 %v414_v53, %v974_v22  ;;  %v454_v61 = vadd.f32 %v453_v58, %v439_v54 }
  0xe2   : > { %v416_v59 = vadd.f32 %v415_v56, %v982_v26  ;;  %v455_v0 = vadd.f32 %v454_v61, %v440_v57 }
  0xe4   : > { %v417_v62 = vadd.f32 %v416_v59, %v990_v30  ;;  %v456_v3 = vadd.f32 %v455_v0, %v441_v60 }
  0xe6   : > { %v418_v1 = vadd.f32 %v417_v62, %v968_v19  ;;  %v457_v6 = vadd.f32 %v456_v3, %v442_v63 }
  0xe8   : > { %v419_v4 = vadd.f32 %v418_v1, %v976_v23  ;;  %v458_v9 = vadd.f32 %v457_v6, %v443_v2 }
  0xea   : > { %v420_v7 = vadd.f32 %v419_v4, %v984_v27  ;;  %v459_v12 = vadd.f32 %v458_v9, %v444_v5 }
  0xec   : > { %v421_v10 = vadd.f32 %v420_v7, %v992_v31  ;;  %v460_v14 = vadd.f32 %v459_v12, %v445_v8 }
  0xee   : > { %v422_v13 = vrot.slane %v421_v10, 4  ;;  %v461_v32 = vadd.f32 %v460_v14, %v446_v11 }
  0xf0   : > { %v423_v15 = vadd.f32 %v422_v13, %v421_v10  ;;  %v462_v34 = vrot.slane %v461_v32, 4 }
  0xf2   : > { %v424_v33 = vrot.slane %v423_v15, 2  ;;  %v463_v36 = vadd.f32 %v462_v34, %v461_v32 }
  0xf4   : > { %v425_v35 = vadd.f32 %v424_v33, %v423_v15  ;;  %v464_v38 = vrot.slane %v463_v36, 2 }
  0xf6   : > { %v426_v37 = vrot.slane %v425_v35, 1  ;;  %v465_v41 = vadd.f32 %v464_v38, %v463_v36 }
  0xf8   : > { %v427_v40 = vadd.f32 %v426_v37, %v425_v35  ;;  %v466_v43 = vrot.slane %v465_v41, 1 }
  0xfa   : > { %v428_v42 = vadd.f32 %v427_v40, %v406_v39  ;;  %v467_v45 = vadd.f32 %v466_v43, %v465_v41 }
  0xfc   : > { %429 = vst [vmem:[#allocation2] sm:$0x1] %v428_v42  ;;  %v468_v46 = vadd.f32 %v467_v45, %v430_v44 }
  0xfe   : > { %469 = vst [vmem:[#allocation3] sm:$0x1] %v468_v46 }
  0xff PF: > { %p470_p6 = scmp.eq.s32.totalorder %s857_s15, 1 }
 0x100   : > { %v482_v60 = vld [vmem:[%s1180_s2] sm:$0x1] (%p470_p6) }
 0x101   : > { %474 = sbr.rel (!%p470_p6) target bundleno = 295 (0x127), region = 48  ;;  %v496_v0 = vld [vmem:[%s1181_s3] sm:$0x1] (%p470_p6) }
 0x103   : > { %v475_v47 = vld [vmem:[#allocation2] sm:$0x1] (%p470_p6) }
 0x104   : > { %v476_v49 = vmul.f32 (%p470_p6), 0.0078125, %v475_v47 }
 0x105   : > { %v477_v48 = vld [vmem:[#allocation3] sm:$0x1] (%p470_p6) }
 0x106   : > { %v478_v50 = vmul.f32 0.0078125, %v477_v48  ;;  %v479_v51 = vmul.f32 %v476_v49, %v476_v49 }
 0x108   : > { %v480_v52 = vsub.f32 %v478_v50, %v479_v51 }
 0x10a   : > { %v481_v53 = vmax.f32 %v480_v52, 0.0 }
 0x10c   : > { %v483_v54 = vadd.f32 1e-05, %v481_v53 }
 0x10e   : > { %839 = vrsqrt.f32 %v483_v54  ;;  %vm490_vm0 = vweird.f32 %v483_v54 }
 0x114   : > { %v840_v55 = vpop.eup %839 }
 0x115   : > { %v485_v56 = vmul.f32 %v840_v55, %v483_v54  ;;  %vm491_vm1 = vweird.f32 %v840_v55 }
 0x116   : > { %vm492_vm2 = vmor %vm490_vm0, %vm491_vm1 }
 0x117   : > { %v486_v57 = vmul.f32 %v840_v55, %v485_v56 }
 0x119   : > { %v487_v58 = vmul.f32 0.5, %v486_v57 }
 0x11b   : > { %v488_v59 = vsub.f32 1.5, %v487_v58 }
 0x11d   : > { %v489_v61 = vmul.f32 %v840_v55, %v488_v59 }
 0x11f   : > { %v493_v62 = vsel %vm492_vm2, %v840_v55, %v489_v61 }
 0x120   : > { %v494_v63 = vmul.f32 %v493_v62, %v482_v60 }
 0x122   : > { %495 = vst [vmem:[#allocation4] sm:$0x1] %v494_v63  ;;  %v497_v1 = vmul.f32 %v494_v63, %v476_v49 }
 0x124   : > { %v498_v2 = vsub.f32 %v496_v0, %v497_v1 }
 0x126   : > { %499 = vst [vmem:[#allocation5] sm:$0x1] %v498_v2 }
 0x127 PF: > { %p767_p7 = scmp.ne.s32.totalorder %s857_s15, 1 }
 0x129   : > { %502 = sbr.rel (%p767_p7) target bundleno = 333 (0x14d), region = 52 }
 0x12e   : > { %v1053_v3 = vld [vmem:[#allocation4] ss:$0 sm:$0xff]  ;;  %v1055_v4 = vld [vmem:[#allocation5] ss:$0 sm:$0xff]  ;;  %vm607_vm3 = vcmask 125952  }
 0x12f   : > { %v507_v5 = vmul.f32 %v1053_v3, %v962_v16  ;;  %v508_v6 = vmul.f32 %v1053_v3, %v970_v20  ;;  %v509_v7 = vmul.f32 %v1053_v3, %v978_v24  ;;  %v510_v8 = vmul.f32 %v1053_v3, %v986_v28 }
 0x130   : > { %v511_v9 = vmul.f32 %v1053_v3, %v964_v17  ;;  %v512_v10 = vmul.f32 %v1053_v3, %v972_v21  ;;  %v513_v11 = vmul.f32 %v1053_v3, %v980_v25  ;;  %v514_v16 = vmul.f32 %v1053_v3, %v988_v29 }
 0x131   : > { %v527_v20 = vadd.f32 %v1055_v4, %v507_v5  ;;  %v528_v12 = vadd.f32 %v1055_v4, %v508_v6  ;;  %v529_v24 = vadd.f32 %v1055_v4, %v509_v7  ;;  %v530_v28 = vadd.f32 %v1055_v4, %v510_v8 }
 0x132   : > { %v531_v13 = vadd.f32 %v1055_v4, %v511_v9  ;;  %v532_v17 = vadd.f32 %v1055_v4, %v512_v10  ;;  %v533_v21 = vadd.f32 %v1055_v4, %v513_v11  ;;  %v534_v14 = vadd.f32 %v1055_v4, %v514_v16 }
 0x133   : > { %vm543_vm4 = vcmp.gt.f32.partialorder %v527_v20, 0.0  ;;  %v559_v25 = vmul.f32 0.2, %v527_v20  ;;  %vm544_vm5 = vcmp.gt.f32.partialorder %v528_v12, 0.0  ;;  %v560_v29 = vmul.f32 0.2, %v528_v12 }
 0x134   : > { %vm545_vm6 = vcmp.gt.f32.partialorder %v529_v24, 0.0  ;;  %v561_v15 = vmul.f32 0.2, %v529_v24  ;;  %vm546_vm7 = vcmp.gt.f32.partialorder %v530_v28, 0.0  ;;  %v562_v32 = vmul.f32 0.2, %v530_v28 }
 0x135   : > { %v575_v33 = vsel %vm543_vm4, %v527_v20, %v559_v25  ;;  %v576_v34 = vsel %vm544_vm5, %v528_v12, %v560_v29  ;;  %vm547_vm8 = vcmp.gt.f32.partialorder %v531_v13, 0.0  ;;  %v563_v35 = vmul.f32 0.2, %v531_v13 }
 0x136   : > { %v591_v36 = vpack.c.bf16 %v575_v33, %v575_v33  ;;  %v592_v37 = vpack.c.bf16 %v576_v34, %v576_v34  ;;  %v577_v38 = vsel %vm545_vm6, %v529_v24, %v561_v15  ;;  %v578_v39 = vsel %vm546_vm7, %v530_v28, %v562_v32 }
 0x137   : > { %v593_v40 = vpack.c.bf16 %v577_v38, %v577_v38  ;;  %v594_v41 = vpack.c.bf16 %v578_v39, %v578_v39  ;;  %v579_v42 = vsel %vm547_vm8, %v531_v13, %v563_v35  ;;  %vm548_vm9 = vcmp.gt.f32.partialorder %v532_v17, 0.0 }
 0x138   : > { %608 = vst.msk [vmem:[%s1182_s4] sm:$0xf] %vm607_vm3, %v591_v36  ;;  %v595_v43 = vpack.c.bf16 %v579_v42, %v579_v42  ;;  %v564_v44 = vmul.f32 0.2, %v532_v17  ;;  %vm549_vm10 = vcmp.gt.f32.partialorder %v533_v21, 0.0  ;;  %vm550_vm11 = vcmp.gt.f32.partialorder %v534_v14, 0.0 }
 0x139   : > { %609 = vst.msk [vmem:[%s1182_s4 + $0x4] sm:$0xf] %vm607_vm3, %v592_v37  ;;  %v565_v45 = vmul.f32 0.2, %v533_v21  ;;  %v566_v46 = vmul.f32 0.2, %v534_v14  ;;  %v515_v47 = vmul.f32 %v1053_v3, %v966_v18  ;;  %v516_v48 = vmul.f32 %v1053_v3, %v974_v22 }
 0x13a   : > { %610 = vst.msk [vmem:[%s1182_s4 + $0x8] sm:$0xf] %vm607_vm3, %v593_v40  ;;  %v580_v49 = vsel %vm548_vm9, %v532_v17, %v564_v44  ;;  %v517_v50 = vmul.f32 %v1053_v3, %v982_v26  ;;  %v518_v51 = vmul.f32 %v1053_v3, %v990_v30  ;;  %v519_v52 = vmul.f32 %v1053_v3, %v968_v19 }
 0x13b   : > { %611 = vst.msk [vmem:[%s1182_s4 + $0xc] sm:$0xf] %vm607_vm3, %v594_v41  ;;  %v596_v18 = vpack.c.bf16 %v580_v49, %v580_v49  ;;  %v581_v22 = vsel %vm549_vm10, %v533_v21, %v565_v45  ;;  %v582_v53 = vsel %vm550_vm11, %v534_v14, %v566_v46  ;;  %v535_v54 = vadd.f32 %v1055_v4, %v515_v47 }
 0x13c   : > { %612 = vst.msk [vmem:[%s1182_s4 + $0x10] sm:$0xf] %vm607_vm3, %v595_v43  ;;  %v597_v26 = vpack.c.bf16 %v581_v22, %v581_v22  ;;  %v598_v30 = vpack.c.bf16 %v582_v53, %v582_v53  ;;  %v536_v55 = vadd.f32 %v1055_v4, %v516_v48  ;;  %v537_v19 = vadd.f32 %v1055_v4, %v517_v50 }
 0x13d   : > { %613 = vst.msk [vmem:[%s1182_s4 + $0x14] sm:$0xf] %vm607_vm3, %v596_v18  ;;  %vm551_vm12 = vcmp.gt.f32.partialorder %v535_v54, 0.0  ;;  %v567_v56 = vmul.f32 0.2, %v535_v54  ;;  %v538_v57 = vadd.f32 %v1055_v4, %v518_v51  ;;  %v539_v58 = vadd.f32 %v1055_v4, %v519_v52 }
 0x13e   : > { %614 = vst.msk [vmem:[%s1182_s4 + $0x18] sm:$0xf] %vm607_vm3, %v597_v26  ;;  %vm552_vm13 = vcmp.gt.f32.partialorder %v536_v55, 0.0  ;;  %v568_v59 = vmul.f32 0.2, %v536_v55  ;;  %vm553_vm14 = vcmp.gt.f32.partialorder %v537_v19, 0.0  ;;  %v520_v60 = vmul.f32 %v1053_v3, %v976_v23 }
 0x13f   : > { %615 = vst.msk [vmem:[%s1182_s4 + $0x1c] sm:$0xf] %vm607_vm3, %v598_v30  ;;  %v583_v61 = vsel %vm551_vm12, %v535_v54, %v567_v56  ;;  %v569_v62 = vmul.f32 0.2, %v537_v19  ;;  %vm554_vm15 = vcmp.gt.f32.partialorder %v538_v57, 0.0  ;;  %vm555_vm0 = vcmp.gt.f32.partialorder %v539_v58, 0.0 }
 0x140   : > { %v599_v63 = vpack.c.bf16 %v583_v61, %v583_v61  ;;  %v584_v0 = vsel %vm552_vm13, %v536_v55, %v568_v59  ;;  %v570_v1 = vmul.f32 0.2, %v538_v57  ;;  %v571_v2 = vmul.f32 0.2, %v539_v58 }
 0x141   : > { %v600_v5 = vpack.c.bf16 %v584_v0, %v584_v0  ;;  %v585_v6 = vsel %vm553_vm14, %v537_v19, %v569_v62  ;;  %v540_v7 = vadd.f32 %v1055_v4, %v520_v60  ;;  %v521_v23 = vmul.f32 %v1053_v3, %v984_v27 }
 0x142   : > { %616 = vst.msk [vmem:[%s1182_s4 + $0x20] sm:$0xf] %vm607_vm3, %v599_v63  ;;  %v601_v8 = vpack.c.bf16 %v585_v6, %v585_v6  ;;  %v586_v9 = vsel %vm554_vm15, %v538_v57, %v570_v1  ;;  %v587_v10 = vsel %vm555_vm0, %v539_v58, %v571_v2  ;;  %v522_v11 = vmul.f32 %v1053_v3, %v992_v31 }
 0x143   : > { %617 = vst.msk [vmem:[%s1182_s4 + $0x24] sm:$0xf] %vm607_vm3, %v600_v5  ;;  %v602_v16 = vpack.c.bf16 %v586_v9, %v586_v9  ;;  %v603_v20 = vpack.c.bf16 %v587_v10, %v587_v10  ;;  %vm556_vm1 = vcmp.gt.f32.partialorder %v540_v7, 0.0  ;;  %v572_v27 = vmul.f32 0.2, %v540_v7 }
 0x144   : > { %618 = vst.msk [vmem:[%s1182_s4 + $0x28] sm:$0xf] %vm607_vm3, %v601_v8  ;;  %v541_v12 = vadd.f32 %v1055_v4, %v521_v23  ;;  %v542_v24 = vadd.f32 %v1055_v4, %v522_v11 }
 0x145   : > { %619 = vst.msk [vmem:[%s1182_s4 + $0x2c] sm:$0xf] %vm607_vm3, %v602_v16  ;;  %v588_v31 = vsel %vm556_vm1, %v540_v7, %v572_v27 }
 0x146   : > { %620 = vst.msk [vmem:[%s1182_s4 + $0x30] sm:$0xf] %vm607_vm3, %v603_v20  ;;  %v604_v3 = vpack.c.bf16 %v588_v31, %v588_v31  ;;  %vm557_vm2 = vcmp.gt.f32.partialorder %v541_v12, 0.0  ;;  %v573_v28 = vmul.f32 0.2, %v541_v12  ;;  %vm558_vm4 = vcmp.gt.f32.partialorder %v542_v24, 0.0 }
 0x147   : > { %v574_v13 = vmul.f32 0.2, %v542_v24 }
 0x148   : > { %621 = vst.msk [vmem:[%s1182_s4 + $0x34] sm:$0xf] %vm607_vm3, %v604_v3  ;;  %v589_v4 = vsel %vm557_vm2, %v541_v12, %v573_v28 }
 0x149   : > { %v605_v17 = vpack.c.bf16 %v589_v4, %v589_v4  ;;  %v590_v21 = vsel %vm558_vm4, %v542_v24, %v574_v13 }
 0x14a   : > { %v606_v14 = vpack.c.bf16 %v590_v21, %v590_v21 }
 0x14b   : > { %622 = vst.msk [vmem:[%s1182_s4 + $0x38] sm:$0xf] %vm607_vm3, %v605_v17 }
 0x14c   : > { %623 = vst.msk [vmem:[%s1182_s4 + $0x3c] sm:$0xf] %vm607_vm3, %v606_v14 }
 0x14d PF: > { %s14_s17 = sadd.s32 1, %s865_s17   ;;  %s1183_s15 = smov %s861_s16 }
 0x14e   : > { %p11_p8 = scmp.ge.s32.totalorder %s14_s17, 4   ;;  %s1184_s16 = smov %s1186_s18 }
 0x150   :  { %13 = sbr.rel (!%p11_p8) target bundleno = 2 (0x2), region = 82 }

// kernel: discriminator_forward.5
= control target key start
LH: loop header
LB: loop body
LE: loop exit
PB: predicated region body
PF: predicated region fallthrough
CT: control target
= control target key end

     0   :  { %s965_s26 = smov 0   ;;  %s967_s27 = smov 0   ;;  %s1112_s0 = inlined_call_operand.vmem [shape: bf16[32,256], index: 0, kind: input, shape index: {}]   ;;  %s1113_s1 = inlined_call_operand.vmem [shape: bf16[256,128], index: 1, kind: input, shape index: {}]   ;;  %s1114_s2 = inlined_call_operand.vmem [shape: f32[1,128], index: 2, kind: input, shape index: {}]   ;;  %s1115_s3 = inlined_call_operand.vmem [shape: f32[1,128], index: 3, kind: input, shape index: {}]   ;;  %s1116_s4 = inlined_call_operand.vmem [shape: bf16[32,128], index: 4, kind: input, shape index: {}]   ;;  %s1117_s5 = inlined_call_operand.vmem [shape: bf16[2,32], index: 5, kind: input, shape index: {}]   ;;  %s1118_s6 = inlined_call_operand.<no memory space> [shape: f32[1,1], index: 6, kind: input, shape index: {}]   ;;  %s1119_s7 = inlined_call_operand.vmem [shape: f32[2,1], index: 7, kind: output, shape index: {}]  }
   0x1   :  { %v12_v0 = vstv %s1118_s6  ;;  %s969_s28 = smov 0  }
   0x2   :  { %13 = vst [vmem:[#allocation6] sm:$0x1] %v12_v0 }
   0x3 LB: > { %s31_s6 = sadd.s32 1, %s915_s27  ;;  %p726_p0 = scmp.ge.s32.totalorder %s919_s28, 1  ;;  %s919_s28 = sphi %s969_s28, %s19_s28   ;;  %s915_s27 = sphi %s967_s27, %s1121_s27   ;;  %s911_s26 = sphi %s965_s26, %s1120_s26  }
   0x4   : > { %p33_p1 = scmp.ge.s32.totalorder %s31_s6, 2  ;;  %p255_p2 = scmp.lt.s32.totalorder %s919_s28, 3 }
   0x6   : > { %s1123_s6 = smov (%p33_p1, %s31_s6), 0  ;;  %p256_p3 = pnand %p726_p0, %p255_p2 }
   0x7   : > { %p492_p4 = scmp.eq.s32.totalorder (!%p256_p3), %s911_s26, 0 }
   0x8   : > { %259 = sbr.rel (%p256_p3) target bundleno = 559 (0x22f), region = 48 }
   0xd   : > { %v827_v1 = vld [vmem:[%s1113_s1 + $0x38] sm:$0xff]  ;;  %v826_v3 = vld [vmem:[%s1113_s1 + $0x30] sm:$0xff]  ;;  %v825_v5 = vld [vmem:[%s1113_s1 + $0x28] sm:$0xff]  ;;  %v921_v41 = vmov (%p492_p4), 0.0  }
   0xe   : > { %v835_v2 = vld [vmem:[%s1113_s1 + $0x78] sm:$0xff]  ;;  %454 = vmatpush.bf16.msra.mxu0 %v827_v1  ;;  %847 = vmatpush.bf16.msra.mxu2 %v827_v1  ;;  %v834_v4 = vld [vmem:[%s1113_s1 + $0x70] sm:$0xff]  ;;  %v833_v6 = vld [vmem:[%s1113_s1 + $0x68] sm:$0xff]  ;;  %498 = vst [vmem:[#allocation2] sm:$0x1] (%p492_p4), %v921_v41 }
   0xf   : > { %473 = vmatpush.bf16.msra.mxu1 %v835_v2  ;;  %855 = vmatpush.bf16.msra.mxu3 %v835_v2  ;;  %v824_v7 = vld [vmem:[%s1113_s1 + $0x20] sm:$0xff]  ;;  %v823_v9 = vld [vmem:[%s1113_s1 + $0x18] sm:$0xff]  ;;  %v822_v11 = vld [vmem:[%s1113_s1 + $0x10] sm:$0xff]  ;;  %499 = vst [vmem:[#allocation3] sm:$0x1] (%p492_p4), %v921_v41 }
  0x10   : > { %v832_v8 = vld [vmem:[%s1113_s1 + $0x60] sm:$0xff]  ;;  %v831_v10 = vld [vmem:[%s1113_s1 + $0x58] sm:$0xff]  ;;  %v830_v12 = vld [vmem:[%s1113_s1 + $0x50] sm:$0xff] }
  0x11   : > { %v821_v13 = vld [vmem:[%s1113_s1 + $0x8] sm:$0xff]  ;;  %v820_v15 = vld [vmem:[%s1113_s1] sm:$0xff]  ;;  %v737_v19 = vld [vmem:[%s1112_s0 + $0x10] sm:$0xf] }
  0x12   : > { %455 = vmatpush.bf16.msra.mxu0 %v826_v3  ;;  %848 = vmatpush.bf16.msra.mxu2 %v826_v3  ;;  %v829_v14 = vld [vmem:[%s1113_s1 + $0x48] sm:$0xff]  ;;  %v828_v16 = vld [vmem:[%s1113_s1 + $0x40] sm:$0xff]  ;;  %v819_v20 = vld [vmem:[%s1112_s0 + $0x14] sm:$0xf0] }
  0x13   : > { %474 = vmatpush.bf16.msra.mxu1 %v834_v4  ;;  %856 = vmatpush.bf16.msra.mxu3 %v834_v4  ;;  %v729_v17 = vld [vmem:[%s1112_s0] sm:$0xf]  ;;  %v817_v18 = vld [vmem:[%s1112_s0 + $0x4] sm:$0xf0]  ;;  %v816_v21 = vld [vmem:[%s1112_s0 + $0x4] sm:$0xf]  ;;  %v738_v26 = vor.u32 %v819_v20, %v737_v19 }
  0x14   : > { %v731_v22 = vld [vmem:[%s1112_s0 + $0x8] sm:$0xf0]  ;;  %v818_v23 = vld [vmem:[%s1112_s0 + $0x14] sm:$0xf]  ;;  %v739_v24 = vld [vmem:[%s1112_s0 + $0x18] sm:$0xf0]  ;;  %v730_v25 = vor.u32 %v817_v18, %v729_v17 }
  0x15   : > { %v734_v27 = vor.u32 %v816_v21, %v731_v22  ;;  %v742_v28 = vor.u32 %v818_v23, %v739_v24 }
  0x16   : > { %456 = vmatpush.bf16.msra.mxu0 %v825_v5  ;;  %849 = vmatpush.bf16.msra.mxu2 %v825_v5 }
  0x17   : > { %475 = vmatpush.bf16.msra.mxu1 %v833_v6  ;;  %857 = vmatpush.bf16.msra.mxu3 %v833_v6 }
  0x1a   : > { %457 = vmatpush.bf16.msra.mxu0 %v824_v7  ;;  %850 = vmatpush.bf16.msra.mxu2 %v824_v7 }
  0x1b   : > { %476 = vmatpush.bf16.msra.mxu1 %v832_v8  ;;  %858 = vmatpush.bf16.msra.mxu3 %v832_v8 }
  0x1e   : > { %458 = vmatpush.bf16.msra.mxu0 %v823_v9  ;;  %851 = vmatpush.bf16.msra.mxu2 %v823_v9 }
  0x1f   : > { %477 = vmatpush.bf16.msra.mxu1 %v831_v10  ;;  %859 = vmatpush.bf16.msra.mxu3 %v831_v10 }
  0x22   : > { %459 = vmatpush.bf16.msra.mxu0 %v822_v11  ;;  %852 = vmatpush.bf16.msra.mxu2 %v822_v11 }
  0x23   : > { %478 = vmatpush.bf16.msra.mxu1 %v830_v12  ;;  %860 = vmatpush.bf16.msra.mxu3 %v830_v12 }
  0x26   : > { %460 = vmatpush.bf16.msra.mxu0 %v821_v13  ;;  %853 = vmatpush.bf16.msra.mxu2 %v821_v13 }
  0x27   : > { %479 = vmatpush.bf16.msra.mxu1 %v829_v14  ;;  %861 = vmatpush.bf16.msra.mxu3 %v829_v14 }
  0x2a   : > { %461 = vmatpush.bf16.msra.mxu0 %v820_v15  ;;  %854 = vmatpush.bf16.msra.mxu2 %v820_v15 }
  0x2b   : > { %480 = vmatpush.bf16.msra.mxu1 %v828_v16  ;;  %862 = vmatpush.bf16.msra.mxu3 %v828_v16 }
  0x2d   : > { %462 = vmatmul.bf16.vlgmr.msra.gmra.mxu0 %v730_v25  ;;  %467 = vmatmul.bf16.vlgmr.msra.gmra.mxu2 %v738_v26 }
  0x2e   : > { %481 = vmatmul.bf16.vlgmr.msra.gmra.mxu1 %v734_v27  ;;  %486 = vmatmul.bf16.vlgmr.msra.gmra.mxu3 %v742_v28 }
  0xaa   : > { %v463_v29 = vpop.f32.mrf.mxu0 }
  0xab   : > { %v482_v30 = vpop.f32.mrf.mxu1 }
  0xac   : > { %v1058_v31 = vadd.f32 %v482_v30, %v463_v29 }
  0xb0   : > { %v468_v32 = vpop.f32.mrf.mxu2 }
  0xb1   : > { %v487_v33 = vpop.f32.mrf.mxu3 }
  0xb2   : > { %v1060_v34 = vadd.f32 %v487_v33, %v468_v32  ;;  %v465_v35 = vpop.f32.mrf.mxu0 }
  0xb3   : > { %v484_v36 = vpop.f32.mrf.mxu1 }
  0xb4   : > { %v1062_v37 = vadd.f32 %v484_v36, %v465_v35 }
  0xb6   : > { %497 = sbr.rel (!%p492_p4) target bundleno = 187 (0xbb), region = 52 }
  0xb8   : > { %v470_v38 = vpop.f32.mrf.mxu2 }
  0xb9   : > { %v489_v39 = vpop.f32.mrf.mxu3 }
  0xba   : > { %v1064_v40 = vadd.f32 %v489_v39, %v470_v38 }
  0xbb PF: > { %p808_p5 = scmp.ne.s32.totalorder %s911_s26, 0 }
  0xbd   : > { %502 = sbr.rel (%p808_p5) target bundleno = 217 (0xd9), region = 56 }
  0xc2   : > { %v504_v42 = vadd.f32 %v1062_v37, %v1058_v31  ;;  %v516_v43 = vmul.f32 %v1058_v31, %v1058_v31  ;;  %v517_v44 = vmul.f32 %v1062_v37, %v1062_v37  ;;  %v518_v45 = vmul.f32 %v1060_v34, %v1060_v34  ;;  %v503_v61 = vld [vmem:[#allocation2] sm:$0x1]  ;;  %v515_v0 = vld [vmem:[#allocation3] sm:$0x1] }
  0xc3   : > { %v519_v47 = vmul.f32 %v1064_v40, %v1064_v40 }
  0xc4   : > { %v505_v46 = vadd.f32 %v504_v42, %v1060_v34  ;;  %v520_v48 = vadd.f32 %v517_v44, %v516_v43 }
  0xc6   : > { %v506_v49 = vadd.f32 %v505_v46, %v1064_v40  ;;  %v521_v50 = vadd.f32 %v520_v48, %v518_v45 }
  0xc8   : > { %v507_v51 = vrot.slane %v506_v49, 4  ;;  %v522_v52 = vadd.f32 %v521_v50, %v519_v47 }
  0xca   : > { %v508_v53 = vadd.f32 %v507_v51, %v506_v49  ;;  %v523_v54 = vrot.slane %v522_v52, 4 }
  0xcc   : > { %v509_v55 = vrot.slane %v508_v53, 2  ;;  %v524_v56 = vadd.f32 %v523_v54, %v522_v52 }
  0xce   : > { %v510_v57 = vadd.f32 %v509_v55, %v508_v53  ;;  %v525_v58 = vrot.slane %v524_v56, 2 }
  0xd0   : > { %v511_v59 = vrot.slane %v510_v57, 1  ;;  %v526_v60 = vadd.f32 %v525_v58, %v524_v56 }
  0xd2   : > { %v512_v62 = vadd.f32 %v511_v59, %v510_v57  ;;  %v527_v63 = vrot.slane %v526_v60, 1 }
  0xd4   : > { %v513_v1 = vadd.f32 %v512_v62, %v503_v61  ;;  %v528_v2 = vadd.f32 %v527_v63, %v526_v60 }
  0xd6   : > { %514 = vst [vmem:[#allocation2] sm:$0x1] %v513_v1  ;;  %v529_v3 = vadd.f32 %v528_v2, %v515_v0 }
  0xd8   : > { %530 = vst [vmem:[#allocation3] sm:$0x1] %v529_v3 }
  0xd9 PF: > { %p531_p6 = scmp.eq.s32.totalorder %s911_s26, 1 }
  0xda   : > { %v543_v17 = vld [vmem:[%s1114_s2] sm:$0x1] (%p531_p6) }
  0xdb   : > { %535 = sbr.rel (!%p531_p6) target bundleno = 257 (0x101), region = 60  ;;  %v557_v21 = vld [vmem:[%s1115_s3] sm:$0x1] (%p531_p6) }
  0xdd   : > { %v536_v4 = vld [vmem:[#allocation2] sm:$0x1] (%p531_p6) }
  0xde   : > { %v537_v6 = vmul.f32 (%p531_p6), 0.03125, %v536_v4 }
  0xdf   : > { %v538_v5 = vld [vmem:[#allocation3] sm:$0x1] (%p531_p6) }
  0xe0   : > { %v539_v7 = vmul.f32 0.03125, %v538_v5  ;;  %v540_v8 = vmul.f32 %v537_v6, %v537_v6 }
  0xe2   : > { %v541_v9 = vsub.f32 %v539_v7, %v540_v8 }
  0xe4   : > { %v542_v10 = vmax.f32 %v541_v9, 0.0 }
  0xe6   : > { %v544_v11 = vadd.f32 1e-05, %v542_v10 }
  0xe8   : > { %888 = vrsqrt.f32 %v544_v11  ;;  %vm551_vm0 = vweird.f32 %v544_v11 }
  0xee   : > { %v889_v12 = vpop.eup %888 }
  0xef   : > { %v546_v13 = vmul.f32 %v889_v12, %v544_v11  ;;  %vm552_vm1 = vweird.f32 %v889_v12 }
  0xf0   : > { %vm553_vm2 = vmor %vm551_vm0, %vm552_vm1 }
  0xf1   : > { %v547_v14 = vmul.f32 %v889_v12, %v546_v13 }
  0xf3   : > { %v548_v15 = vmul.f32 0.5, %v547_v14 }
  0xf5   : > { %v549_v16 = vsub.f32 1.5, %v548_v15 }
  0xf7   : > { %v550_v18 = vmul.f32 %v889_v12, %v549_v16 }
  0xf9   : > { %v554_v19 = vsel %vm553_vm2, %v889_v12, %v550_v18 }
  0xfa   : > { %v555_v20 = vmul.f32 %v554_v19, %v543_v17 }
  0xfc   : > { %556 = vst [vmem:[#allocation4] sm:$0x1] %v555_v20  ;;  %v558_v22 = vmul.f32 %v555_v20, %v537_v6 }
  0xfe   : > { %v559_v23 = vsub.f32 %v557_v21, %v558_v22 }
 0x100   : > { %560 = vst [vmem:[#allocation5] sm:$0x1] %v559_v23 }
 0x101 PF: > { %p810_p7 = scmp.ne.s32.totalorder %s911_s26, 1 }
 0x103   : > { %563 = sbr.rel (%p810_p7) target bundleno = 559 (0x22f), region = 64 }
 0x108   : > { %v890_v24 = vld [vmem:[#allocation4] ss:$0 sm:$0xff]  ;;  %v891_v25 = vld [vmem:[#allocation5] ss:$0 sm:$0xff]  ;;  %v846_v26 = vld [vmem:[%s1116_s4 + $0x8] sm:$0xff]   ;;  %vm607_vm7 = vcmask 261120  }
 0x109   : > { %v570_v27 = vmul.f32 %v890_v24, %v1060_v34  ;;  %v571_v28 = vmul.f32 %v890_v24, %v1064_v40  ;;  %v839_v29 = vld [vmem:[%s1116_s4] sm:$0xff]   ;;  %v568_v30 = vmul.f32 %v890_v24, %v1058_v31  ;;  %v569_v32 = vmul.f32 %v890_v24, %v1062_v37 }
 0x10a   : > { %v844_v36 = vunpack.c.l.bf16 %v846_v26  ;;  %v845_v38 = vunpack.c.h.bf16 %v846_v26  ;;  %v840_v42 = vunpack.c.l.bf16 %v839_v29  ;;  %v841_v43 = vunpack.c.h.bf16 %v839_v29  ;;  %v606_v54 = vld [vmem:[%s1117_s5] sm:$0x1]  ;;  %v892_v58 = vld [vmem:[#allocation6] ss:$0 sm:$0xff] }
 0x10b   : > { %v578_v33 = vadd.f32 %v891_v25, %v570_v27  ;;  %v579_v35 = vadd.f32 %v891_v25, %v571_v28  ;;  %v576_v39 = vadd.f32 %v891_v25, %v568_v30  ;;  %v577_v41 = vadd.f32 %v891_v25, %v569_v32 }
 0x10c   : > { %vm624_vm8 = vcmask 1041408   ;;  %vm652_vm12 = vcmask 1024  }
 0x10d   : > { %vm582_vm3 = vcmp.gt.f32.partialorder %v578_v33, 0.0  ;;  %vm583_vm4 = vcmp.gt.f32.partialorder %v579_v35, 0.0  ;;  %v586_v34 = vmul.f32 0.2, %v578_v33  ;;  %v587_v40 = vmul.f32 0.2, %v579_v35 }
 0x10e   : > { %vm580_vm5 = vcmp.gt.f32.partialorder %v576_v39, 0.0  ;;  %vm581_vm6 = vcmp.gt.f32.partialorder %v577_v41, 0.0  ;;  %v584_v44 = vmul.f32 0.2, %v576_v39  ;;  %v585_v45 = vmul.f32 0.2, %v577_v41 }
 0x10f   : > { %v590_v46 = vsel %vm582_vm3, %v578_v33, %v586_v34  ;;  %v591_v31 = vsel %vm583_vm4, %v579_v35, %v587_v40 }
 0x110   : > { %v602_v47 = vmul.f32 %v844_v36, %v590_v46  ;;  %v603_v37 = vmul.f32 %v845_v38, %v591_v31  ;;  %v588_v48 = vsel %vm580_vm5, %v576_v39, %v584_v44  ;;  %v589_v49 = vsel %vm581_vm6, %v577_v41, %v585_v45 }
 0x111   : > { %v600_v50 = vmul.f32 %v840_v42, %v588_v48  ;;  %v601_v51 = vmul.f32 %v841_v43, %v589_v49 }
 0x112   : > { %v605_v52 = vpack.c.bf16 %v603_v37, %v602_v47 }
 0x113   : > { %v604_v53 = vpack.c.bf16 %v601_v51, %v600_v50 }
 0x114   : > { %617 = vmatpush.bf16.msra.mxu0 %v605_v52 }
 0x118   : > { %618 = vmatpush.bf16.msra.mxu0 %v604_v53 }
 0x11b   : > { %811 = vmatmul.msk.bf16.vlgmr.msra.gmra.mxu0 %vm607_vm7, %v606_v54 }
 0x198   : > { %v620_v55 = vpop.f32.mrf.mxu0 }
 0x199   : > { %v625_v56 = vsel %vm624_vm8, %v620_v55, 0.0 }
 0x19a   : > { %626 = vadd.xlane.f32.xlu0 %v625_v56 }
 0x1a0   : > { %v622_v57 = vpop.f32.mrf.mxu0 }
 0x20d   : > { %v627_v59 = vpop.xlane.xlu0 %626 }
 0x20e   : > { %v632_v60 = vadd.f32 %v892_v58, %v627_v59 }
 0x210   : > { %v633_v61 = vsub.f32 0.0, %v632_v60 }
 0x212   : > { %v634_v62 = vmul.f32 1.442695, %v633_v61 }
 0x214   : > { %893 = vpow2.f32 %v634_v62 }
 0x21a   : > { %v894_v63 = vpop.eup %893 }
 0x21b   : > { %v636_v0 = vadd.f32 1.0, %v894_v63 }
 0x21d   : > { %895 = vrcp.f32 %v636_v0  ;;  %v648_v4 = vand.u32 2147483648, %v636_v0  ;;  %v646_v6 = vand.u32 2147483647, %v636_v0  ;;  %vm642_vm10 = vweird.f32 %v636_v0 }
 0x21f   : > { %v649_v8 = vor.u32 1.1754944e-38, %v648_v4  ;;  %vm647_vm13 = vcmp.eq.f32.partialorder %v646_v6, 8.507059e+37 }
 0x223   : > { %v896_v1 = vpop.eup %895 }
 0x224   : > { %v638_v2 = vmul.f32 %v896_v1, %v636_v0  ;;  %vm643_vm9 = vweird.f32 %v896_v1 }
 0x225   : > { %vm644_vm11 = vmor %vm642_vm10, %vm643_vm9 }
 0x226   : > { %v639_v3 = vsub.f32 1.0, %v638_v2 }
 0x228   : > { %v640_v5 = vmul.f32 %v896_v1, %v639_v3 }
 0x22a   : > { %v641_v7 = vadd.f32 %v896_v1, %v640_v5 }
 0x22c   : > { %v645_v9 = vsel %vm644_vm11, %v896_v1, %v641_v7 }
 0x22d   : > { %v650_v10 = vsel %vm647_vm13, %v649_v8, %v645_v9 }
 0x22e   : > { %653 = vst.msk [vmem:[%s1119_s7] sm:$0x3] %vm652_vm12, %v650_v10 }
 0x22f PF: > { %s19_s28 = sadd.s32 1, %s919_s28   ;;  %s1120_s26 = smov %s915_s27 }
 0x230   : > { %p16_p8 = scmp.ge.s32.totalorder %s19_s28, 4   ;;  %s1121_s27 = smov %s1123_s6 }
 0x232   :  { %18 = sbr.rel (!%p16_p8) target bundleno = 3 (0x3), region = 94 }

</bundles_post_ra>
